<compile_context>
chip_gen: v6e
topology: v6e:2x2x1
jax: 0.10.0
libtpu: 0.0.40
codegen_flags: <defaults>
</compile_context>

<pallas_src>
import functools

import jax
import jax.numpy as jnp
from jax import lax
from jax.experimental import pallas as pl
from jax.experimental.pallas import tpu as pltpu

KSIZE = 7  # temporal conv kernel size of the module


def _round_up(x, m):
    return (x + m - 1) // m * m


def _cdiv(a, b):
    return -(-a // b)


def _snake_default_dtype():
    """bf16 snake math on chips with a bf16 VPU/EUP (v6e / v7x); f32 on v5e and older."""
    try:
        kind = jax.devices()[0].device_kind.lower()
    except Exception:
        return jnp.float32
    if any(t in kind for t in ("v2", "v3", "v4", "v5")):
        return jnp.float32
    return jnp.bfloat16


def _kernel(xl_ref, xm_ref, xr_ref, vec_ref, w1_ref, w2_ref, scal_ref,
            o_ref, s1_ref,
            *, lt, padr, pad, dil, nt, l_rem, snake_dtype):
    """One (batch, time-tile) grid step."""
    l = pl.program_id(1)
    lw = lt + 2 * padr
    cdtype = s1_ref.dtype
    cw = s1_ref.shape[1]                                # channel width (== C)

    vp = vec_ref[...]                                   # (8, C) resident per-channel params (f32)
    a1 = vp[0:1].astype(snake_dtype)
    inv_a1 = vp[1:2].astype(snake_dtype)
    b1 = vp[2:3]                                        # f32, added to the f32 conv accumulator
    a2 = vp[3:4].astype(snake_dtype)
    inv_a2 = vp[4:5].astype(snake_dtype)
    b2 = vp[5:6]

    def snake(v, a, inv_a):
        v = v.astype(snake_dtype)
        s = jnp.sin(a * v)
        return v + inv_a * (s * s)

    # ---- snake #1, written ONCE into the compute-dtype window scratch (no shifted copies) ----
    s1_ref[padr:padr + lt, :] = snake(xm_ref[0], a1, inv_a1).astype(cdtype)
    s1_ref[0:padr, :] = snake(xl_ref[0], a1, inv_a1).astype(cdtype)
    s1_ref[padr + lt:lw, :] = snake(xr_ref[0], a1, inv_a1).astype(cdtype)

    # ---- in-kernel zero padding of the conv window (replaces any HBM-side jnp.pad) ----
    @pl.when(l == 0)                                    # sequence rows < 0
    def _():
        s1_ref[0:padr, :] = jnp.zeros((padr, cw), cdtype)

    @pl.when(l == nt - 1)                               # right halo of the last tile: rows >= L
    def _():
        s1_ref[padr + lt:lw, :] = jnp.zeros((padr, cw), cdtype)

    if l_rem < lt:                                      # ragged tail of the last main tile
        @pl.when(l == nt - 1)
        def _():
            s1_ref[padr + l_rem:padr + lt, :] = jnp.zeros((lt - l_rem, cw), cdtype)

    if nt >= 2 and l_rem < padr:                        # right halo of the 2nd-to-last tile
        @pl.when(l == nt - 2)
        def _():
            s1_ref[padr + lt + l_rem:lw, :] = jnp.zeros((padr - l_rem, cw), cdtype)

    # ---- dilated conv1d k=7: seven time-shifted MXU matmuls, operands streamed straight
    #      from the VMEM scratch ref, f32 accumulation ----
    off0 = padr - pad
    acc = jnp.dot(s1_ref[pl.ds(off0, lt), :], w1_ref[0],
                  preferred_element_type=jnp.float32)
    for k in range(1, KSIZE):
        acc = acc + jnp.dot(s1_ref[pl.ds(off0 + k * dil, lt), :], w1_ref[k],
                            preferred_element_type=jnp.float32)
    h = acc + b1

    # ---- snake #2 + pointwise conv (kernel_size=1) ----
    s2 = snake(h, a2, inv_a2)
    y = jnp.dot(s2.astype(cdtype), w2_ref[...],
                preferred_element_type=jnp.float32) + b2

    # ---- normalization-free residual mix: sqrt(1-beta^2) * x + beta * layers(x) ----
    coef = scal_ref[0]
    beta = scal_ref[1]
    o_ref[0] = (coef * xm_ref[0].astype(jnp.float32) + beta * y).astype(o_ref.dtype)


def temporal_res_block(x_blc, params, *, dilation, time_tile=None,
                       compute_dtype=jnp.bfloat16, snake_dtype=None,
                       out_dtype=None, vmem_budget_bytes=None):
    """Channels-last TemporalResBlock forward.  x_blc: (B, L, C) -> (B, L, C)."""
    B, L, C = x_blc.shape
    pad = dilation * (KSIZE - 1) // 2                   # 'same' padding of the k=7 conv
    padr = _round_up(max(pad, 1), 8)                    # per-side halo rows, sublane aligned
    out_dtype = x_blc.dtype if out_dtype is None else out_dtype
    if snake_dtype is None:
        snake_dtype = (jnp.float32
                       if jnp.dtype(compute_dtype) == jnp.dtype(jnp.float32)
                       else _snake_default_dtype())

    # --- generation-aware VMEM budget (v5e/v6e: 128 MiB, v7x: 64 MiB per TC) ---
    try:
        vmem_cap = int(getattr(pltpu.get_tpu_info(), "vmem_capacity_bytes",
                               64 * 1024 * 1024))
    except Exception:
        vmem_cap = 64 * 1024 * 1024
    if vmem_budget_bytes is None:
        vmem_budget_bytes = int(vmem_cap * 0.70)
    vmem_limit = max(int(vmem_cap * 0.85), vmem_budget_bytes)

    # --- explicit VMEM footprint accounting -> time tile size ---
    Cl = _round_up(C, 128)                              # lanes occupied per row in VMEM
    Cr = _round_up(C, 8)
    cmp_b = jnp.dtype(compute_dtype).itemsize
    in_b = jnp.dtype(x_blc.dtype).itemsize
    out_b = jnp.dtype(out_dtype).itemsize
    # resident operands (double-buffered by the pipeline)
    fixed = 2 * (KSIZE * Cr * Cl + Cr * Cl) * cmp_b + 2 * 8 * Cl * 4
    # left+right halo tiles (x2 buffers each) + their slice of the window scratch
    fixed += padr * Cl * (4 * in_b + 2 * cmp_b)
    # per output-time-row: x tile (x2 buffers), out tile (x2), window scratch, and ~6 live
    # f32 temporaries (conv acc / s2 / y / snake intermediates).
    per_row = Cl * (2 * in_b + 2 * out_b + cmp_b + 6 * 4)

    if time_tile is None:
        avail = vmem_budget_bytes - fixed
        lt = (avail // per_row) if avail > 0 else padr
    else:
        lt = int(time_tile)
    lt = max(padr, (lt // padr) * padr)                 # multiple of the halo block size
    if L >= padr:
        lt = min(lt, (L // padr) * padr)                # keep every block inside the time axis
    nt = _cdiv(L, lt)
    l_rem = L - (nt - 1) * lt                           # valid rows of the last tile (static)
    qp = lt // padr
    nblk_h = _cdiv(L, padr)                             # # of halo-sized blocks along time

    # --- one-time parameter packing (tiny; no activation copies) ---
    def _vec(name):
        return params[name].reshape(-1).astype(jnp.float32)

    alpha1, alpha2 = _vec("alpha1"), _vec("alpha2")
    vec = jnp.stack([alpha1, 1.0 / (alpha1 + 1e-9), _vec("b1"),
                     alpha2, 1.0 / (alpha2 + 1e-9), _vec("b2"),
                     jnp.zeros((C,), jnp.float32), jnp.zeros((C,), jnp.float32)])  # (8, C)

    w1 = params["w1"].astype(compute_dtype)             # (K, C, C) = (K, in, out)
    w2 = params["w2"].astype(compute_dtype)             # (C, C)    = (in, out)
    beta = params["beta"].reshape(()).astype(jnp.float32)
    # NOTE: sqrt(1 - beta^2) is NaN for |beta| >= 1, exactly as in the PyTorch module.
    scal = jnp.stack([jnp.sqrt(1.0 - beta ** 2), beta])  # (2,) -> SMEM

    kern = functools.partial(_kernel, lt=lt, padr=padr, pad=pad, dil=dilation,
                             nt=nt, l_rem=l_rem, snake_dtype=snake_dtype)

    out = pl.pallas_call(
        kern,
        out_shape=jax.ShapeDtypeStruct((B, L, C), out_dtype),
        grid_spec=pltpu.PrefetchScalarGridSpec(
            num_scalar_prefetch=0,
            grid=(B, nt),
            in_specs=[
                # left halo: rows [l*lt - padr, l*lt); clamped at the front, zeroed in-kernel
                pl.BlockSpec((1, padr, C),
                             lambda b, l: (b, jnp.maximum(l * qp - 1, 0), 0)),
                # main tile: rows [l*lt, l*lt + lt)  (1:1 with the output tile)
                pl.BlockSpec((1, lt, C), lambda b, l: (b, l, 0)),
                # right halo: rows [(l+1)*lt, (l+1)*lt + padr); clamped at the end
                pl.BlockSpec((1, padr, C),
                             lambda b, l: (b, jnp.minimum((l + 1) * qp, nblk_h - 1), 0)),
                pl.BlockSpec((8, C), lambda b, l: (0, 0)),             # packed per-chan params
                pl.BlockSpec((KSIZE, C, C), lambda b, l: (0, 0, 0)),   # w1 (resident)
                pl.BlockSpec((C, C), lambda b, l: (0, 0)),             # w2 (resident)
                pl.BlockSpec(memory_space=pltpu.MemorySpace.SMEM),     # [sqrt(1-b^2), b]
            ],
            out_specs=pl.BlockSpec((1, lt, C), lambda b, l: (b, l, 0)),
            scratch_shapes=[pltpu.VMEM((lt + 2 * padr, C), compute_dtype)],
        ),
        compiler_params=pltpu.CompilerParams(
            dimension_semantics=("parallel", "parallel"),
            vmem_limit_bytes=vmem_limit,
        ),
    )(x_blc, x_blc, x_blc, vec, w1, w2, scal)
    return out


def temporal_res_block_ncl(x_ncl, params, *, dilation, **kw):
    """PyTorch-interface (B, C, L) adapter; prefer the channels-last entry point."""
    y = temporal_res_block(jnp.transpose(x_ncl, (0, 2, 1)), params, dilation=dilation, **kw)
    return jnp.transpose(y, (0, 2, 1))


def reference_forward(x_ncl, params, *, dilation):
    """Pure-JAX reference mirroring the PyTorch module (NCL layout, f32, HIGHEST precision)."""
    C = x_ncl.shape[1]
    pad = dilation * (KSIZE - 1) // 2
    prec = lax.Precision.HIGHEST

    def snake(x, alpha):
        a = alpha.reshape(1, C, 1)
        return x + (1.0 / (a + 1e-9)) * jnp.sin(a * x) ** 2

    # torch Conv1d weight layout is (O, I, K); our param layout is (K, I, O)
    w1_oik = jnp.transpose(params["w1"], (2, 1, 0))
    w2_oik = params["w2"].T[:, :, None]

    h = snake(x_ncl, params["alpha1"])
    h = lax.conv_general_dilated(h, w1_oik, window_strides=(1,),
                                 padding=[(pad, pad)], rhs_dilation=(dilation,),
                                 dimension_numbers=("NCH", "OIH", "NCH"), precision=prec)
    h = h + params["b1"].reshape(1, C, 1)
    h = snake(h, params["alpha2"])
    h = lax.conv_general_dilated(h, w2_oik, window_strides=(1,), padding=[(0, 0)],
                                 dimension_numbers=("NCH", "OIH", "NCH"), precision=prec)
    h = h + params["b2"].reshape(1, C, 1)
    beta = params["beta"].reshape(())
    return jnp.sqrt(1.0 - beta ** 2) * x_ncl + beta * h


def init_params(key, channels):
    ks = jax.random.split(key, 7)
    return {
        "alpha1": 1.0 + 0.05 * jax.random.normal(ks[0], (channels,), jnp.float32),
        "w1": 0.1 * jax.random.normal(ks[1], (KSIZE, channels, channels), jnp.float32),
        "b1": 0.05 * jax.random.normal(ks[2], (channels,), jnp.float32),
        "alpha2": 1.0 + 0.05 * jax.random.normal(ks[3], (channels,), jnp.float32),
        "w2": 0.1 * jax.random.normal(ks[4], (channels, channels), jnp.float32),
        "b2": 0.05 * jax.random.normal(ks[5], (channels,), jnp.float32),
        # beta ~ N(0, 0.1) as in the PyTorch __init__
        "beta": 0.1 * jax.random.normal(ks[6], (1,), jnp.float32),
    }


if __name__ == "__main__":
    # (B, C, L, dilation, forced_time_tile) -- chosen to exercise: multi-tile with ragged
    # last tile + 2nd-to-last halo zeroing, a single-tile sequence, and C % 8 != 0.
    configs = [
        (2, 16, 150, 3, 48),    # pad=9, padr=16, lt=48, nt=4, l_rem=6 (< padr)
        (1, 20, 50, 1, None),   # pad=3, padr=8, lt=48 (auto), nt=2, l_rem=2
        (1, 16, 64, 2, None),   # pad=6, padr=8, single tile (nt=1)
    ]
    key = jax.random.PRNGKey(0)

    for idx, (B, C, L, dilation, tile) in enumerate(configs):
        key, kx, kp = jax.random.split(key, 3)
        x_ncl = jax.random.normal(kx, (B, C, L), jnp.float32)
        params = init_params(kp, C)
        x_blc = jnp.transpose(x_ncl, (0, 2, 1))                 # channels-last kernel input
        y_ref = jnp.transpose(reference_forward(x_ncl, params, dilation=dilation), (0, 2, 1))

        # strict-precision path (f32 operands): validates tiling, halo zeroing, ragged tails,
        # and the residual mix.
        y32 = temporal_res_block(x_blc, params, dilation=dilation,
                                 time_tile=tile, compute_dtype=jnp.float32)
        y32 = jax.block_until_ready(y32)
        assert y32.shape == (B, L, C)
        assert jnp.allclose(y32, y_ref, atol=1e-3, rtol=1e-3), \
            (idx, float(jnp.max(jnp.abs(y32 - y_ref))))

        if idx == 0:
            # default performance path: bf16 MXU operands (f32 accumulation), auto tile size,
            # bf16 snake on v6e/v7x.
            ybf = temporal_res_block(x_blc, params, dilation=dilation)
            ybf = jax.block_until_ready(ybf)
            assert ybf.shape == (B, L, C)
            assert jnp.allclose(ybf, y_ref, atol=3e-2, rtol=3e-2), \
                float(jnp.max(jnp.abs(ybf - y_ref)))

    print("KERNEL_OK")
</pallas_src>

<mosaic_0001>
module attributes {stable_mosaic.version = 11 : i64} {
  func.func @_kernel(%arg0: i32, %arg1: i32, %arg2: memref<1x16x16xf32, #tpu.memory_space<vmem>>, %arg3: memref<1x48x16xf32, #tpu.memory_space<vmem>>, %arg4: memref<1x16x16xf32, #tpu.memory_space<vmem>>, %arg5: memref<8x16xf32, #tpu.memory_space<vmem>>, %arg6: memref<7x16x16xf32, #tpu.memory_space<vmem>>, %arg7: memref<16x16xf32, #tpu.memory_space<vmem>>, %arg8: memref<2xf32, #tpu.memory_space<smem>>, %arg9: memref<1x48x16xf32, #tpu.memory_space<vmem>>, %arg10: memref<80x16xf32, #tpu.memory_space<vmem>>) attributes {dimension_semantics = [#tpu.dimension_semantics<parallel>, #tpu.dimension_semantics<parallel>], iteration_bounds = array<i64: 2, 4>, scalar_prefetch = 0 : i64, scratch_operands = 1 : i64, tpu.core_type = #tpu.core_type<tc>, window_params = [{transform_indices = @transform_0, window_bounds = array<i64: 1, 16, 16>}, {transform_indices = @transform_1, window_bounds = array<i64: 1, 48, 16>}, {transform_indices = @transform_2, window_bounds = array<i64: 1, 16, 16>}, {pipeline_mode = #tpu.pipeline_mode<synchronous>, transform_indices = @transform_3, window_bounds = array<i64: 8, 16>}, {pipeline_mode = #tpu.pipeline_mode<synchronous>, transform_indices = @transform_4, window_bounds = array<i64: 7, 16, 16>}, {pipeline_mode = #tpu.pipeline_mode<synchronous>, transform_indices = @transform_5, window_bounds = array<i64: 16, 16>}, {transform_indices = @transform_6, window_bounds = array<i64: 2>}, {transform_indices = @transform_7, window_bounds = array<i64: 1, 48, 16>}]} {
    %c0 = arith.constant 0 : index
    %c0_0 = arith.constant 0 : index
    %0 = vector.load %arg5[%c0, %c0_0] : memref<8x16xf32, #tpu.memory_space<vmem>>, vector<8x16xf32>
    %1 = vector.extract_strided_slice %0 {offsets = [0, 0], sizes = [1, 16], strides = [1, 1]} : vector<8x16xf32> to vector<1x16xf32>
    %2 = vector.extract_strided_slice %0 {offsets = [1, 0], sizes = [1, 16], strides = [1, 1]} : vector<8x16xf32> to vector<1x16xf32>
    %3 = vector.extract_strided_slice %0 {offsets = [2, 0], sizes = [1, 16], strides = [1, 1]} : vector<8x16xf32> to vector<1x16xf32>
    %4 = vector.extract_strided_slice %0 {offsets = [3, 0], sizes = [1, 16], strides = [1, 1]} : vector<8x16xf32> to vector<1x16xf32>
    %5 = vector.extract_strided_slice %0 {offsets = [4, 0], sizes = [1, 16], strides = [1, 1]} : vector<8x16xf32> to vector<1x16xf32>
    %6 = vector.extract_strided_slice %0 {offsets = [5, 0], sizes = [1, 16], strides = [1, 1]} : vector<8x16xf32> to vector<1x16xf32>
    %c0_1 = arith.constant 0 : index
    %c0_2 = arith.constant 0 : index
    %c0_3 = arith.constant 0 : index
    %7 = vector.load %arg3[%c0_1, %c0_2, %c0_3] : memref<1x48x16xf32, #tpu.memory_space<vmem>>, vector<1x48x16xf32>
    %8 = vector.shape_cast %7 : vector<1x48x16xf32> to vector<48x16xf32>
    %9 = vector.broadcast %1 : vector<1x16xf32> to vector<48x16xf32>
    %10 = arith.mulf %9, %8 : vector<48x16xf32>
    %11 = math.sin %10 : vector<48x16xf32>
    %12 = arith.mulf %11, %11 : vector<48x16xf32>
    %13 = vector.broadcast %2 : vector<1x16xf32> to vector<48x16xf32>
    %14 = arith.mulf %13, %12 : vector<48x16xf32>
    %15 = arith.addf %8, %14 : vector<48x16xf32>
    %c16 = arith.constant 16 : index
    %c0_4 = arith.constant 0 : index
    %16 = vector.load %arg10[%c16, %c0_4] : memref<80x16xf32, #tpu.memory_space<vmem>>, vector<48x16xf32>
    tpu.vector_store %arg10[%c16, %c0_4], %15 {strides = array<i32>} : memref<80x16xf32, #tpu.memory_space<vmem>>, vector<48x16xf32>,
    %c0_5 = arith.constant 0 : index
    %c0_6 = arith.constant 0 : index
    %c0_7 = arith.constant 0 : index
    %17 = vector.load %arg2[%c0_5, %c0_6, %c0_7] : memref<1x16x16xf32, #tpu.memory_space<vmem>>, vector<1x16x16xf32>
    %18 = vector.shape_cast %17 : vector<1x16x16xf32> to vector<16x16xf32>
    %19 = vector.broadcast %1 : vector<1x16xf32> to vector<16x16xf32>
    %20 = arith.mulf %19, %18 : vector<16x16xf32>
    %21 = math.sin %20 : vector<16x16xf32>
    %22 = arith.mulf %21, %21 : vector<16x16xf32>
    %23 = vector.broadcast %2 : vector<1x16xf32> to vector<16x16xf32>
    %24 = arith.mulf %23, %22 : vector<16x16xf32>
    %25 = arith.addf %18, %24 : vector<16x16xf32>
    %c0_8 = arith.constant 0 : index
    %c0_9 = arith.constant 0 : index
    %26 = vector.load %arg10[%c0_8, %c0_9] : memref<80x16xf32, #tpu.memory_space<vmem>>, vector<16x16xf32>
    tpu.vector_store %arg10[%c0_8, %c0_9], %25 {strides = array<i32>} : memref<80x16xf32, #tpu.memory_space<vmem>>, vector<16x16xf32>,
    %c0_10 = arith.constant 0 : index
    %c0_11 = arith.constant 0 : index
    %c0_12 = arith.constant 0 : index
    %27 = vector.load %arg4[%c0_10, %c0_11, %c0_12] : memref<1x16x16xf32, #tpu.memory_space<vmem>>, vector<1x16x16xf32>
    %28 = vector.shape_cast %27 : vector<1x16x16xf32> to vector<16x16xf32>
    %29 = vector.broadcast %1 : vector<1x16xf32> to vector<16x16xf32>
    %30 = arith.mulf %29, %28 : vector<16x16xf32>
    %31 = math.sin %30 : vector<16x16xf32>
    %32 = arith.mulf %31, %31 : vector<16x16xf32>
    %33 = vector.broadcast %2 : vector<1x16xf32> to vector<16x16xf32>
    %34 = arith.mulf %33, %32 : vector<16x16xf32>
    %35 = arith.addf %28, %34 : vector<16x16xf32>
    %c64 = arith.constant 64 : index
    %c0_13 = arith.constant 0 : index
    %36 = vector.load %arg10[%c64, %c0_13] : memref<80x16xf32, #tpu.memory_space<vmem>>, vector<16x16xf32>
    tpu.vector_store %arg10[%c64, %c0_13], %35 {strides = array<i32>} : memref<80x16xf32, #tpu.memory_space<vmem>>, vector<16x16xf32>,
    %c0_i32 = arith.constant 0 : i32
    %37 = arith.cmpi eq, %arg1, %c0_i32 : i32
    %38 = arith.extui %37 : i1 to i32
    %c0_i32_14 = arith.constant 0 : i32
    %39 = arith.cmpi ne, %38, %c0_i32_14 : i32
    scf.if %39 {
      %cst_59 = arith.constant 0.000000e+00 : f32
      %108 = vector.broadcast %cst_59 : f32 to vector<16x16xf32>
      %c0_60 = arith.constant 0 : index
      %c0_61 = arith.constant 0 : index
      %109 = vector.load %arg10[%c0_60, %c0_61] : memref<80x16xf32, #tpu.memory_space<vmem>>, vector<16x16xf32>
      tpu.vector_store %arg10[%c0_60, %c0_61], %108 {strides = array<i32>} : memref<80x16xf32, #tpu.memory_space<vmem>>, vector<16x16xf32>,
    } else {
    }
    %c3_i32 = arith.constant 3 : i32
    %40 = arith.cmpi eq, %arg1, %c3_i32 : i32
    %41 = arith.extui %40 : i1 to i32
    %c0_i32_15 = arith.constant 0 : i32
    %42 = arith.cmpi ne, %41, %c0_i32_15 : i32
    scf.if %42 {
      %cst_59 = arith.constant 0.000000e+00 : f32
      %108 = vector.broadcast %cst_59 : f32 to vector<16x16xf32>
      %c64_60 = arith.constant 64 : index
      %c0_61 = arith.constant 0 : index
      %109 = vector.load %arg10[%c64_60, %c0_61] : memref<80x16xf32, #tpu.memory_space<vmem>>, vector<16x16xf32>
      tpu.vector_store %arg10[%c64_60, %c0_61], %108 {strides = array<i32>} : memref<80x16xf32, #tpu.memory_space<vmem>>, vector<16x16xf32>,
    } else {
    }
    %c3_i32_16 = arith.constant 3 : i32
    %43 = arith.cmpi eq, %arg1, %c3_i32_16 : i32
    %44 = arith.extui %43 : i1 to i32
    %c0_i32_17 = arith.constant 0 : i32
    %45 = arith.cmpi ne, %44, %c0_i32_17 : i32
    scf.if %45 {
      %cst_59 = arith.constant 0.000000e+00 : f32
      %108 = vector.broadcast %cst_59 : f32 to vector<42x16xf32>
      %c22_60 = arith.constant 22 : index
      %c0_61 = arith.constant 0 : index
      %109 = vector.load %arg10[%c22_60, %c0_61] : memref<80x16xf32, #tpu.memory_space<vmem>>, vector<42x16xf32>
      tpu.vector_store %arg10[%c22_60, %c0_61], %108 {strides = array<i32>} : memref<80x16xf32, #tpu.memory_space<vmem>>, vector<42x16xf32>,
    } else {
    }
    %c2_i32 = arith.constant 2 : i32
    %46 = arith.cmpi eq, %arg1, %c2_i32 : i32
    %47 = arith.extui %46 : i1 to i32
    %c0_i32_18 = arith.constant 0 : i32
    %48 = arith.cmpi ne, %47, %c0_i32_18 : i32
    scf.if %48 {
      %cst_59 = arith.constant 0.000000e+00 : f32
      %108 = vector.broadcast %cst_59 : f32 to vector<10x16xf32>
      %c70 = arith.constant 70 : index
      %c0_60 = arith.constant 0 : index
      %109 = vector.load %arg10[%c70, %c0_60] : memref<80x16xf32, #tpu.memory_space<vmem>>, vector<10x16xf32>
      tpu.vector_store %arg10[%c70, %c0_60], %108 {strides = array<i32>} : memref<80x16xf32, #tpu.memory_space<vmem>>, vector<10x16xf32>,
    } else {
    }
    %c7 = arith.constant 7 : index
    %c0_19 = arith.constant 0 : index
    %49 = vector.load %arg10[%c7, %c0_19] : memref<80x16xf32, #tpu.memory_space<vmem>>, vector<48x16xf32>
    %c0_20 = arith.constant 0 : index
    %c0_21 = arith.constant 0 : index
    %c0_22 = arith.constant 0 : index
    %50 = vector.load %arg6[%c0_20, %c0_21, %c0_22] : memref<7x16x16xf32, #tpu.memory_space<vmem>>, vector<1x16x16xf32>
    %51 = vector.shape_cast %50 : vector<1x16x16xf32> to vector<16x16xf32>
    %cst = arith.constant dense<0.000000e+00> : vector<48x16xf32>
    %52 = tpu.matmul %49, %51, %cst {dimension_numbers = #tpu.dot_dimension_numbers<[1], [0], [0], [1], [0, 0, 1, 1], [], []>} : vector<48x16xf32>, vector<16x16xf32>, vector<48x16xf32> -> vector<48x16xf32>
    %c10 = arith.constant 10 : index
    %c0_23 = arith.constant 0 : index
    %53 = vector.load %arg10[%c10, %c0_23] : memref<80x16xf32, #tpu.memory_space<vmem>>, vector<48x16xf32>
    %c1 = arith.constant 1 : index
    %c0_24 = arith.constant 0 : index
    %c0_25 = arith.constant 0 : index
    %54 = vector.load %arg6[%c1, %c0_24, %c0_25] : memref<7x16x16xf32, #tpu.memory_space<vmem>>, vector<1x16x16xf32>
    %55 = vector.shape_cast %54 : vector<1x16x16xf32> to vector<16x16xf32>
    %cst_26 = arith.constant dense<0.000000e+00> : vector<48x16xf32>
    %56 = tpu.matmul %53, %55, %cst_26 {dimension_numbers = #tpu.dot_dimension_numbers<[1], [0], [0], [1], [0, 0, 1, 1], [], []>} : vector<48x16xf32>, vector<16x16xf32>, vector<48x16xf32> -> vector<48x16xf32>
    %57 = arith.addf %52, %56 : vector<48x16xf32>
    %c13 = arith.constant 13 : index
    %c0_27 = arith.constant 0 : index
    %58 = vector.load %arg10[%c13, %c0_27] : memref<80x16xf32, #tpu.memory_space<vmem>>, vector<48x16xf32>
    %c2 = arith.constant 2 : index
    %c0_28 = arith.constant 0 : index
    %c0_29 = arith.constant 0 : index
    %59 = vector.load %arg6[%c2, %c0_28, %c0_29] : memref<7x16x16xf32, #tpu.memory_space<vmem>>, vector<1x16x16xf32>
    %60 = vector.shape_cast %59 : vector<1x16x16xf32> to vector<16x16xf32>
    %cst_30 = arith.constant dense<0.000000e+00> : vector<48x16xf32>
    %61 = tpu.matmul %58, %60, %cst_30 {dimension_numbers = #tpu.dot_dimension_numbers<[1], [0], [0], [1], [0, 0, 1, 1], [], []>} : vector<48x16xf32>, vector<16x16xf32>, vector<48x16xf32> -> vector<48x16xf32>
    %62 = arith.addf %57, %61 : vector<48x16xf32>
    %c16_31 = arith.constant 16 : index
    %c0_32 = arith.constant 0 : index
    %63 = vector.load %arg10[%c16_31, %c0_32] : memref<80x16xf32, #tpu.memory_space<vmem>>, vector<48x16xf32>
    %c3 = arith.constant 3 : index
    %c0_33 = arith.constant 0 : index
    %c0_34 = arith.constant 0 : index
    %64 = vector.load %arg6[%c3, %c0_33, %c0_34] : memref<7x16x16xf32, #tpu.memory_space<vmem>>, vector<1x16x16xf32>
    %65 = vector.shape_cast %64 : vector<1x16x16xf32> to vector<16x16xf32>
    %cst_35 = arith.constant dense<0.000000e+00> : vector<48x16xf32>
    %66 = tpu.matmul %63, %65, %cst_35 {dimension_numbers = #tpu.dot_dimension_numbers<[1], [0], [0], [1], [0, 0, 1, 1], [], []>} : vector<48x16xf32>, vector<16x16xf32>, vector<48x16xf32> -> vector<48x16xf32>
    %67 = arith.addf %62, %66 : vector<48x16xf32>
    %c19 = arith.constant 19 : index
    %c0_36 = arith.constant 0 : index
    %68 = vector.load %arg10[%c19, %c0_36] : memref<80x16xf32, #tpu.memory_space<vmem>>, vector<48x16xf32>
    %c4 = arith.constant 4 : index
    %c0_37 = arith.constant 0 : index
    %c0_38 = arith.constant 0 : index
    %69 = vector.load %arg6[%c4, %c0_37, %c0_38] : memref<7x16x16xf32, #tpu.memory_space<vmem>>, vector<1x16x16xf32>
    %70 = vector.shape_cast %69 : vector<1x16x16xf32> to vector<16x16xf32>
    %cst_39 = arith.constant dense<0.000000e+00> : vector<48x16xf32>
    %71 = tpu.matmul %68, %70, %cst_39 {dimension_numbers = #tpu.dot_dimension_numbers<[1], [0], [0], [1], [0, 0, 1, 1], [], []>} : vector<48x16xf32>, vector<16x16xf32>, vector<48x16xf32> -> vector<48x16xf32>
    %72 = arith.addf %67, %71 : vector<48x16xf32>
    %c22 = arith.constant 22 : index
    %c0_40 = arith.constant 0 : index
    %73 = vector.load %arg10[%c22, %c0_40] : memref<80x16xf32, #tpu.memory_space<vmem>>, vector<48x16xf32>
    %c5 = arith.constant 5 : index
    %c0_41 = arith.constant 0 : index
    %c0_42 = arith.constant 0 : index
    %74 = vector.load %arg6[%c5, %c0_41, %c0_42] : memref<7x16x16xf32, #tpu.memory_space<vmem>>, vector<1x16x16xf32>
    %75 = vector.shape_cast %74 : vector<1x16x16xf32> to vector<16x16xf32>
    %cst_43 = arith.constant dense<0.000000e+00> : vector<48x16xf32>
    %76 = tpu.matmul %73, %75, %cst_43 {dimension_numbers = #tpu.dot_dimension_numbers<[1], [0], [0], [1], [0, 0, 1, 1], [], []>} : vector<48x16xf32>, vector<16x16xf32>, vector<48x16xf32> -> vector<48x16xf32>
    %77 = arith.addf %72, %76 : vector<48x16xf32>
    %c25 = arith.constant 25 : index
    %c0_44 = arith.constant 0 : index
    %78 = vector.load %arg10[%c25, %c0_44] : memref<80x16xf32, #tpu.memory_space<vmem>>, vector<48x16xf32>
    %c6 = arith.constant 6 : index
    %c0_45 = arith.constant 0 : index
    %c0_46 = arith.constant 0 : index
    %79 = vector.load %arg6[%c6, %c0_45, %c0_46] : memref<7x16x16xf32, #tpu.memory_space<vmem>>, vector<1x16x16xf32>
    %80 = vector.shape_cast %79 : vector<1x16x16xf32> to vector<16x16xf32>
    %cst_47 = arith.constant dense<0.000000e+00> : vector<48x16xf32>
    %81 = tpu.matmul %78, %80, %cst_47 {dimension_numbers = #tpu.dot_dimension_numbers<[1], [0], [0], [1], [0, 0, 1, 1], [], []>} : vector<48x16xf32>, vector<16x16xf32>, vector<48x16xf32> -> vector<48x16xf32>
    %82 = arith.addf %77, %81 : vector<48x16xf32>
    %83 = vector.broadcast %3 : vector<1x16xf32> to vector<48x16xf32>
    %84 = arith.addf %82, %83 : vector<48x16xf32>
    %85 = vector.broadcast %4 : vector<1x16xf32> to vector<48x16xf32>
    %86 = arith.mulf %85, %84 : vector<48x16xf32>
    %87 = math.sin %86 : vector<48x16xf32>
    %88 = arith.mulf %87, %87 : vector<48x16xf32>
    %89 = vector.broadcast %5 : vector<1x16xf32> to vector<48x16xf32>
    %90 = arith.mulf %89, %88 : vector<48x16xf32>
    %91 = arith.addf %84, %90 : vector<48x16xf32>
    %c0_48 = arith.constant 0 : index
    %c0_49 = arith.constant 0 : index
    %92 = vector.load %arg7[%c0_48, %c0_49] : memref<16x16xf32, #tpu.memory_space<vmem>>, vector<16x16xf32>
    %cst_50 = arith.constant dense<0.000000e+00> : vector<48x16xf32>
    %93 = tpu.matmul %91, %92, %cst_50 {dimension_numbers = #tpu.dot_dimension_numbers<[1], [0], [0], [1], [0, 0, 1, 1], [], []>} : vector<48x16xf32>, vector<16x16xf32>, vector<48x16xf32> -> vector<48x16xf32>
    %94 = vector.broadcast %6 : vector<1x16xf32> to vector<48x16xf32>
    %95 = arith.addf %93, %94 : vector<48x16xf32>
    %c0_51 = arith.constant 0 : index
    %96 = memref.load %arg8[%c0_51] : memref<2xf32, #tpu.memory_space<smem>>
    %c1_52 = arith.constant 1 : index
    %97 = memref.load %arg8[%c1_52] : memref<2xf32, #tpu.memory_space<smem>>
    %c0_53 = arith.constant 0 : index
    %c0_54 = arith.constant 0 : index
    %c0_55 = arith.constant 0 : index
    %98 = vector.load %arg3[%c0_53, %c0_54, %c0_55] : memref<1x48x16xf32, #tpu.memory_space<vmem>>, vector<1x48x16xf32>
    %99 = vector.shape_cast %98 : vector<1x48x16xf32> to vector<48x16xf32>
    %100 = vector.broadcast %96 : f32 to vector<48x16xf32>
    %101 = arith.mulf %100, %99 : vector<48x16xf32>
    %102 = vector.broadcast %97 : f32 to vector<48x16xf32>
    %103 = arith.mulf %102, %95 : vector<48x16xf32>
    %104 = arith.addf %101, %103 : vector<48x16xf32>
    %c0_56 = arith.constant 0 : index
    %c0_57 = arith.constant 0 : index
    %c0_58 = arith.constant 0 : index
    %105 = vector.load %arg9[%c0_56, %c0_57, %c0_58] : memref<1x48x16xf32, #tpu.memory_space<vmem>>, vector<1x48x16xf32>
    %106 = vector.shape_cast %105 : vector<1x48x16xf32> to vector<48x16xf32>
    %107 = vector.shape_cast %104 : vector<48x16xf32> to vector<1x48x16xf32>
    tpu.vector_store %arg9[%c0_56, %c0_57, %c0_58], %107 {strides = array<i32>} : memref<1x48x16xf32, #tpu.memory_space<vmem>>, vector<1x48x16xf32>,
    return
  }
  func.func @transform_0(%arg0: i32, %arg1: i32) -> (i32, i32, i32) {
    %c3_i32 = arith.constant 3 : i32
    %0 = arith.muli %arg1, %c3_i32 : i32
    %c1_i32 = arith.constant 1 : i32
    %1 = arith.subi %0, %c1_i32 : i32
    %c0_i32 = arith.constant 0 : i32
    %2 = arith.maxsi %1, %c0_i32 : i32
    %c0_i32_0 = arith.constant 0 : i32
    %c0_i32_1 = arith.constant 0 : i32
    return %arg0, %2, %c0_i32_0 : i32, i32, i32
  }
  func.func @transform_1(%arg0: i32, %arg1: i32) -> (i32, i32, i32) {
    %c0_i32 = arith.constant 0 : i32
    %c0_i32_0 = arith.constant 0 : i32
    return %arg0, %arg1, %c0_i32 : i32, i32, i32
  }
  func.func @transform_2(%arg0: i32, %arg1: i32) -> (i32, i32, i32) {
    %c1_i32 = arith.constant 1 : i32
    %0 = arith.addi %arg1, %c1_i32 : i32
    %c3_i32 = arith.constant 3 : i32
    %1 = arith.muli %0, %c3_i32 : i32
    %c9_i32 = arith.constant 9 : i32
    %2 = arith.minsi %1, %c9_i32 : i32
    %c0_i32 = arith.constant 0 : i32
    %c0_i32_0 = arith.constant 0 : i32
    return %arg0, %2, %c0_i32 : i32, i32, i32
  }
  func.func @transform_3(%arg0: i32, %arg1: i32) -> (i32, i32) {
    %c0_i32 = arith.constant 0 : i32
    %c0_i32_0 = arith.constant 0 : i32
    %c0_i32_1 = arith.constant 0 : i32
    return %c0_i32, %c0_i32_0 : i32, i32
  }
  func.func @transform_4(%arg0: i32, %arg1: i32) -> (i32, i32, i32) {
    %c0_i32 = arith.constant 0 : i32
    %c0_i32_0 = arith.constant 0 : i32
    %c0_i32_1 = arith.constant 0 : i32
    %c0_i32_2 = arith.constant 0 : i32
    return %c0_i32, %c0_i32_0, %c0_i32_1 : i32, i32, i32
  }
  func.func @transform_5(%arg0: i32, %arg1: i32) -> (i32, i32) {
    %c0_i32 = arith.constant 0 : i32
    %c0_i32_0 = arith.constant 0 : i32
    %c0_i32_1 = arith.constant 0 : i32
    return %c0_i32, %c0_i32_0 : i32, i32
  }
  func.func @transform_6(%arg0: i32, %arg1: i32) -> i32 {
    %c0_i32 = arith.constant 0 : i32
    %c0_i32_0 = arith.constant 0 : i32
    return %c0_i32 : i32
  }
  func.func @transform_7(%arg0: i32, %arg1: i32) -> (i32, i32, i32) {
    %c0_i32 = arith.constant 0 : i32
    %c0_i32_0 = arith.constant 0 : i32
    return %arg0, %arg1, %c0_i32 : i32, i32, i32
  }
}

</mosaic_0001>

<bundles_post_ra>
// kernel: tpu_custom_call.1
= control target key start
LH: loop header
LB: loop body
LE: loop exit
PB: predicated region body
PF: predicated region fallthrough
CT: control target
= control target key end

     0   :  { %s6207_s0 = inlined_call_operand.vmem [shape: f32[2,150,16], index: 0, kind: input, shape index: {}]   ;;  %s6208_s1 = inlined_call_operand.vmem [shape: f32[2,150,16], index: 1, kind: input, shape index: {}]   ;;  %s6209_s2 = inlined_call_operand.vmem [shape: f32[2,150,16], index: 2, kind: input, shape index: {}]   ;;  %s6210_s3 = inlined_call_operand.vmem [shape: f32[8,16], index: 3, kind: input, shape index: {}]   ;;  %s6211_s4 = inlined_call_operand.vmem [shape: f32[7,16,16], index: 4, kind: input, shape index: {}]   ;;  %s6212_s5 = inlined_call_operand.vmem [shape: f32[16,16], index: 5, kind: input, shape index: {}]   ;;  %s6213_s6 = inlined_call_operand.vmem [shape: f32[2], index: 6, kind: input, shape index: {}]   ;;  %s6214_s7 = inlined_call_operand.vmem [shape: f32[2,150,16], index: 7, kind: output, shape index: {}]  }
   0x1   :  { %6215 = sst [smem:[#allocation7_spill]] %s6207_s0 }
   0x2   :  { %12 = vsyncpa [#allocation4], 0  ;;  %s4447_s24 = smov 0   ;;  %s4449_s25 = smov 0  }
   0x3   :  { %s4451_s26 = smov 0   ;;  %s4453_s27 = smov 0  }
   0x4   :  { %s4455_s28 = smov 0   ;;  %s4457_s29 = smov 0  }
   0x5   :  { %s4459_s30 = smov 0  }
   0x6 LB: > { %s3656_s8 = sadd.s32 4294967295, %s4363_s30   ;;  %s27_s9 = sadd.s32 1, %s4355_s28  ;;  %s4363_s30 = sphi %s4459_s30, %s18_s30   ;;  %s4359_s29 = sphi %s4457_s29, %s6256_s29   ;;  %s4355_s28 = sphi %s4455_s28, %s6255_s28   ;;  %s4351_s27 = sphi %s4453_s27, %s6254_s27   ;;  %s4347_s26 = sphi %s4451_s26, %s6253_s26   ;;  %s4343_s25 = sphi %s4449_s25, %s6252_s25   ;;  %s4339_s24 = sphi %s4447_s24, %s6251_s24  }
   0x7   : > { %p28_p0 = scmp.ge.s32.totalorder %s27_s9, 4  ;;  %s30_s10 = sadd.s32 1, %s4359_s29 }
   0x8   : > { %s223_s11 = sadd.s32 1, %s4343_s25  ;;  %p233_p1 = scmp.ne.s32.totalorder %s4343_s25, %s4339_s24 }
   0x9   : > { %s6258_s9 = smov (%p28_p0, %s27_s9), 0  ;;  %s6260_s10 = smov (!%p28_p0, %s30_s10), %s4359_s29 }
   0xa   : > { %s219_s12 = ssub.s32 %s4355_s28, %s6258_s9  ;;  %p234_p2 = scmp.eq.s32.totalorder %s3656_s8, 7 }
   0xb   : > { %p32_p3 = scmp.ge.s32.totalorder %s6260_s10, 2  ;;  %p3660_p4 = scmp.ge.s32.totalorder %s4363_s30, 1 }
   0xc   : > { %p4494_p5 = por %p234_p2, %p233_p1  ;;  %p247_p6 = scmp.lt.s32.totalorder %s4363_s30, 9 }
   0xd   : > { %s6262_s10 = smov (%p32_p3, %s6260_s10), 0  ;;  %p4507_p8 = scmp.eq.s32.totalorder %s3656_s8, 0 }
   0xe   : > { %p4501_p7 = pnand %p3660_p4, %p247_p6  ;;  %s218_s15 = ssub.s32 %s4359_s29, %s6262_s10 }
   0xf   : > { %s220_s17 = sor.u32 %s219_s12, %s218_s15  ;;  %s269_s20 = sshll.u32 %s6213_s6, 4  ;;  %s270_s20 = int_to_ptr.vmem [resolvable:$true] %s269_s20 }
  0x10   : > { %p4050_p9 = pneg %p4501_p7  ;;  %p221_p10 = scmp.eq.s32.totalorder %s220_s17, 0 }
  0x11   : > { %s4258_s22 = scalar_lea.vmem %s270_s20, 16  ;;  %p4266_p2 = scmp.lt.s32.totalorder %s270_s20, %s270_s20 }
  0x12   : > { %p4051_p11 = pnand %p4507_p8, %p4050_p9  ;;  %p4259_p12 = scmp.ne.s32.totalorder %s270_s20, %s4258_s22 }
  0x13   : > { %s4519_s21 = scalar_select %p221_p10, %s4343_s25, %s223_s11  }
  0x14   : > { %p4260_p13 = pneg %p4051_p11  ;;  %p4267_p3 = scmp.lt.s32.totalorder %s4258_s22, %s4258_s22 }
  0x16   : > { %p4261_p0 = pnand %p4260_p13, %p4259_p12  ;;  %p4268_p4 = por %p4267_p3, %p4266_p2 }
  0x18   : > { %p4262_p1 = pneg %p4261_p0 }
  0x1a   : > { %p4269_p6 = pnand %p4268_p4, %p4262_p1 }
  0x1c   : > { %4272 = shalt.err (!%p4269_p6)
}
  0x1d   : > { %s4397_s23 = smov [#allocation3]   ;;  %361 = sbr.rel (%p4501_p7) target bundleno = 1066 (0x42a), region = 48 }
  0x1e   : > { %4053 = dma.vmem_to_smem (!%p4051_p11), %s270_s20, 16, %s4397_s23, [#allocation4]  }
  0x22   : > { %4334 = dma.done.wait (%p4507_p8), [#allocation4], 16  }
  0x23   : > { %4336 = vsyncadd (%p4507_p8), [#allocation4], 4294967280 }
  0x24   : > { %367 = sfence }
  0x25   : > { %s432_s8 = sand.u32 1, %s4339_s24   ;;  %v517_v0 = vlaneseq  ;;  %p444_p9 = scmp.lt.s32.totalorder %s4351_s27, 1  ;;  %v4544_v3 = vld [vmem:[%s6210_s3] sm:$0xff]  ;;  %v4398_v38 = vmov 683565275  }
  0x26   : > { %s4528_s11 = smul.u32 48, %s432_s8  ;;  %v4399_v40 = vmov 2475754826   ;;  %v4400_v42 = vmov 2131351028   ;;  %s6228_s0 = sld [smem:[#allocation7_spill]] }
  0x27   : > { %s4532_s12 = smul.u32 6, %s4347_s26  ;;  %v4534_v1 = vshrl.u32 %v517_v0, 7  ;;  %v4401_v44 = vmov 2102212464   ;;  %v4402_v46 = vmov 920167782  }
  0x28   : > { %s445_s14 = scalar_select %p444_p9, %s4351_s27, 1  ;;  %v4403_v54 = vmov 1326507024  }
  0x29   : > { %p468_p7 = scmp.lt.s32.totalorder %s4532_s12, 18  ;;  %v519_v2 = vsub.s32 0, %v4534_v1  ;;  %s435_s8 = smul.u32 3, %s4347_s26 }
  0x2a   : > { %s4538_s15 = smul.u32 19, %s445_s14  ;;  %p3711_p13 = scmp.ne.s32.totalorder %s4347_s26, 0 }
  0x2b   : > { %s469_s24 = scalar_select %p468_p7, %s4532_s12, 18  ;;  %v4549_v4 = vrot.slane %v4544_v3, %v519_v2 }
  0x2c   : > { %s4868_s14 = sadd.s32 4294967295, %s435_s8  ;;  %s479_s8 = sadd.s32 1, %s4347_s26 }
  0x2d   : > { %s471_s18 = sadd.s32 %s4538_s15, %s469_s24  ;;  %p437_p8 = scmp.gt.s32.totalorder %s4868_s14, 0 }
  0x2e   : > { %s3668_s19 = sshll.u32 %s471_s18, 3 }
  0x2f   : > { %s4554_s23 = scalar_lea.vmem %s6208_s1, %s3668_s19  ;;  %s6264_s14 = smov (!%p437_p8, %s4868_s14), 0 }
  0x30   : > { %v4557_v5 = vld [vmem:[%s4554_s23] sm:$0xff]  ;;  %v512_v6 = vld [vmem:[%s4554_s23 + $0x8] sm:$0xff]  ;;  %v513_v7 = vld [vmem:[%s4554_s23 + $0x10] sm:$0xff]  ;;  %s3666_s16 = sshll.u32 %s6264_s14, 1  ;;  %s5111_s14 = smul.u32 3, %s479_s8 }
  0x31   : > { %v4563_v8 = vmul.f32 %v4549_v4, %v4557_v5  ;;  %v4566_v9 = vmul.f32 %v4549_v4, %v512_v6  ;;  %v4569_v10 = vmul.f32 %v4549_v4, %v513_v7  ;;  %p4954_p10 = scmp.lt.s32.totalorder %s3666_s16, 18 }
  0x32   : > { %p481_p11 = scmp.lt.s32.totalorder %s5111_s14, 9 }
  0x33   : > { %v527_v11 = vand.u32 2147483647, %v4563_v8  ;;  %v530_v12 = vand.u32 2139095040, %v4563_v8  ;;  %v631_v13 = vand.u32 2147483647, %v4566_v9  ;;  %v634_v14 = vand.u32 2139095040, %v4566_v9 }
  0x34   : > { %v738_v20 = vand.u32 2139095040, %v4569_v10  ;;  %v735_v32 = vand.u32 2147483647, %v4569_v10  ;;  %vm529_vm13 = vcmp.lt.s32.totalorder %v4563_v8, 0  ;;  %s6266_s16 = smov (!%p4954_p10, %s3666_s16), 18  ;;  %s6268_s14 = smov (!%p481_p11, %s5111_s14), 9 }
  0x35   : > { %v531_v15 = vshrl.u32 %v530_v12, 23  ;;  %v534_v16 = vand.u32 8388607, %v527_v11  ;;  %v635_v17 = vshrl.u32 %v634_v14, 23  ;;  %v638_v18 = vand.u32 8388607, %v631_v13  ;;  %s449_s24 = sadd.s32 %s4538_s15, %s6266_s16 }
  0x36   : > { %v739_v23 = vshrl.u32 %v738_v20, 23  ;;  %s3667_s18 = sshll.u32 %s449_s24, 3  ;;  %s3669_s16 = sshll.u32 %s6268_s14, 1 }
  0x37   : > { %v3671_v19 = vadd.s32 4294967169, %v531_v15  ;;  %v3675_v21 = vadd.s32 4294967169, %v635_v17  ;;  %v535_v24 = vor.u32 8388608, %v534_v16  ;;  %v639_v25 = vor.u32 8388608, %v638_v18  ;;  %s5017_s22 = scalar_lea.vmem %s6228_s0, %s3667_s18  ;;  %p5179_p12 = scmp.lt.s32.totalorder %s3669_s16, 18 }
  0x38   : > { %v3679_v27 = vadd.s32 4294967169, %v739_v23 }
  0x39   : > { %v537_v22 = vadd.s32 1, %v3671_v19  ;;  %v641_v26 = vadd.s32 1, %v3675_v21  ;;  %v4581_v33 = vshll.u32 %v535_v24, 8  ;;  %v4583_v35 = vshll.u32 %v639_v25, 8  ;;  %s6270_s16 = smov (!%p5179_p12, %s3669_s16), 18 }
  0x3a   : > { %v4585_v36 = vadd.s32 1, %v3679_v27  ;;  %s493_s24 = sadd.s32 %s4538_s15, %s6270_s16 }
  0x3b   : > { %vm538_vm0 = vcmp.gt.s32.totalorder %v537_v22, 0  ;;  %vm642_vm1 = vcmp.gt.s32.totalorder %v641_v26, 0  ;;  %s3670_s15 = sshll.u32 %s493_s24, 3 }
  0x3c   : > { %v539_v28 = vsel %vm538_vm0, %v537_v22, 0  ;;  %v643_v31 = vsel %vm642_vm1, %v641_v26, 0  ;;  %vm746_vm11 = vcmp.gt.s32.totalorder %v4585_v36, 0  ;;  %s5246_s20 = scalar_lea.vmem %s6209_s2, %s3670_s15 }
  0x3d   : > { %v540_v29 = vshrl.u32 %v539_v28, 5  ;;  %v541_v30 = vand.u32 31, %v539_v28  ;;  %v645_v34 = vand.u32 31, %v643_v31  ;;  %v4592_v48 = vshrl.u32 %v643_v31, 5 }
  0x3f   : > { %v542_v37 = vsub.s32 32, %v541_v30  ;;  %v544_v39 = vshll.u32 %v4398_v38, %v541_v30  ;;  %v547_v41 = vshll.u32 %v4399_v40, %v541_v30  ;;  %v550_v43 = vshll.u32 %v4400_v42, %v541_v30 }
  0x40   : > { %v553_v45 = vshll.u32 %v4401_v44, %v541_v30  ;;  %v556_v47 = vshll.u32 %v4402_v46, %v541_v30  ;;  %vm559_vm2 = vcmp.lt.s32.totalorder %v540_v29, 1  ;;  %vm560_vm3 = vcmp.lt.s32.totalorder %v540_v29, 2 }
  0x41   : > { %v543_v49 = vshrl.u32 %v4398_v38, %v542_v37  ;;  %v545_v50 = vshrl.u32 %v4399_v40, %v542_v37  ;;  %v548_v51 = vshrl.u32 %v4400_v42, %v542_v37  ;;  %v551_v52 = vshrl.u32 %v4401_v44, %v542_v37 }
  0x42   : > { %v554_v53 = vshrl.u32 %v4402_v46, %v542_v37  ;;  %v557_v55 = vshrl.u32 %v4403_v54, %v542_v37  ;;  %vm562_vm4 = vcmp.lt.s32.totalorder %v540_v29, 4  ;;  %v646_v59 = vsub.s32 32, %v645_v34 }
  0x43   : > { %v546_v56 = vor.u32 %v545_v50, %v544_v39  ;;  %v549_v57 = vor.u32 %v548_v51, %v547_v41  ;;  %v552_v58 = vor.u32 %v551_v52, %v550_v43  ;;  %vm561_vm5 = vcmp.lt.s32.totalorder %v540_v29, 3 }
  0x44   : > { %v555_v60 = vor.u32 %v554_v53, %v553_v45  ;;  %v558_v61 = vor.u32 %v557_v55, %v556_v47  ;;  %v648_v62 = vshll.u32 %v4398_v38, %v645_v34  ;;  %v651_v15 = vshll.u32 %v4399_v40, %v645_v34 }
  0x45   : > { %v563_v63 = vsel %vm559_vm2, %v543_v49, %v546_v56  ;;  %v564_v0 = vsel %vm562_vm4, %v552_v58, 2102212464  ;;  %v567_v2 = vsel %vm559_vm2, %v546_v56, %v549_v57  ;;  %v571_v6 = vsel %vm559_vm2, %v549_v57, %v552_v58 }
  0x46   : > { %v565_v7 = vsel %vm561_vm5, %v549_v57, %v564_v0  ;;  %v568_v12 = vsel %vm562_vm4, %v555_v60, 920167782  ;;  %v572_v14 = vsel %vm562_vm4, %v558_v61, 1326507024  ;;  %v647_v18 = vshrl.u32 %v4398_v38, %v646_v59  ;;  %v4641_v0 = vld [vmem:[%s4554_s23 + $0x18] sm:$0xff] }
  0x47   : > { %v569_v16 = vsel %vm561_vm5, %v552_v58, %v568_v12  ;;  %v573_v17 = vsel %vm561_vm5, %v555_v60, %v572_v14  ;;  %v649_v19 = vshrl.u32 %v4399_v40, %v646_v59  ;;  %v566_v20 = vsel %vm560_vm3, %v563_v63, %v565_v7 }
  0x48   : > { %v570_v21 = vsel %vm560_vm3, %v567_v2, %v569_v16  ;;  %v574_v22 = vsel %vm560_vm3, %v571_v6, %v573_v17  ;;  %v652_v23 = vshrl.u32 %v4400_v42, %v646_v59  ;;  %v654_v31 = vshll.u32 %v4400_v42, %v645_v34 }
  0x49   : > { %v4612_v24 = vmul.u32.u64.low %v4581_v33, %v574_v22  ;;  %v4613_v25 = vmul.u32.u64.high %v4581_v33, %v574_v22, %v4612_v24  ;;  %v4616_v26 = vmul.u32.u64.low %v4581_v33, %v570_v21  ;;  %v4617_v27 = vmul.u32.u64.high %v4581_v33, %v570_v21, %v4616_v26 }
  0x4a   : > { %v650_v28 = vor.u32 %v649_v19, %v648_v62  ;;  %v653_v30 = vor.u32 %v652_v23, %v651_v15  ;;  %v655_v37 = vshrl.u32 %v4401_v44, %v646_v59  ;;  %v657_v29 = vshll.u32 %v4401_v44, %v645_v34 }
  0x4b   : > { %v658_v39 = vshrl.u32 %v4402_v46, %v646_v59  ;;  %v660_v41 = vshll.u32 %v4402_v46, %v645_v34  ;;  %v661_v43 = vshrl.u32 %v4403_v54, %v646_v59  ;;  %v582_v45 = vmul.u32 %v4581_v33, %v566_v20 }
  0x4c   : > { %v656_v47 = vor.u32 %v655_v37, %v654_v31  ;;  %vm663_vm6 = vcmp.lt.s32.totalorder %v4592_v48, 1  ;;  %vm664_vm7 = vcmp.lt.s32.totalorder %v4592_v48, 2  ;;  %vm584_vm8 = vc.u32 %v4613_v25, %v4616_v26 }
  0x4d   : > { %v585_v49 = vadd.s32 1, %v4617_v27  ;;  %v659_v50 = vor.u32 %v658_v39, %v657_v29  ;;  %vm665_vm9 = vcmp.lt.s32.totalorder %v4592_v48, 3  ;;  %v662_v51 = vor.u32 %v661_v43, %v660_v41 }
  0x4e   : > { %vm666_vm10 = vcmp.lt.s32.totalorder %v4592_v48, 4  ;;  %v667_v34 = vsel %vm663_vm6, %v647_v18, %v650_v28  ;;  %v671_v52 = vsel %vm663_vm6, %v650_v28, %v653_v30  ;;  %v675_v56 = vsel %vm663_vm6, %v653_v30, %v656_v47 }
  0x4f   : > { %v586_v33 = vsel %vm584_vm8, %v585_v49, %v4617_v27  ;;  %v668_v53 = vsel %vm666_vm10, %v656_v47, 2102212464  ;;  %v672_v55 = vsel %vm666_vm10, %v659_v50, 920167782  ;;  %v676_v60 = vsel %vm666_vm10, %v662_v51, 1326507024 }
  0x50   : > { %v587_v57 = vadd.s32 %v586_v33, %v582_v45  ;;  %v669_v58 = vsel %vm665_vm9, %v653_v30, %v668_v53  ;;  %v673_v59 = vsel %vm665_vm9, %v656_v47, %v672_v55  ;;  %v677_v63 = vsel %vm665_vm9, %v659_v50, %v676_v60 }
  0x51   : > { %v670_v61 = vsel %vm664_vm7, %v667_v34, %v669_v58  ;;  %v674_v62 = vsel %vm664_vm7, %v671_v52, %v673_v59  ;;  %v678_v6 = vsel %vm664_vm7, %v675_v56, %v677_v63  ;;  %v747_v16 = vsel %vm746_vm11, %v4585_v36, 0 }
  0x52   : > { %v588_v2 = vadd.s32 536870912, %v587_v57  ;;  %v4646_v7 = vmul.u32.u64.low %v4583_v35, %v674_v62  ;;  %v4647_v12 = vmul.u32.u64.high %v4583_v35, %v674_v62, %v4646_v7  ;;  %v749_v18 = vand.u32 31, %v747_v16 }
  0x53   : > { %v4651_v14 = vmul.u32.u64.low %v4583_v35, %v678_v6  ;;  %v4652_v15 = vmul.u32.u64.high %v4583_v35, %v678_v6, %v4651_v14  ;;  %v4659_v19 = vmul.f32 %v4549_v4, %v4641_v0  ;;  %v686_v48 = vmul.u32 %v4583_v35, %v670_v61  ;;  %v515_v35 = vld [vmem:[%s4554_s23 + $0x20] sm:$0xff] }
  0x54   : > { %v4655_v17 = vshrl.u32 %v588_v2, 30  ;;  %v742_v20 = vand.u32 8388607, %v735_v32  ;;  %v689_v22 = vadd.s32 1, %v4647_v12  ;;  %v750_v36 = vsub.s32 32, %v749_v18 }
  0x55   : > { %vm688_vm12 = vc.u32 %v4652_v15, %v4646_v7  ;;  %v842_v30 = vand.u32 2139095040, %v4659_v19  ;;  %v4674_v37 = vshrl.u32 %v747_v16, 5  ;;  %v752_v29 = vshll.u32 %v4398_v38, %v749_v18 }
  0x56   : > { %v590_v21 = vshll.u32 %v4655_v17, 30  ;;  %v690_v24 = vsel %vm688_vm12, %v689_v22, %v4647_v12  ;;  %v743_v28 = vor.u32 8388608, %v742_v20  ;;  %v755_v39 = vshll.u32 %v4399_v40, %v749_v18 }
  0x57   : > { %v691_v27 = vadd.s32 %v690_v24, %v686_v48  ;;  %v753_v43 = vshrl.u32 %v4399_v40, %v750_v36  ;;  %v756_v45 = vshrl.u32 %v4400_v42, %v750_v36  ;;  %v758_v47 = vshll.u32 %v4400_v42, %v749_v18 }
  0x58   : > { %v4668_v23 = vsub.s32 %v587_v57, %v590_v21  ;;  %v759_v50 = vshrl.u32 %v4401_v44, %v750_v36  ;;  %v761_v51 = vshll.u32 %v4401_v44, %v749_v18  ;;  %v762_v34 = vshrl.u32 %v4402_v46, %v750_v36 }
  0x59   : > { %v692_v41 = vadd.s32 536870912, %v691_v27  ;;  %v4686_v52 = vmul.f32 %v4549_v4, %v515_v35  ;;  %v764_v53 = vshll.u32 %v4402_v46, %v749_v18  ;;  %v765_v55 = vshrl.u32 %v4403_v54, %v750_v36 }
  0x5a   : > { %v593_v31 = vsub.s32 0, %v4668_v23  ;;  %v583_v56 = vadd.s32 %v4616_v26, %v4613_v25  ;;  %v4695_v58 = vshll.u32 %v743_v28, 8  ;;  %v843_v59 = vshrl.u32 %v842_v30, 23 }
  0x5b   : > { %v4688_v33 = vshrl.u32 %v692_v41, 30  ;;  %v751_v61 = vshrl.u32 %v4398_v38, %v750_v36  ;;  %v754_v62 = vor.u32 %v753_v43, %v752_v29  ;;  %v757_v63 = vor.u32 %v756_v45, %v755_v39 }
  0x5c   : > { %v3672_v49 = vmin.u32 %v593_v31, %v4668_v23  ;;  %v760_v6 = vor.u32 %v759_v50, %v758_v47  ;;  %v763_v12 = vor.u32 %v762_v34, %v761_v51  ;;  %vm767_vm14 = vcmp.lt.s32.totalorder %v4674_v37, 1 }
  0x5d   : > { %v694_v60 = vshll.u32 %v4688_v33, 30  ;;  %v613_v14 = vsub.s32 4, %v4655_v17  ;;  %v766_v25 = vor.u32 %v765_v55, %v764_v53  ;;  %vm770_vm15 = vcmp.lt.s32.totalorder %v4674_v37, 4 }
  0x5e   : > { %v595_v57 = vclz %v3672_v49  ;;  %vm768_vm1 = vcmp.lt.s32.totalorder %v4674_v37, 2  ;;  %vm769_vm2 = vcmp.lt.s32.totalorder %v4674_v37, 3  ;;  %v772_v26 = vsel %vm770_vm15, %v760_v6, 2102212464 }
  0x5f   : > { %v4701_v16 = vsub.s32 %v691_v27, %v694_v60  ;;  %vm4710_vm3 = vcmp.le.f32.partialorder %v527_v11, 0.7853982  ;;  %v771_v21 = vsel %vm767_vm14, %v751_v61, %v754_v62  ;;  %v775_v22 = vsel %vm767_vm14, %v754_v62, %v757_v63 }
  0x60   : > { %v3673_v2 = vadd.s32 4294967294, %v595_v57  ;;  %v776_v28 = vsel %vm770_vm15, %v763_v12, 920167782  ;;  %v773_v30 = vsel %vm769_vm2, %v757_v63, %v772_v26  ;;  %v779_v31 = vsel %vm767_vm14, %v757_v63, %v760_v6 }
  0x61   : > { %v697_v20 = vsub.s32 0, %v4701_v16  ;;  %v777_v35 = vsel %vm769_vm2, %v760_v6, %v776_v28  ;;  %v780_v41 = vsel %vm770_vm15, %v766_v25, 1326507024  ;;  %v614_v43 = vsel %vm529_vm13, %v613_v14, %v4655_v17 }
  0x62   : > { %vm3674_vm0 = vcmp.lt.s32.totalorder %v3673_v2, 0  ;;  %v839_v47 = vand.u32 2147483647, %v4659_v19  ;;  %v3683_v49 = vadd.s32 4294967169, %v843_v59  ;;  %v774_v34 = vsel %vm768_vm1, %v771_v21, %v773_v30 }
  0x63   : > { %v598_v48 = vsel %vm3674_vm0, 0, %v3673_v2  ;;  %v3676_v11 = vmin.u32 %v697_v20, %v4701_v16  ;;  %v781_v53 = vsel %vm769_vm2, %v763_v12, %v780_v41  ;;  %vm633_vm4 = vcmp.lt.s32.totalorder %v4566_v9, 0 }
  0x64   : > { %v599_v36 = vsub.s32 32, %v598_v48  ;;  %v600_v24 = vshll.u32 %v4668_v23, %v598_v48  ;;  %v603_v27 = vsub.s32 4294967266, %v598_v48  ;;  %v778_v23 = vsel %vm768_vm1, %v775_v22, %v777_v35 }
  0x65   : > { %v699_v45 = vclz %v3676_v11  ;;  %v4744_v57 = vmul.u32.u64.low %v4695_v58, %v778_v23  ;;  %v4745_v60 = vmul.u32.u64.high %v4695_v58, %v778_v23, %v4744_v57  ;;  %v687_v63 = vadd.s32 %v4646_v7, %v4652_v15 }
  0x66   : > { %v601_v29 = vshrl.u32 %v583_v56, %v599_v36  ;;  %v604_v39 = vadd.s32 127, %v603_v27  ;;  %v782_v56 = vsel %vm768_vm1, %v779_v31, %v781_v53  ;;  %v846_v37 = vand.u32 8388607, %v839_v47 }
  0x67   : > { %v3677_v55 = vadd.s32 4294967294, %v699_v45  ;;  %v4750_v59 = vmul.u32.u64.low %v4695_v58, %v782_v56  ;;  %v4751_v62 = vmul.u32.u64.high %v4695_v58, %v782_v56, %v4750_v59  ;;  %v849_v2 = vadd.s32 1, %v3683_v49 }
  0x68   : > { %v602_v50 = vor.u32 %v601_v29, %v600_v24  ;;  %v605_v51 = vshll.u32 %v604_v39, 23  ;;  %v616_v12 = vsel %vm4710_vm3, 0, %v614_v43  ;;  %v790_v25 = vmul.u32 %v4695_v58, %v774_v34 }
  0x69   : > { %vm3678_vm5 = vcmp.lt.s32.totalorder %v3677_v55, 0  ;;  %v793_v21 = vadd.s32 1, %v4745_v60  ;;  %v717_v7 = vsub.s32 4, %v4688_v33  ;;  %vm792_vm6 = vc.u32 %v4751_v62, %v4744_v57 }
  0x6a   : > { %v606_v17 = vor.u32 4788187, %v605_v51  ;;  %v609_v61 = vcvt.s32.f32 %v602_v50  ;;  %v702_v14 = vsel %vm3678_vm5, 0, %v3677_v55  ;;  %vm850_vm7 = vcmp.gt.s32.totalorder %v849_v2, 0 }
  0x6b   : > { %v703_v26 = vsub.s32 32, %v702_v14  ;;  %v704_v48 = vshll.u32 %v4701_v16, %v702_v14  ;;  %v707_v20 = vsub.s32 4294967266, %v702_v14  ;;  %v794_v24 = vsel %vm792_vm6, %v793_v21, %v4745_v60 }
  0x6c   : > { %v607_v6 = vand.u32 2147483647, %v606_v17  ;;  %v851_v27 = vsel %vm850_vm7, %v849_v2, 0  ;;  %vm4768_vm8 = vcmp.le.f32.partialorder %v631_v13, 0.7853982  ;;  %v795_v16 = vadd.s32 %v794_v24, %v790_v25 }
  0x6d   : > { %v705_v15 = vshrl.u32 %v687_v63, %v703_v26  ;;  %v708_v36 = vadd.s32 127, %v707_v20  ;;  %v853_v11 = vand.u32 31, %v851_v27  ;;  %v847_v31 = vor.u32 8388608, %v846_v37 }
  0x6e   : > { %v610_v22 = vmul.f32 %v609_v61, %v607_v6  ;;  %v943_v29 = vand.u32 2147483647, %v4686_v52  ;;  %v620_v23 = vadd.s32 3, %v616_v12  ;;  %v796_v41 = vadd.s32 536870912, %v795_v16 }
  0x6f   : > { %v706_v30 = vor.u32 %v705_v15, %v704_v48  ;;  %v709_v35 = vshll.u32 %v708_v36, 23  ;;  %v854_v43 = vsub.s32 32, %v853_v11  ;;  %v718_v49 = vsel %vm633_vm4, %v717_v7, %v4688_v33 }
  0x70   : > { %v611_v28 = vxor.u32 2147483648, %v610_v22  ;;  %v946_v50 = vand.u32 2139095040, %v4686_v52  ;;  %v797_v34 = vshrl.u32 %v796_v41, 30  ;;  %v856_v53 = vshll.u32 %v4398_v38, %v853_v11 }
  0x71   : > { %v710_v45 = vor.u32 4788187, %v709_v35  ;;  %v713_v51 = vcvt.s32.f32 %v706_v30  ;;  %v859_v55 = vshll.u32 %v4399_v40, %v853_v11  ;;  %v857_v60 = vshrl.u32 %v4399_v40, %v854_v43 }
  0x72   : > { %v612_v39 = vsel %vm529_vm13, %v611_v28, %v610_v22  ;;  %v860_v18 = vshrl.u32 %v4400_v42, %v854_v43  ;;  %v4786_v17 = vand.u32 3, %v620_v23  ;;  %v798_v61 = vshll.u32 %v797_v34, 30 }
  0x73   : > { %v615_v13 = vsel %vm4710_vm3, %v4563_v8, %v612_v39  ;;  %v711_v56 = vand.u32 2147483647, %v710_v45  ;;  %v852_v59 = vshrl.u32 %v851_v27, 5  ;;  %v862_v33 = vshll.u32 %v4400_v42, %v853_v11 }
  0x74   : > { %4187 = vcosq.f32 %v615_v13  ;;  %v863_v63 = vshrl.u32 %v4401_v44, %v854_v43  ;;  %v865_v37 = vshll.u32 %v4401_v44, %v853_v11  ;;  %v866_v2 = vshrl.u32 %v4402_v46, %v854_v43 }
  0x75   : > { %4189 = vsinq.f32 %v615_v13  ;;  %v714_v6 = vmul.f32 %v713_v51, %v711_v56  ;;  %v720_v12 = vsel %vm4768_vm8, 0, %v718_v49  ;;  %vm737_vm9 = vcmp.lt.s32.totalorder %v4569_v10, 0 }
  0x76   : > { %v4795_v14 = vsub.s32 %v795_v16, %v798_v61  ;;  %v868_v25 = vshll.u32 %v4402_v46, %v853_v11  ;;  %v858_v26 = vor.u32 %v857_v60, %v856_v53  ;;  %v861_v48 = vor.u32 %v860_v18, %v859_v55 }
  0x77   : > { %v867_v20 = vor.u32 %v866_v2, %v865_v37  ;;  %v869_v21 = vshrl.u32 %v4403_v54, %v854_v43  ;;  %vm871_vm10 = vcmp.lt.s32.totalorder %v852_v59, 1  ;;  %v4800_v7 = vshll.u32 %v847_v31, 8 }
  0x78   : > { %v801_v22 = vsub.s32 0, %v4795_v14  ;;  %v947_v15 = vshrl.u32 %v946_v50, 23  ;;  %v821_v36 = vsub.s32 4, %v797_v34  ;;  %v855_v24 = vshrl.u32 %v4398_v38, %v854_v43 }
  0x79   : > { %v864_v27 = vor.u32 %v863_v63, %v862_v33  ;;  %vm874_vm11 = vcmp.lt.s32.totalorder %v852_v59, 4  ;;  %v715_v28 = vxor.u32 2147483648, %v714_v6  ;;  %vm4805_vm12 = vcmp.le.f32.partialorder %v735_v32, 0.7853982 }
  0x7a   : > { %v3680_v11 = vmin.u32 %v801_v22, %v4795_v14  ;;  %v870_v30 = vor.u32 %v869_v21, %v868_v25  ;;  %vm873_vm13 = vcmp.lt.s32.totalorder %v852_v59, 3  ;;  %vm872_vm14 = vcmp.lt.s32.totalorder %v852_v59, 2 }
  0x7b   : > { %v876_v35 = vsel %vm874_vm11, %v864_v27, 2102212464  ;;  %v879_v31 = vsel %vm871_vm10, %v858_v26, %v861_v48  ;;  %v880_v39 = vsel %vm874_vm11, %v867_v20, 920167782  ;;  %v724_v23 = vadd.s32 3, %v720_v12 }
  0x7c   : > { %v791_v41 = vadd.s32 %v4744_v57, %v4751_v62  ;;  %v803_v43 = vclz %v3680_v11  ;;  %v3687_v32 = vadd.s32 4294967169, %v947_v15  ;;  %v875_v13 = vsel %vm871_vm10, %v855_v24, %v858_v26  ;;  %v4849_v15 = vld [vmem:[%s4554_s23 + $0x28] sm:$0xff] }
  0x7d   : > { %v877_v45 = vsel %vm873_vm13, %v861_v48, %v876_v35  ;;  %v881_v49 = vsel %vm873_vm13, %v864_v27, %v880_v39  ;;  %v883_v50 = vsel %vm871_vm10, %v861_v48, %v864_v27  ;;  %vm626_vm15 = vcmp.eq.s32.totalorder %v4786_v17, 2 }
  0x7e   : > { %v716_v51 = vsel %vm633_vm4, %v715_v28, %v714_v6  ;;  %v3681_v53 = vadd.s32 4294967294, %v803_v43  ;;  %v882_v55 = vsel %vm872_vm14, %v879_v31, %v881_v49  ;;  %v884_v57 = vsel %vm874_vm11, %v870_v30, 1326507024 }
  0x7f   : > { %v822_v62 = vsel %vm737_vm9, %v821_v36, %v797_v34  ;;  %v885_v56 = vsel %vm873_vm13, %v867_v20, %v884_v57  ;;  %v4828_v60 = vmul.u32.u64.low %v4800_v7, %v882_v55  ;;  %v4829_v18 = vmul.u32.u64.high %v4800_v7, %v882_v55, %v4828_v60 }
  0x80   : > { %vm3682_vm0 = vcmp.lt.s32.totalorder %v3681_v53, 0  ;;  %v878_v33 = vsel %vm872_vm14, %v875_v13, %v877_v45  ;;  %v886_v63 = vsel %vm872_vm14, %v883_v50, %v885_v56  ;;  %v953_v37 = vadd.s32 1, %v3687_v32 }
  0x81   : > { %v4188_v61 = vpop.eup %4187  ;;  %v719_v34 = vsel %vm4768_vm8, %v4566_v9, %v716_v51  ;;  %v806_v6 = vsel %vm3682_vm0, 0, %v3681_v53  ;;  %v4838_v12 = vmul.u32.u64.low %v4800_v7, %v886_v63  ;;  %v4839_v25 = vmul.u32.u64.high %v4800_v7, %v886_v63, %v4838_v12 }
  0x82   : > { %v4190_v2 = vpop.eup %4189  ;;  %v807_v26 = vsub.s32 32, %v806_v6  ;;  %v808_v48 = vshll.u32 %v4795_v14, %v806_v6  ;;  %v811_v20 = vsub.s32 4294967266, %v806_v6  ;;  %v950_v21 = vand.u32 8388607, %v943_v29 }
  0x83   : > { %v824_v59 = vsel %vm4805_vm12, 0, %v822_v62  ;;  %v894_v22 = vmul.u32 %v4800_v7, %v878_v33  ;;  %v897_v58 = vadd.s32 1, %v4829_v18  ;;  %vm954_vm1 = vcmp.gt.s32.totalorder %v953_v37, 0 }
  0x84   : > { %4191 = vcosq.f32 %v719_v34  ;;  %v809_v36 = vshrl.u32 %v791_v41, %v807_v26  ;;  %v812_v24 = vadd.s32 127, %v811_v20  ;;  %v955_v27 = vsel %vm954_vm1, %v953_v37, 0 }
  0x85   : > { %v624_v14 = vxor.u32 2147483648, %v4190_v2  ;;  %v627_v28 = vxor.u32 2147483648, %v4188_v61  ;;  %4193 = vsinq.f32 %v719_v34  ;;  %vm896_vm2 = vc.u32 %v4839_v25, %v4828_v60 }
  0x86   : > { %v810_v11 = vor.u32 %v809_v36, %v808_v48  ;;  %v813_v30 = vshll.u32 %v812_v24, 23  ;;  %v898_v7 = vsel %vm896_vm2, %v897_v58, %v4829_v18  ;;  %v957_v35 = vand.u32 31, %v955_v27 }
  0x87   : > { %v4857_v31 = vmul.f32 %v4549_v4, %v4849_v15  ;;  %vm622_vm3 = vcmp.lt.s32.totalorder %v4786_v17, 2  ;;  %vm623_vm4 = vcmp.eq.s32.totalorder %v4786_v17, 0  ;;  %v899_v39 = vadd.s32 %v898_v7, %v894_v22 }
  0x88   : > { %v4861_v41 = vand.u32 3, %v724_v23  ;;  %v814_v43 = vor.u32 4788187, %v813_v30  ;;  %v817_v32 = vcvt.s32.f32 %v810_v11  ;;  %v958_v13 = vsub.s32 32, %v957_v35 }
  0x89   : > { %v628_v45 = vsel %vm626_vm15, %v627_v28, %v4190_v2  ;;  %v828_v49 = vadd.s32 3, %v824_v59  ;;  %v900_v50 = vadd.s32 536870912, %v899_v39  ;;  %v951_v51 = vor.u32 8388608, %v950_v21 }
  0x8a   : > { %vm619_vm5 = vweird.f32 %v4563_v8  ;;  %v625_v53 = vsel %vm623_vm4, %v4188_v61, %v624_v14  ;;  %v815_v55 = vand.u32 2147483647, %v814_v43  ;;  %v960_v57 = vshll.u32 %v4398_v38, %v957_v35 }
  0x8b   : > { %v961_v62 = vshrl.u32 %v4399_v40, %v958_v13  ;;  %v4870_v23 = vshrl.u32 %v900_v50, 30  ;;  %v4872_v56 = vshrl.u32 %v955_v27, 5  ;;  %v963_v18 = vshll.u32 %v4399_v40, %v957_v35 }
  0x8c   : > { %v964_v33 = vshrl.u32 %v4400_v42, %v958_v13  ;;  %v818_v63 = vmul.f32 %v817_v32, %v815_v55  ;;  %v966_v37 = vshll.u32 %v4400_v42, %v957_v35  ;;  %v967_v61 = vshrl.u32 %v4401_v44, %v958_v13 }
  0x8d   : > { %v969_v2 = vshll.u32 %v4401_v44, %v957_v35  ;;  %v629_v34 = vsel %vm622_vm3, %v625_v53, %v628_v45  ;;  %v4881_v6 = vand.u32 3, %v828_v49  ;;  %v902_v12 = vshll.u32 %v4870_v23, 30 }
  0x8e   : > { %v4884_v26 = vshll.u32 %v951_v51, 8  ;;  %vm727_vm6 = vcmp.eq.s32.totalorder %v4861_v41, 0  ;;  %vm730_vm7 = vcmp.eq.s32.totalorder %v4861_v41, 2  ;;  %v819_v48 = vxor.u32 2147483648, %v818_v63 }
  0x8f   : > { %v959_v20 = vshrl.u32 %v4398_v38, %v958_v13  ;;  %v962_v21 = vor.u32 %v961_v62, %v960_v57  ;;  %v970_v59 = vshrl.u32 %v4402_v46, %v958_v13  ;;  %v4891_v22 = vsub.s32 %v899_v39, %v902_v12 }
  0x90   : > { %v965_v17 = vor.u32 %v964_v33, %v963_v18  ;;  %v972_v58 = vshll.u32 %v4402_v46, %v957_v35  ;;  %v973_v36 = vshrl.u32 %v4403_v54, %v958_v13  ;;  %v820_v24 = vsel %vm737_vm9, %v819_v48, %v818_v63 }
  0x91   : > { %v968_v27 = vor.u32 %v967_v61, %v966_v37  ;;  %v971_v14 = vor.u32 %v970_v59, %v969_v2  ;;  %vm975_vm8 = vcmp.lt.s32.totalorder %v4872_v56, 1  ;;  %v4192_v28 = vpop.eup %4191  ;;  %vm726_vm10 = vcmp.lt.s32.totalorder %v4861_v41, 2 }
  0x92   : > { %v823_v11 = vsel %vm4805_vm12, %v4569_v10, %v820_v24  ;;  %vm841_vm11 = vcmp.lt.s32.totalorder %v4659_v19, 0  ;;  %v905_v30 = vsub.s32 0, %v4891_v22  ;;  %v974_v7 = vor.u32 %v973_v36, %v972_v58  ;;  %v4194_v35 = vpop.eup %4193 }
  0x93   : > { %vm978_vm13 = vcmp.lt.s32.totalorder %v4872_v56, 4  ;;  %4195 = vcosq.f32 %v823_v11  ;;  %vm976_vm9 = vcmp.lt.s32.totalorder %v4872_v56, 2  ;;  %vm977_vm14 = vcmp.lt.s32.totalorder %v4872_v56, 3 }
  0x94   : > { %v980_v39 = vsel %vm978_vm13, %v968_v27, 2102212464  ;;  %4197 = vsinq.f32 %v823_v11  ;;  %v3684_v16 = vmin.u32 %v905_v30, %v4891_v22  ;;  %v979_v43 = vsel %vm975_vm8, %v959_v20, %v962_v21 }
  0x95   : > { %v983_v32 = vsel %vm975_vm8, %v962_v21, %v965_v17  ;;  %vm4919_vm12 = vcmp.le.f32.partialorder %v839_v47, 0.7853982  ;;  %v981_v45 = vsel %vm977_vm14, %v965_v17, %v980_v39  ;;  %v984_v49 = vsel %vm978_vm13, %v971_v14, 920167782 }
  0x96   : > { %v987_v50 = vsel %vm975_vm8, %v965_v17, %v968_v27  ;;  %v988_v51 = vsel %vm978_vm13, %v974_v7, 1326507024  ;;  %v630_v53 = vsel %vm619_vm5, nan, %v629_v34  ;;  %v728_v55 = vxor.u32 2147483648, %v4194_v35 }
  0x97   : > { %v731_v57 = vxor.u32 2147483648, %v4192_v28  ;;  %v907_v62 = vclz %v3684_v16  ;;  %v895_v47 = vadd.s32 %v4828_v60, %v4839_v25  ;;  %v925_v18 = vsub.s32 4, %v4870_v23 }
  0x98   : > { %v985_v33 = vsel %vm977_vm14, %v968_v27, %v984_v49  ;;  %v989_v63 = vsel %vm977_vm14, %v971_v14, %v988_v51  ;;  %vm723_vm15 = vweird.f32 %v4566_v9  ;;  %v982_v37 = vsel %vm976_vm9, %v979_v43, %v981_v45 }
  0x99   : > { %v3685_v8 = vadd.s32 4294967294, %v907_v62  ;;  %v986_v61 = vsel %vm976_vm9, %v983_v32, %v985_v33  ;;  %v990_v60 = vsel %vm976_vm9, %v987_v50, %v989_v63  ;;  %v729_v48 = vsel %vm727_vm6, %v4192_v28, %v728_v55 }
  0x9a   : > { %v4945_v25 = vmul.u32.u64.low %v4884_v26, %v990_v60  ;;  %v4946_v2 = vmul.u32.u64.high %v4884_v26, %v990_v60, %v4945_v25  ;;  %v4949_v34 = vmul.u32.u64.low %v4884_v26, %v986_v61  ;;  %v4950_v12 = vmul.u32.u64.high %v4884_v26, %v986_v61, %v4949_v34 }
  0x9b   : > { %v732_v56 = vsel %vm730_vm7, %v731_v57, %v4194_v35  ;;  %vm3686_vm0 = vcmp.lt.s32.totalorder %v3685_v8, 0  ;;  %v1050_v20 = vand.u32 2139095040, %v4857_v31  ;;  %v926_v59 = vsel %vm841_vm11, %v925_v18, %v4870_v23 }
  0x9c   : > { %v910_v21 = vsel %vm3686_vm0, 0, %v3685_v8  ;;  %v998_v17 = vmul.u32 %v4884_v26, %v982_v37  ;;  %v1047_v58 = vand.u32 2147483647, %v4857_v31  ;;  %v733_v28 = vsel %vm726_vm10, %v729_v48, %v732_v56 }
  0x9d   : > { %v911_v36 = vsub.s32 32, %v910_v21  ;;  %v912_v24 = vshll.u32 %v4891_v22, %v910_v21  ;;  %v915_v27 = vsub.s32 4294967266, %v910_v21  ;;  %v1051_v14 = vshrl.u32 %v1050_v20, 23 }
  0x9e   : > { %vm831_vm1 = vcmp.eq.s32.totalorder %v4881_v6, 0  ;;  %vm1000_vm2 = vc.u32 %v4946_v2, %v4949_v34  ;;  %v1001_v11 = vadd.s32 1, %v4950_v12  ;;  %vm830_vm3 = vcmp.lt.s32.totalorder %v4881_v6, 2 }
  0x9f   : > { %v913_v23 = vshrl.u32 %v895_v47, %v911_v36  ;;  %v916_v26 = vadd.s32 127, %v915_v27  ;;  %v928_v22 = vsel %vm4919_vm12, 0, %v926_v59  ;;  %v3691_v41 = vadd.s32 4294967169, %v1051_v14 }
  0xa0   : > { %v1002_v30 = vsel %vm1000_vm2, %v1001_v11, %v4950_v12  ;;  %v1054_v7 = vand.u32 8388607, %v1047_v58  ;;  %v1151_v35 = vmul.f32 %v630_v53, %v630_v53  ;;  %v1159_v39 = vsub.s32 1, %v4534_v1  ;;  %v4196_v16 = vpop.eup %4195 }
  0xa1   : > { %v914_v43 = vor.u32 %v913_v23, %v912_v24  ;;  %v917_v32 = vshll.u32 %v916_v26, 23  ;;  %v1003_v45 = vadd.s32 %v1002_v30, %v998_v17  ;;  %v1057_v49 = vadd.s32 1, %v3691_v41  ;;  %v4198_v50 = vpop.eup %4197 }
  0xa2   : > { %vm834_vm4 = vcmp.eq.s32.totalorder %v4881_v6, 2  ;;  %v835_v51 = vxor.u32 2147483648, %v4196_v16  ;;  %v932_v55 = vadd.s32 3, %v928_v22  ;;  %v4989_v57 = vrot.slane %v4544_v3, %v1159_v39 }
  0xa3   : > { %v832_v62 = vxor.u32 2147483648, %v4198_v50  ;;  %v918_v47 = vor.u32 4788187, %v917_v32  ;;  %v921_v18 = vcvt.s32.f32 %v914_v43  ;;  %v1004_v53 = vadd.s32 536870912, %v1003_v45  ;;  %v5038_v43 = vld [vmem:[%s5017_s22] sm:$0xff] }
  0xa4   : > { %v734_v33 = vsel %vm723_vm15, nan, %v733_v28  ;;  %vm827_vm5 = vweird.f32 %v4569_v10  ;;  %v1055_v63 = vor.u32 8388608, %v1054_v7  ;;  %vm1058_vm6 = vcmp.gt.s32.totalorder %v1057_v49, 0 }
  0xa5   : > { %v1161_v8 = vmul.f32 %v4989_v57, %v1151_v35  ;;  %v919_v37 = vand.u32 2147483647, %v918_v47  ;;  %v4997_v61 = vshrl.u32 %v1004_v53, 30  ;;  %v1059_v60 = vsel %vm1058_vm6, %v1057_v49, 0 }
  0xa6   : > { %vm1173_vm7 = vcmask 130048   ;;  %v4999_v25 = vand.u32 3, %v932_v55  ;;  %v5002_v12 = vadd.s32 %v4949_v34, %v4946_v2  ;;  %v1061_v48 = vand.u32 31, %v1059_v60 }
  0xa7   : > { %v1167_v9 = vadd.f32 %v1161_v8, %v4557_v5  ;;  %v833_v56 = vsel %vm831_vm1, %v4196_v16, %v832_v62  ;;  %v836_v20 = vsel %vm834_vm4, %v835_v51, %v4198_v50  ;;  %v922_v21 = vmul.f32 %v921_v18, %v919_v37 }
  0xa8   : > { %v1006_v59 = vshll.u32 %v4997_v61, 30  ;;  %v1062_v17 = vsub.s32 32, %v1061_v48  ;;  %v1064_v36 = vshll.u32 %v4398_v38, %v1061_v48  ;;  %v5011_v24 = vshll.u32 %v1055_v63, 8 }
  0xa9   : > { %v1152_v27 = vmul.f32 %v734_v33, %v734_v33  ;;  %1174 = vst.msk [vmem:[#allocation2 + $0x10] sm:$0xff] %vm1173_vm7, %v1167_v9  ;;  %v923_v5 = vxor.u32 2147483648, %v922_v21  ;;  %v1067_v34 = vshll.u32 %v4399_v40, %v1061_v48  ;;  %v1070_v14 = vshll.u32 %v4400_v42, %v1061_v48 }
  0xaa   : > { %v5019_v2 = vsub.s32 %v1003_v45, %v1006_v59  ;;  %v837_v28 = vsel %vm830_vm3, %v833_v56, %v836_v20  ;;  %v1065_v11 = vshrl.u32 %v4399_v40, %v1062_v17  ;;  %v1068_v23 = vshrl.u32 %v4400_v42, %v1062_v17 }
  0xab   : > { %v1073_v26 = vshll.u32 %v4401_v44, %v1061_v48  ;;  %v924_v22 = vsel %vm841_vm11, %v923_v5, %v922_v21  ;;  %v1060_v30 = vshrl.u32 %v1059_v60, 5  ;;  %v1071_v7 = vshrl.u32 %v4401_v44, %v1062_v17 }
  0xac   : > { %v1009_v41 = vsub.s32 0, %v5019_v2  ;;  %v927_v35 = vsel %vm4919_vm12, %v4659_v19, %v924_v22  ;;  %v1063_v6 = vshrl.u32 %v4398_v38, %v1062_v17  ;;  %v1066_v39 = vor.u32 %v1065_v11, %v1064_v36 }
  0xad   : > { %v1074_v16 = vshrl.u32 %v4402_v46, %v1062_v17  ;;  %4199 = vcosq.f32 %v927_v35  ;;  %v1069_v45 = vor.u32 %v1068_v23, %v1067_v34  ;;  %v1072_v49 = vor.u32 %v1071_v7, %v1070_v14 }
  0xae   : > { %v3688_v32 = vmin.u32 %v1009_v41, %v5019_v2  ;;  %4201 = vsinq.f32 %v927_v35  ;;  %v1076_v51 = vshll.u32 %v4402_v46, %v1061_v48  ;;  %v1077_v55 = vshrl.u32 %v4403_v54, %v1062_v17 }
  0xaf   : > { %v1075_v50 = vor.u32 %v1074_v16, %v1073_v26  ;;  %v838_v13 = vsel %vm827_vm5, nan, %v837_v28  ;;  %v1162_v47 = vmul.f32 %v4989_v57, %v1152_v27  ;;  %v5048_v18 = vmul.f32 %v5038_v43, %v4549_v4  ;;  %v5058_v28 = vld [vmem:[%s5017_s22 + $0x8] sm:$0xff]  ;;  %s5498_s22 = scalar_lea.vmem [#allocation5], %s4528_s11  }
  0xb0   : > { %v1011_v62 = vclz %v3688_v32  ;;  %v1078_v53 = vor.u32 %v1077_v55, %v1076_v51  ;;  %vm1079_vm8 = vcmp.lt.s32.totalorder %v1060_v30, 1  ;;  %vm1080_vm10 = vcmp.lt.s32.totalorder %v1060_v30, 2 }
  0xb1   : > { %vm1081_vm11 = vcmp.lt.s32.totalorder %v1060_v30, 3  ;;  %vm945_vm13 = vcmp.lt.s32.totalorder %v4686_v52, 0  ;;  %vm1082_vm9 = vcmp.lt.s32.totalorder %v1060_v30, 4  ;;  %v1083_v63 = vsel %vm1079_vm8, %v1063_v6, %v1066_v39  ;;  %v4227_v6 = vld [vmem:[%s4554_s23 + $0x8] sm:$0xff] }
  0xb2   : > { %v3689_v33 = vadd.s32 4294967294, %v1011_v62  ;;  %v1087_v8 = vsel %vm1079_vm8, %v1066_v39, %v1069_v45  ;;  %v1084_v37 = vsel %vm1082_vm9, %v1072_v49, 2102212464  ;;  %v1088_v10 = vsel %vm1082_vm9, %v1075_v50, 920167782 }
  0xb3   : > { %v1091_v60 = vsel %vm1079_vm8, %v1069_v45, %v1072_v49  ;;  %v1092_v48 = vsel %vm1082_vm9, %v1078_v53, 1326507024  ;;  %v1085_v9 = vsel %vm1081_vm11, %v1069_v45, %v1084_v37  ;;  %v1089_v56 = vsel %vm1081_vm11, %v1072_v49, %v1088_v10  ;;  %v4228_v53 = vld [vmem:[%s4554_s23 + $0x10] sm:$0xff] }
  0xb4   : > { %vm3690_vm14 = vcmp.lt.s32.totalorder %v3689_v33, 0  ;;  %v1093_v20 = vsel %vm1081_vm11, %v1075_v50, %v1092_v48  ;;  %v1029_v59 = vsub.s32 4, %v4997_v61  ;;  %v1090_v17 = vsel %vm1080_vm10, %v1087_v8, %v1089_v56 }
  0xb5   : > { %v1014_v21 = vsel %vm3690_vm14, 0, %v3689_v33  ;;  %v1094_v36 = vsel %vm1080_vm10, %v1091_v60, %v1093_v20  ;;  %vm931_vm12 = vweird.f32 %v4659_v19  ;;  %v1086_v14 = vsel %vm1080_vm10, %v1083_v63, %v1085_v9 }
  0xb6   : > { %v1015_v27 = vsub.s32 32, %v1014_v21  ;;  %v1016_v5 = vshll.u32 %v5019_v2, %v1014_v21  ;;  %v1019_v34 = vsub.s32 4294967266, %v1014_v21  ;;  %v1153_v35 = vmul.f32 %v838_v13, %v838_v13 }
  0xb7   : > { %v5061_v11 = vmul.u32.u64.low %v5011_v24, %v1094_v36  ;;  %v5062_v23 = vmul.u32.u64.high %v5011_v24, %v1094_v36, %v5061_v11  ;;  %v5065_v26 = vmul.u32.u64.low %v5011_v24, %v1090_v17  ;;  %v5066_v22 = vmul.u32.u64.high %v5011_v24, %v1090_v17, %v5065_v26 }
  0xb8   : > { %v1017_v41 = vshrl.u32 %v5002_v12, %v1015_v27  ;;  %v1020_v7 = vadd.s32 127, %v1019_v34  ;;  %v1168_v2 = vadd.f32 %v4227_v6, %v1162_v47  ;;  %vm935_vm15 = vcmp.eq.s32.totalorder %v4999_v25, 0 }
  0xb9   : > { %vm938_vm0 = vcmp.eq.s32.totalorder %v4999_v25, 2  ;;  %v5075_v30 = vmul.f32 %v5058_v28, %v4549_v4  ;;  %v1187_v39 = vand.u32 2139095040, %v5048_v18  ;;  %v1102_v45 = vmul.u32 %v5011_v24, %v1086_v14 }
  0xba   : > { %v1018_v16 = vor.u32 %v1017_v41, %v1016_v5  ;;  %v1021_v32 = vshll.u32 %v1020_v7, 23  ;;  %v1163_v12 = vmul.f32 %v4989_v57, %v1153_v35  ;;  %1175 = vst.msk [vmem:[#allocation2 + $0x18] sm:$0xff] %vm1173_vm7, %v1168_v2  ;;  %v4200_v49 = vpop.eup %4199  ;;  %v1030_v50 = vsel %vm945_vm13, %v1029_v59, %v4997_v61 }
  0xbb   : > { %vm1104_vm1 = vc.u32 %v5062_v23, %v5065_v26  ;;  %v1105_v51 = vadd.s32 1, %v5066_v22  ;;  %v1184_v55 = vand.u32 2147483647, %v5048_v18  ;;  %v4202_v13 = vpop.eup %4201  ;;  %v939_v62 = vxor.u32 2147483648, %v4200_v49 }
  0xbc   : > { %v1022_v47 = vor.u32 4788187, %v1021_v32  ;;  %v1025_v24 = vcvt.s32.f32 %v1018_v16  ;;  %v1169_v33 = vadd.f32 %v4228_v53, %v1163_v12  ;;  %vm934_vm2 = vcmp.lt.s32.totalorder %v4999_v25, 2 }
  0xbd   : > { %v936_v63 = vxor.u32 2147483648, %v4202_v13  ;;  %v1106_v8 = vsel %vm1104_vm1, %v1105_v51, %v5066_v22  ;;  %v1188_v61 = vshrl.u32 %v1187_v39, 23  ;;  %v940_v37 = vsel %vm938_vm0, %v939_v62, %v4202_v13 }
  0xbe   : > { %vm5095_vm3 = vcmp.le.f32.partialorder %v943_v29, 0.7853982  ;;  %v1023_v60 = vand.u32 2147483647, %v1022_v47  ;;  %v1107_v48 = vadd.s32 %v1106_v8, %v1102_v45  ;;  %1176 = vst.msk [vmem:[#allocation2 + $0x20] sm:$0xff] %vm1173_vm7, %v1169_v33  ;;  %v1291_v36 = vand.u32 2139095040, %v5075_v30 }
  0xbf   : > { %v937_v9 = vsel %vm935_vm15, %v4200_v49, %v936_v63  ;;  %v1032_v56 = vsel %vm5095_vm3, 0, %v1030_v50  ;;  %v3695_v20 = vadd.s32 4294967169, %v1188_v61  ;;  %v1191_v21 = vand.u32 8388607, %v1184_v55 }
  0xc0   : > { %v941_v59 = vsel %vm934_vm2, %v937_v9, %v940_v37  ;;  %v1026_v29 = vmul.f32 %v1025_v24, %v1023_v60  ;;  %v1108_v17 = vadd.s32 536870912, %v1107_v48  ;;  %v1288_v11 = vand.u32 2147483647, %v5075_v30 }
  0xc1   : > { %v942_v27 = vsel %vm931_vm12, nan, %v941_v59  ;;  %v1194_v5 = vadd.s32 1, %v3695_v20  ;;  %v1036_v22 = vadd.s32 3, %v1032_v56  ;;  %v1192_v41 = vor.u32 8388608, %v1191_v21 }
  0xc2   : > { %v1027_v34 = vxor.u32 2147483648, %v1026_v29  ;;  %v1109_v25 = vshrl.u32 %v1108_v17, 30  ;;  %v1154_v14 = vmul.f32 %v942_v27, %v942_v27  ;;  %v1292_v19 = vshrl.u32 %v1291_v36, 23 }
  0xc3   : > { %vm1195_vm4 = vcmp.gt.s32.totalorder %v1194_v5, 0  ;;  %vm5121_vm5 = vcmp.le.f32.partialorder %v1047_v58, 0.7853982  ;;  %v5130_v49 = vand.u32 8388607, %v1288_v11  ;;  %v5133_v50 = vand.u32 3, %v1036_v22 }
  0xc4   : > { %v1028_v7 = vsel %vm945_vm13, %v1027_v34, %v1026_v29  ;;  %v1110_v35 = vshll.u32 %v1109_v25, 30  ;;  %v1164_v6 = vmul.f32 %v4989_v57, %v1154_v14  ;;  %v1133_v16 = vsub.s32 4, %v1109_v25 }
  0xc5   : > { %v1031_v2 = vsel %vm5095_vm3, %v4686_v52, %v1028_v7  ;;  %v1196_v32 = vsel %vm1195_vm4, %v1194_v5, 0  ;;  %vm1049_vm6 = vcmp.lt.s32.totalorder %v4857_v31, 0  ;;  %v1103_v51 = vadd.s32 %v5065_v26, %v5062_v23 }
  0xc6   : > { %4203 = vcosq.f32 %v1031_v2  ;;  %v5125_v45 = vsub.s32 %v1107_v48, %v1110_v35  ;;  %v1170_v12 = vadd.f32 %v1164_v6, %v4641_v0  ;;  %v1198_v58 = vand.u32 31, %v1196_v32 }
  0xc7   : > { %4205 = vsinq.f32 %v1031_v2  ;;  %v5140_v0 = vshll.u32 %v1192_v41, 8  ;;  %v3699_v62 = vadd.s32 4294967169, %v1292_v19  ;;  %v5144_v47 = vsel %vm1049_vm6, %v1133_v16, %v1109_v25 }
  0xc8   : > { %v1113_v13 = vsub.s32 0, %v5125_v45  ;;  %1177 = vst.msk [vmem:[#allocation2 + $0x28] sm:$0xff] %vm1173_vm7, %v1170_v12  ;;  %v1199_v24 = vsub.s32 32, %v1198_v58  ;;  %v1201_v53 = vshll.u32 %v4398_v38, %v1198_v58  ;;  %v1204_v33 = vshll.u32 %v4399_v40, %v1198_v58 }
  0xc9   : > { %v1197_v8 = vshrl.u32 %v1196_v32, 5  ;;  %v1207_v23 = vshll.u32 %v4400_v42, %v1198_v58  ;;  %v1296_v26 = vor.u32 8388608, %v5130_v49  ;;  %vm1042_vm8 = vcmp.eq.s32.totalorder %v5133_v50, 2 }
  0xca   : > { %v3692_v63 = vmin.u32 %v1113_v13, %v5125_v45  ;;  %v1202_v61 = vshrl.u32 %v4399_v40, %v1199_v24  ;;  %v1205_v37 = vshrl.u32 %v4400_v42, %v1199_v24  ;;  %v1208_v10 = vshrl.u32 %v4401_v44, %v1199_v24 }
  0xcb   : > { %v1210_v60 = vshll.u32 %v4401_v44, %v1198_v58  ;;  %vm1039_vm10 = vcmp.eq.s32.totalorder %v5133_v50, 0  ;;  %v1136_v9 = vsel %vm5121_vm5, 0, %v5144_v47  ;;  %v1200_v56 = vshrl.u32 %v4398_v38, %v1199_v24 }
  0xcc   : > { %v1115_v48 = vclz %v3692_v63  ;;  %v1213_v20 = vshll.u32 %v4402_v46, %v1198_v58  ;;  %vm1038_vm11 = vcmp.lt.s32.totalorder %v5133_v50, 2  ;;  %v1203_v21 = vor.u32 %v1202_v61, %v1201_v53 }
  0xcd   : > { %v1206_v59 = vor.u32 %v1205_v37, %v1204_v33  ;;  %v1211_v29 = vshrl.u32 %v4402_v46, %v1199_v24  ;;  %v1298_v17 = vadd.s32 1, %v3699_v62  ;;  %vm1035_vm13 = vweird.f32 %v4686_v52 }
  0xce   : > { %v3693_v36 = vadd.s32 4294967294, %v1115_v48  ;;  %v1209_v27 = vor.u32 %v1208_v10, %v1207_v23  ;;  %v1214_v5 = vshrl.u32 %v4403_v54, %v1199_v24  ;;  %vm1216_vm9 = vcmp.lt.s32.totalorder %v1197_v8, 1 }
  0xcf   : > { %v1212_v34 = vor.u32 %v1211_v29, %v1210_v60  ;;  %vm1217_vm14 = vcmp.lt.s32.totalorder %v1197_v8, 2  ;;  %vm1218_vm12 = vcmp.lt.s32.totalorder %v1197_v8, 3  ;;  %vm1219_vm15 = vcmp.lt.s32.totalorder %v1197_v8, 4 }
  0xd0   : > { %vm3694_vm0 = vcmp.lt.s32.totalorder %v3693_v36, 0  ;;  %v1215_v25 = vor.u32 %v1214_v5, %v1213_v20  ;;  %v1220_v14 = vsel %vm1216_vm9, %v1200_v56, %v1203_v21  ;;  %v1221_v22 = vsel %vm1219_vm15, %v1209_v27, 2102212464 }
  0xd1   : > { %v1118_v41 = vsel %vm3694_vm0, 0, %v3693_v36  ;;  %v1222_v7 = vsel %vm1218_vm12, %v1206_v59, %v1221_v22  ;;  %v1224_v35 = vsel %vm1216_vm9, %v1203_v21, %v1206_v59  ;;  %v1225_v6 = vsel %vm1219_vm15, %v1212_v34, 920167782 }
  0xd2   : > { %v1119_v19 = vsub.s32 32, %v1118_v41  ;;  %v1120_v2 = vshll.u32 %v5125_v45, %v1118_v41  ;;  %v1123_v16 = vsub.s32 4294967266, %v1118_v41  ;;  %v1228_v32 = vsel %vm1216_vm9, %v1206_v59, %v1209_v27 }
  0xd3   : > { %v4204_v12 = vpop.eup %4203  ;;  %v1223_v58 = vsel %vm1217_vm14, %v1220_v14, %v1222_v7  ;;  %v1226_v13 = vsel %vm1218_vm12, %v1209_v27, %v1225_v6  ;;  %v1229_v62 = vsel %vm1219_vm15, %v1215_v25, 1326507024  ;;  %vm1299_vm1 = vcmp.gt.s32.totalorder %v1298_v17, 0 }
  0xd4   : > { %v4206_v24 = vpop.eup %4205  ;;  %v1043_v53 = vxor.u32 2147483648, %v4204_v12  ;;  %v1121_v33 = vshrl.u32 %v1103_v51, %v1119_v19  ;;  %v1124_v63 = vadd.s32 127, %v1123_v16  ;;  %v1227_v23 = vsel %vm1217_vm14, %v1224_v35, %v1226_v13  ;;  %v4229_v16 = vld [vmem:[%s4554_s23 + $0x20] sm:$0xff] }
  0xd5   : > { %v1040_v45 = vxor.u32 2147483648, %v4206_v24  ;;  %v1230_v61 = vsel %vm1218_vm12, %v1212_v34, %v1229_v62  ;;  %v5191_v37 = vmul.u32.u64.low %v5140_v0, %v1227_v23  ;;  %v5192_v10 = vmul.u32.u64.high %v5140_v0, %v1227_v23, %v5191_v37 }
  0xd6   : > { %v1044_v51 = vsel %vm1042_vm8, %v1043_v53, %v4206_v24  ;;  %v1122_v60 = vor.u32 %v1121_v33, %v1120_v2  ;;  %v1125_v48 = vshll.u32 %v1124_v63, 23  ;;  %v1231_v56 = vsel %vm1217_vm14, %v1228_v32, %v1230_v61 }
  0xd7   : > { %v1041_v20 = vsel %vm1039_vm10, %v4204_v12, %v1040_v45  ;;  %v5207_v21 = vmul.u32.u64.low %v5140_v0, %v1231_v56  ;;  %v5208_v59 = vmul.u32.u64.high %v5140_v0, %v1231_v56, %v5207_v21  ;;  %v1300_v29 = vsel %vm1299_vm1, %v1298_v17, 0 }
  0xd8   : > { %v1045_v36 = vsel %vm1038_vm11, %v1041_v20, %v1044_v51  ;;  %v1126_v27 = vor.u32 4788187, %v1125_v48  ;;  %v1129_v5 = vcvt.s32.f32 %v1122_v60  ;;  %v1239_v34 = vmul.u32 %v5140_v0, %v1223_v58  ;;  %v5261_v21 = vld [vmem:[%s5246_s20] sm:$0xff] }
  0xd9   : > { %v1046_v8 = vsel %vm1035_vm13, nan, %v1045_v36  ;;  %v1242_v25 = vadd.s32 1, %v5192_v10  ;;  %v5217_v14 = vshrl.u32 %v1300_v29, 5  ;;  %v1302_v22 = vand.u32 31, %v1300_v29 }
  0xda   : > { %v1127_v41 = vand.u32 2147483647, %v1126_v27  ;;  %v1155_v7 = vmul.f32 %v1046_v8, %v1046_v8  ;;  %v5223_v50 = vshll.u32 %v1296_v26, 8  ;;  %v1140_v0 = vadd.s32 3, %v1136_v9 }
  0xdb   : > { %vm1241_vm2 = vc.u32 %v5208_v59, %v5191_v37  ;;  %v1303_v52 = vsub.s32 32, %v1302_v22  ;;  %v1305_v17 = vshll.u32 %v4398_v38, %v1302_v22  ;;  %v1308_v49 = vshll.u32 %v4399_v40, %v1302_v22 }
  0xdc   : > { %v1130_v35 = vmul.f32 %v1129_v5, %v1127_v41  ;;  %v1165_v6 = vmul.f32 %v4989_v57, %v1155_v7  ;;  %v1243_v19 = vsel %vm1241_vm2, %v1242_v25, %v5192_v10  ;;  %vm1320_vm3 = vcmp.lt.s32.totalorder %v5217_v14, 1 }
  0xdd   : > { %v1244_v26 = vadd.s32 %v1243_v19, %v1239_v34  ;;  %v1306_v2 = vshrl.u32 %v4399_v40, %v1303_v52  ;;  %v1309_v47 = vshrl.u32 %v4400_v42, %v1303_v52  ;;  %v1311_v12 = vshll.u32 %v4400_v42, %v1302_v22 }
  0xde   : > { %v1131_v9 = vxor.u32 2147483648, %v1130_v35  ;;  %v1171_v32 = vadd.f32 %v4229_v16, %v1165_v6  ;;  %v1312_v58 = vshrl.u32 %v4401_v44, %v1303_v52  ;;  %v1304_v62 = vshrl.u32 %v4398_v38, %v1303_v52 }
  0xdf   : > { %v1245_v13 = vadd.s32 536870912, %v1244_v26  ;;  %v1307_v24 = vor.u32 %v1306_v2, %v1305_v17  ;;  %v1314_v53 = vshll.u32 %v4401_v44, %v1302_v22  ;;  %v1310_v63 = vor.u32 %v1309_v47, %v1308_v49 }
  0xe0   : > { %v1132_v33 = vsel %vm1049_vm6, %v1131_v9, %v1130_v35  ;;  %1178 = vst.msk [vmem:[#allocation2 + $0x30] sm:$0xff] %vm1173_vm7, %v1171_v32  ;;  %v1315_v23 = vshrl.u32 %v4402_v46, %v1303_v52  ;;  %v1317_v45 = vshll.u32 %v4402_v46, %v1302_v22  ;;  %v1313_v51 = vor.u32 %v1312_v58, %v1311_v12  ;;  %v5299_v32 = vld [vmem:[%s5246_s20 + $0x8] sm:$0xff] }
  0xe1   : > { %v1135_v61 = vsel %vm5121_vm5, %v4857_v31, %v1132_v33  ;;  %v1246_v10 = vshrl.u32 %v1245_v13, 30  ;;  %v1318_v60 = vshrl.u32 %v4403_v54, %v1303_v52  ;;  %vm1322_vm4 = vcmp.lt.s32.totalorder %v5217_v14, 3 }
  0xe2   : > { %4207 = vcosq.f32 %v1135_v61  ;;  %v1316_v48 = vor.u32 %v1315_v23, %v1314_v53  ;;  %vm1323_vm6 = vcmp.lt.s32.totalorder %v5217_v14, 4  ;;  %vm1321_vm8 = vcmp.lt.s32.totalorder %v5217_v14, 2 }
  0xe3   : > { %4209 = vsinq.f32 %v1135_v61  ;;  %v1247_v56 = vshll.u32 %v1246_v10, 30  ;;  %v1319_v20 = vor.u32 %v1318_v60, %v1317_v45  ;;  %v1324_v39 = vsel %vm1320_vm3, %v1304_v62, %v1307_v24 }
  0xe4   : > { %v1325_v29 = vsel %vm1323_vm6, %v1313_v51, 2102212464  ;;  %v1328_v36 = vsel %vm1320_vm3, %v1307_v24, %v1310_v63  ;;  %v1329_v27 = vsel %vm1323_vm6, %v1316_v48, 920167782  ;;  %v1332_v25 = vsel %vm1320_vm3, %v1310_v63, %v1313_v51 }
  0xe5   : > { %v5267_v5 = vsub.s32 %v1244_v26, %v1247_v56  ;;  %v1326_v34 = vsel %vm1322_vm4, %v1310_v63, %v1325_v29  ;;  %v1330_v8 = vsel %vm1322_vm4, %v1313_v51, %v1329_v27  ;;  %v1333_v41 = vsel %vm1323_vm6, %v1319_v20, 1326507024 }
  0xe6   : > { %v1331_v22 = vsel %vm1321_vm8, %v1328_v36, %v1330_v8  ;;  %v5279_v7 = vmul.f32 %v5261_v21, %v4549_v4  ;;  %v1270_v17 = vsub.s32 4, %v1246_v10  ;;  %v1334_v35 = vsel %vm1322_vm4, %v1316_v48, %v1333_v41 }
  0xe7   : > { %v1250_v52 = vsub.s32 0, %v5267_v5  ;;  %v1327_v6 = vsel %vm1321_vm8, %v1324_v39, %v1326_v34  ;;  %v1335_v19 = vsel %vm1321_vm8, %v1332_v25, %v1334_v35  ;;  %v1141_v2 = vand.u32 3, %v1140_v0 }
  0xe8   : > { %v5289_v49 = vmul.u32.u64.low %v5223_v50, %v1331_v22  ;;  %v5290_v26 = vmul.u32.u64.high %v5223_v50, %v1331_v22, %v5289_v49  ;;  %v5295_v9 = vmul.u32.u64.low %v5223_v50, %v1335_v19  ;;  %v5296_v16 = vmul.u32.u64.high %v5223_v50, %v1335_v19, %v5295_v9 }
  0xe9   : > { %v3696_v47 = vmin.u32 %v1250_v52, %v5267_v5  ;;  %v1407_v12 = vand.u32 2139095040, %v5279_v7  ;;  %vm1139_vm5 = vweird.f32 %v4857_v31  ;;  %vm1186_vm10 = vcmp.lt.s32.totalorder %v5048_v18, 0 }
  0xea   : > { %v1343_v58 = vmul.u32 %v5223_v50, %v1327_v6  ;;  %vm5307_vm11 = vcmp.le.f32.partialorder %v1184_v55, 0.7853982  ;;  %v1271_v13 = vsel %vm1186_vm10, %v1270_v17, %v1246_v10  ;;  %v1346_v62 = vadd.s32 1, %v5290_v26 }
  0xeb   : > { %v1252_v14 = vclz %v3696_v47  ;;  %v1408_v24 = vshrl.u32 %v1407_v12, 23  ;;  %vm1142_vm13 = vcmp.lt.s32.totalorder %v1141_v2, 2  ;;  %vm1345_vm9 = vc.u32 %v5296_v16, %v5289_v49 }
  0xec   : > { %v5318_v50 = vmul.f32 %v5299_v32, %v4549_v4  ;;  %vm1143_vm14 = vcmp.eq.s32.totalorder %v1141_v2, 0  ;;  %vm1146_vm12 = vcmp.eq.s32.totalorder %v1141_v2, 2  ;;  %v1347_v55 = vsel %vm1345_vm9, %v1346_v62, %v5290_v26 }
  0xed   : > { %v3697_v53 = vadd.s32 4294967294, %v1252_v14  ;;  %v3703_v33 = vadd.s32 4294967169, %v1408_v24  ;;  %v1240_v23 = vadd.s32 %v5191_v37, %v5208_v59  ;;  %v1273_v45 = vsel %vm5307_vm11, 0, %v1271_v13 }
  0xee   : > { %v1348_v61 = vadd.s32 %v1347_v55, %v1343_v58  ;;  %v1404_v4 = vand.u32 2147483647, %v5279_v7  ;;  %v1277_v27 = vadd.s32 3, %v1273_v45  ;;  %v1511_v9 = vand.u32 2139095040, %v5318_v50 }
  0xef   : > { %v4208_v63 = vpop.eup %4207  ;;  %vm3698_vm15 = vcmp.lt.s32.totalorder %v3697_v53, 0  ;;  %v1414_v48 = vadd.s32 1, %v3703_v33  ;;  %vm1290_vm2 = vcmp.lt.s32.totalorder %v5075_v30, 0 }
  0xf0   : > { %v4210_v10 = vpop.eup %4209  ;;  %v1147_v51 = vxor.u32 2147483648, %v4208_v63  ;;  %v1255_v60 = vsel %vm3698_vm15, 0, %v3697_v53  ;;  %v1349_v37 = vadd.s32 536870912, %v1348_v61  ;;  %v1411_v52 = vand.u32 8388607, %v1404_v4 }
  0xf1   : > { %v1144_v56 = vxor.u32 2147483648, %v4210_v10  ;;  %v1256_v20 = vsub.s32 32, %v1255_v60  ;;  %v1257_v39 = vshll.u32 %v5267_v5, %v1255_v60  ;;  %v1260_v29 = vsub.s32 4294967266, %v1255_v60 }
  0xf2   : > { %v1148_v36 = vsel %vm1146_vm12, %v1147_v51, %v4210_v10  ;;  %vm1415_vm0 = vcmp.gt.s32.totalorder %v1414_v48, 0  ;;  %v5330_v41 = vshrl.u32 %v1349_v37, 30  ;;  %v5338_v14 = vand.u32 3, %v1277_v27 }
  0xf3   : > { %v1145_v59 = vsel %vm1143_vm14, %v4208_v63, %v1144_v56  ;;  %v1258_v34 = vshrl.u32 %v1240_v23, %v1256_v20  ;;  %v1261_v8 = vadd.s32 127, %v1260_v29  ;;  %v1416_v25 = vsel %vm1415_vm0, %v1414_v48, 0 }
  0xf4   : > { %v1149_v22 = vsel %vm1142_vm13, %v1145_v59, %v1148_v36  ;;  %v1418_v17 = vand.u32 31, %v1416_v25  ;;  %v1351_v26 = vshll.u32 %v5330_v41, 30  ;;  %v1412_v62 = vor.u32 8388608, %v1411_v52 }
  0xf5   : > { %v1150_v5 = vsel %vm1139_vm5, nan, %v1149_v22  ;;  %v1259_v35 = vor.u32 %v1258_v34, %v1257_v39  ;;  %v1262_v6 = vshll.u32 %v1261_v8, 23  ;;  %v1344_v23 = vadd.s32 %v5289_v49, %v5296_v16 }
  0xf6   : > { %v1156_v19 = vmul.f32 %v1150_v5, %v1150_v5  ;;  %v1419_v47 = vsub.s32 32, %v1418_v17  ;;  %v5341_v13 = vsub.s32 %v1348_v61, %v1351_v26  ;;  %v1421_v31 = vshll.u32 %v4398_v38, %v1418_v17 }
  0xf7   : > { %v1263_v12 = vor.u32 4788187, %v1262_v6  ;;  %v1266_v2 = vcvt.s32.f32 %v1259_v35  ;;  %v1424_v55 = vshll.u32 %v4399_v40, %v1418_v17  ;;  %v1512_v10 = vshrl.u32 %v1511_v9, 23 }
  0xf8   : > { %v1166_v58 = vmul.f32 %v4989_v57, %v1156_v19  ;;  %v1422_v53 = vshrl.u32 %v4399_v40, %v1419_v47  ;;  %v1425_v33 = vshrl.u32 %v4400_v42, %v1419_v47  ;;  %v1354_v45 = vsub.s32 0, %v5341_v13 }
  0xf9   : > { %v1264_v24 = vand.u32 2147483647, %v1263_v12  ;;  %v1417_v51 = vshrl.u32 %v1416_v25, 5  ;;  %v1427_v60 = vshll.u32 %v4400_v42, %v1418_v17  ;;  %v1428_v48 = vshrl.u32 %v4401_v44, %v1419_v47 }
  0xfa   : > { %v1172_v63 = vadd.f32 %v1166_v58, %v4849_v15  ;;  %v3700_v56 = vmin.u32 %v1354_v45, %v5341_v13  ;;  %v1423_v20 = vor.u32 %v1422_v53, %v1421_v31  ;;  %v1430_v39 = vshll.u32 %v4401_v44, %v1418_v17 }
  0xfb   : > { %v1267_v61 = vmul.f32 %v1266_v2, %v1264_v24  ;;  %v1431_v15 = vshrl.u32 %v4402_v46, %v1419_v47  ;;  %v1426_v49 = vor.u32 %v1425_v33, %v1424_v55  ;;  %v1433_v16 = vshll.u32 %v4402_v46, %v1418_v17 }
  0xfc   : > { %1179 = vst.msk [vmem:[#allocation2 + $0x38] sm:$0xff] %vm1173_vm7, %v1172_v63  ;;  %v1434_v36 = vshrl.u32 %v4403_v54, %v1419_v47  ;;  %v1356_v27 = vclz %v3700_v56  ;;  %v1420_v37 = vshrl.u32 %v4398_v38, %v1419_v47  ;;  %v5360_v59 = vshll.u32 %v1412_v62, 8 }
  0xfd   : > { %v1268_v29 = vxor.u32 2147483648, %v1267_v61  ;;  %v3707_v34 = vadd.s32 4294967169, %v1512_v10  ;;  %v1429_v25 = vor.u32 %v1428_v48, %v1427_v60  ;;  %v1432_v22 = vor.u32 %v1431_v15, %v1430_v39 }
  0xfe   : > { %vm1436_vm1 = vcmp.lt.s32.totalorder %v1417_v51, 1  ;;  %v3701_v17 = vadd.s32 4294967294, %v1356_v27  ;;  %v1435_v5 = vor.u32 %v1434_v36, %v1433_v16  ;;  %vm1438_vm3 = vcmp.lt.s32.totalorder %v1417_v51, 3 }
  0xff   : > { %v1269_v8 = vsel %vm1186_vm10, %v1268_v29, %v1267_v61  ;;  %vm1437_vm4 = vcmp.lt.s32.totalorder %v1417_v51, 2  ;;  %vm1439_vm6 = vcmp.lt.s32.totalorder %v1417_v51, 4  ;;  %v1444_v35 = vsel %vm1436_vm1, %v1423_v20, %v1426_v49 }
 0x100   : > { %v1272_v52 = vsel %vm5307_vm11, %v5048_v18, %v1269_v8  ;;  %vm3702_vm8 = vcmp.lt.s32.totalorder %v3701_v17, 0  ;;  %v1441_v6 = vsel %vm1439_vm6, %v1429_v25, 2102212464  ;;  %v1445_v19 = vsel %vm1439_vm6, %v1432_v22, 920167782 }
 0x101   : > { %4211 = vcosq.f32 %v1272_v52  ;;  %v1359_v26 = vsel %vm3702_vm8, 0, %v3701_v17  ;;  %v1440_v0 = vsel %vm1436_vm1, %v1420_v37, %v1423_v20  ;;  %v1442_v47 = vsel %vm1438_vm3, %v1426_v49, %v1441_v6 }
 0x102   : > { %4213 = vsinq.f32 %v1272_v52  ;;  %v1446_v9 = vsel %vm1438_vm3, %v1429_v25, %v1445_v19  ;;  %v1360_v12 = vsub.s32 32, %v1359_v26  ;;  %v1361_v2 = vshll.u32 %v5341_v13, %v1359_v26 }
 0x103   : > { %v1364_v58 = vsub.s32 4294967266, %v1359_v26  ;;  %v1448_v62 = vsel %vm1436_vm1, %v1426_v49, %v1429_v25  ;;  %v1374_v31 = vsub.s32 4, %v5330_v41  ;;  %v1447_v24 = vsel %vm1437_vm4, %v1444_v35, %v1446_v9 }
 0x104   : > { %v1449_v53 = vsel %vm1439_vm6, %v1435_v5, 1326507024  ;;  %v1508_v55 = vand.u32 2147483647, %v5318_v50  ;;  %v1362_v33 = vshrl.u32 %v1344_v23, %v1360_v12  ;;  %v1518_v10 = vadd.s32 1, %v3707_v34 }
 0x105   : > { %v1365_v63 = vadd.s32 127, %v1364_v58  ;;  %v1450_v45 = vsel %vm1438_vm3, %v1432_v22, %v1449_v53  ;;  %v1443_v61 = vsel %vm1437_vm4, %v1440_v0, %v1442_v47  ;;  %v5395_v23 = vsel %vm1290_vm2, %v1374_v31, %v5330_v41 }
 0x106   : > { %v1451_v13 = vsel %vm1437_vm4, %v1448_v62, %v1450_v45  ;;  %v5384_v60 = vmul.u32.u64.low %v5360_v59, %v1447_v24  ;;  %v5385_v48 = vmul.u32.u64.high %v5360_v59, %v1447_v24, %v5384_v60  ;;  %v1363_v56 = vor.u32 %v1362_v33, %v1361_v2 }
 0x107   : > { %v1366_v20 = vshll.u32 %v1365_v63, 23  ;;  %v5389_v39 = vmul.u32.u64.low %v5360_v59, %v1451_v13  ;;  %v5390_v15 = vmul.u32.u64.high %v5360_v59, %v1451_v13, %v5389_v39  ;;  %v5399_v51 = vand.u32 8388607, %v1508_v55 }
 0x108   : > { %vm1519_vm5 = vcmp.gt.s32.totalorder %v1518_v10, 0  ;;  %v1370_v49 = vcvt.s32.f32 %v1363_v56  ;;  %v1459_v16 = vmul.u32 %v5360_v59, %v1443_v61  ;;  %vm1276_vm10 = vweird.f32 %v5048_v18 }
 0x109   : > { %v1367_v29 = vor.u32 4788187, %v1366_v20  ;;  %v1520_v36 = vsel %vm1519_vm5, %v1518_v10, 0  ;;  %vm5405_vm11 = vcmp.le.f32.partialorder %v1288_v11, 0.7853982  ;;  %v1462_v41 = vadd.s32 1, %v5385_v48 }
 0x10a   : > { %v1522_v37 = vand.u32 31, %v1520_v36  ;;  %vm1279_vm13 = vcmp.lt.s32.totalorder %v5338_v14, 2  ;;  %vm1280_vm9 = vcmp.eq.s32.totalorder %v5338_v14, 0  ;;  %vm1461_vm14 = vc.u32 %v5390_v15, %v5384_v60 }
 0x10b   : > { %v1368_v34 = vand.u32 2147483647, %v1367_v29  ;;  %vm1283_vm12 = vcmp.eq.s32.totalorder %v5338_v14, 2  ;;  %v1377_v11 = vsel %vm5405_vm11, 0, %v5395_v23  ;;  %v1463_v59 = vsel %vm1461_vm14, %v1462_v41, %v5385_v48 }
 0x10c   : > { %v1523_v8 = vsub.s32 32, %v1522_v37  ;;  %v1464_v52 = vadd.s32 %v1463_v59, %v1459_v16  ;;  %v1516_v17 = vor.u32 8388608, %v5399_v51  ;;  %v1521_v5 = vshrl.u32 %v1520_v36, 5 }
 0x10d   : > { %v1371_v22 = vmul.f32 %v1370_v49, %v1368_v34  ;;  %v1525_v19 = vshll.u32 %v4398_v38, %v1522_v37  ;;  %v1528_v0 = vshll.u32 %v4399_v40, %v1522_v37  ;;  %v1531_v62 = vshll.u32 %v4400_v42, %v1522_v37 }
 0x10e   : > { %v4212_v25 = vpop.eup %4211  ;;  %v1526_v26 = vshrl.u32 %v4399_v40, %v1523_v8  ;;  %v1465_v12 = vadd.s32 536870912, %v1464_v52  ;;  %v1529_v2 = vshrl.u32 %v4400_v42, %v1523_v8  ;;  %v1534_v31 = vshll.u32 %v4401_v44, %v1522_v37 }
 0x10f   : > { %v4214_v35 = vpop.eup %4213  ;;  %v1284_v6 = vxor.u32 2147483648, %v4212_v25  ;;  %v1372_v9 = vxor.u32 2147483648, %v1371_v22  ;;  %v1535_v24 = vshrl.u32 %v4402_v46, %v1523_v8  ;;  %v1532_v45 = vshrl.u32 %v4401_v44, %v1523_v8 }
 0x110   : > { %v1281_v47 = vxor.u32 2147483648, %v4214_v35  ;;  %v5433_v63 = vshrl.u32 %v1465_v12, 30  ;;  %v1527_v13 = vor.u32 %v1526_v26, %v1525_v19  ;;  %v1537_v48 = vshll.u32 %v4402_v46, %v1522_v37 }
 0x111   : > { %v1285_v58 = vsel %vm1283_vm12, %v1284_v6, %v4214_v35  ;;  %v1373_v33 = vsel %vm1290_vm2, %v1372_v9, %v1371_v22  ;;  %v1530_v39 = vor.u32 %v1529_v2, %v1528_v0  ;;  %v1536_v51 = vor.u32 %v1535_v24, %v1534_v31 }
 0x112   : > { %v1282_v53 = vsel %vm1280_vm9, %v4212_v25, %v1281_v47  ;;  %v1376_v61 = vsel %vm5405_vm11, %v5075_v30, %v1373_v33  ;;  %v1467_v20 = vshll.u32 %v5433_v63, 30  ;;  %v1538_v14 = vshrl.u32 %v4403_v54, %v1523_v8 }
 0x113   : > { %v1286_v10 = vsel %vm1279_vm13, %v1282_v53, %v1285_v58  ;;  %4215 = vcosq.f32 %v1376_v61  ;;  %v1524_v49 = vshrl.u32 %v4398_v38, %v1523_v8  ;;  %v1533_v16 = vor.u32 %v1532_v45, %v1531_v62 }
 0x114   : > { %v1287_v56 = vsel %vm1276_vm10, nan, %v1286_v10  ;;  %4217 = vsinq.f32 %v1376_v61  ;;  %v1468_v29 = vsub.s32 %v1464_v52, %v1467_v20  ;;  %vm1540_vm15 = vcmp.lt.s32.totalorder %v1521_v5, 1 }
 0x115   : > { %v1392_v23 = vmul.f32 %v1287_v56, %v1287_v56  ;;  %v1539_v27 = vor.u32 %v1538_v14, %v1537_v48  ;;  %vm1542_vm0 = vcmp.lt.s32.totalorder %v1521_v5, 3  ;;  %vm1543_vm1 = vcmp.lt.s32.totalorder %v1521_v5, 4 }
 0x116   : > { %v1381_v18 = vadd.s32 3, %v1377_v11  ;;  %v1470_v41 = vsub.s32 0, %v1468_v29  ;;  %vm1541_vm2 = vcmp.lt.s32.totalorder %v1521_v5, 2  ;;  %v1545_v37 = vsel %vm1543_vm1, %v1533_v16, 2102212464 }
 0x117   : > { %v1394_v36 = vmul.f32 %v1392_v23, %v4989_v57  ;;  %v1548_v59 = vsel %vm1540_vm15, %v1527_v13, %v1530_v39  ;;  %v1549_v25 = vsel %vm1543_vm1, %v1536_v51, 920167782  ;;  %v1556_v22 = vshll.u32 %v1516_v17, 8 }
 0x118   : > { %v3704_v8 = vmin.u32 %v1470_v41, %v1468_v29  ;;  %v1544_v52 = vsel %vm1540_vm15, %v1524_v49, %v1527_v13  ;;  %v1550_v35 = vsel %vm1542_vm0, %v1533_v16, %v1549_v25  ;;  %v1546_v11 = vsel %vm1542_vm0, %v1530_v39, %v1545_v37 }
 0x119   : > { %v1396_v34 = vadd.f32 %v1394_v36, %v5038_v43  ;;  %v1551_v6 = vsel %vm1541_vm2, %v1548_v59, %v1550_v35  ;;  %v1552_v19 = vsel %vm1540_vm15, %v1530_v39, %v1533_v16  ;;  %v1553_v43 = vsel %vm1543_vm1, %v1539_v27, 1326507024 }
 0x11a   : > { %v1382_v26 = vand.u32 3, %v1381_v18  ;;  %v1472_v0 = vclz %v3704_v8  ;;  %v1554_v47 = vsel %vm1542_vm0, %v1536_v51, %v1553_v43  ;;  %v1547_v2 = vsel %vm1541_vm2, %v1544_v52, %v1546_v11 }
 0x11b   : > { %1398 = vst.msk [vmem:[#allocation2] sm:$0xff] %vm1173_vm7, %v1396_v34  ;;  %v5460_v17 = vmul.u32.u64.low %v1556_v22, %v1551_v6  ;;  %v5461_v9 = vmul.u32.u64.high %v1556_v22, %v1551_v6, %v5460_v17  ;;  %v1555_v58 = vsel %vm1541_vm2, %v1552_v19, %v1554_v47  ;;  %v1460_v24 = vadd.s32 %v5384_v60, %v5390_v15 }
 0x11c   : > { %v3705_v12 = vadd.s32 4294967294, %v1472_v0  ;;  %v5465_v62 = vmul.u32.u64.low %v1556_v22, %v1555_v58  ;;  %v5466_v31 = vmul.u32.u64.high %v1556_v22, %v1555_v58, %v5465_v62  ;;  %vm1384_vm3 = vcmp.eq.s32.totalorder %v1382_v26, 0 }
 0x11d   : > { %vm1387_vm6 = vcmp.eq.s32.totalorder %v1382_v26, 2  ;;  %v1563_v45 = vmul.u32 %v1556_v22, %v1547_v2  ;;  %v1566_v10 = vadd.s32 1, %v5461_v9  ;;  %vm1380_vm8 = vweird.f32 %v5075_v30 }
 0x11e   : > { %vm3706_vm4 = vcmp.lt.s32.totalorder %v3705_v12, 0  ;;  %vm1383_vm5 = vcmp.lt.s32.totalorder %v1382_v26, 2  ;;  %vm1565_vm10 = vc.u32 %v5466_v31, %v5460_v17  ;;  %vm1406_vm11 = vcmp.lt.s32.totalorder %v5279_v7, 0 }
 0x11f   : > { %v1475_v33 = vsel %vm3706_vm4, 0, %v3705_v12  ;;  %v1567_v23 = vsel %vm1565_vm10, %v1566_v10, %v5461_v9  ;;  %v1490_v52 = vsub.s32 4, %v5433_v63  ;;  %vm1405_vm13 = vcmp.le.f32.partialorder %v1404_v4, 0.7853982 }
 0x120   : > { %v4216_v53 = vpop.eup %4215  ;;  %v1476_v48 = vsub.s32 32, %v1475_v33  ;;  %v1477_v56 = vshll.u32 %v1468_v29, %v1475_v33  ;;  %v1480_v5 = vsub.s32 4294967266, %v1475_v33  ;;  %v1568_v14 = vadd.s32 %v1567_v23, %v1563_v45 }
 0x121   : > { %v4218_v61 = vpop.eup %4217  ;;  %v1388_v13 = vxor.u32 2147483648, %v4216_v53  ;;  %v1491_v43 = vsel %vm1406_vm11, %v1490_v52, %v5433_v63  ;;  %v1564_v2 = vadd.s32 %v5460_v17, %v5466_v31  ;;  %vm1496_vm0 = vweird.f32 %v5279_v7 }
 0x122   : > { %v1385_v20 = vxor.u32 2147483648, %v4218_v61  ;;  %v1478_v60 = vshrl.u32 %v1460_v24, %v1476_v48  ;;  %v1481_v15 = vadd.s32 127, %v1480_v5  ;;  %v1569_v29 = vadd.s32 536870912, %v1568_v14 }
 0x123   : > { %v1389_v39 = vsel %vm1387_vm6, %v1388_v13, %v4218_v61  ;;  %v1493_v47 = vsel %vm1405_vm13, 0, %v1491_v43  ;;  %vm1510_vm1 = vcmp.lt.s32.totalorder %v5318_v50, 0  ;;  %vm1509_vm2 = vcmp.le.f32.partialorder %v1508_v55, 0.7853982 }
 0x124   : > { %v1386_v51 = vsel %vm1384_vm3, %v4216_v53, %v1385_v20  ;;  %v1479_v16 = vor.u32 %v1478_v60, %v1477_v56  ;;  %v1482_v36 = vshll.u32 %v1481_v15, 23  ;;  %v1570_v37 = vshrl.u32 %v1569_v29, 30 }
 0x125   : > { %v1390_v49 = vsel %vm1383_vm5, %v1386_v51, %v1389_v39  ;;  %v1497_v12 = vadd.s32 3, %v1493_v47 }
 0x126   : > { %v1391_v27 = vsel %vm1380_vm8, nan, %v1390_v49  ;;  %v1483_v41 = vor.u32 4788187, %v1482_v36  ;;  %v1486_v30 = vcvt.s32.f32 %v1479_v16  ;;  %v1571_v25 = vshll.u32 %v1570_v37, 30 }
 0x127   : > { %v1393_v18 = vmul.f32 %v1391_v27, %v1391_v27  ;;  %v1498_v53 = vand.u32 3, %v1497_v12  ;;  %v1594_v23 = vsub.s32 4, %v1570_v37  ;;  %vm1600_vm8 = vweird.f32 %v5318_v50 }
 0x128   : > { %v1484_v59 = vand.u32 2147483647, %v1483_v41  ;;  %v1572_v35 = vsub.s32 %v1568_v14, %v1571_v25 }
 0x129   : > { %v1395_v34 = vmul.f32 %v1393_v18, %v4989_v57  ;;  %vm1503_vm14 = vcmp.eq.s32.totalorder %v1498_v53, 2  ;;  %vm1500_vm12 = vcmp.eq.s32.totalorder %v1498_v53, 0  ;;  %vm1499_vm15 = vcmp.lt.s32.totalorder %v1498_v53, 2 }
 0x12a   : > { %v1487_v8 = vmul.f32 %v1486_v30, %v1484_v59  ;;  %v1574_v6 = vsub.s32 0, %v1572_v35  ;;  %v1595_v36 = vsel %vm1510_vm1, %v1594_v23, %v1570_v37 }
 0x12b   : > { %v1397_v22 = vadd.f32 %v1395_v34, %v5058_v28  ;;  %v1597_v18 = vsel %vm1509_vm2, 0, %v1595_v36 }
 0x12c   : > { %v1488_v11 = vxor.u32 2147483648, %v1487_v8  ;;  %v3708_v0 = vmin.u32 %v1574_v6, %v1572_v35  ;;  %v1601_v41 = vadd.s32 3, %v1597_v18 }
 0x12d   : > { %1399 = vst.msk [vmem:[#allocation2 + $0x8] sm:$0xff] %vm1173_vm7, %v1397_v22 }
 0x12e   : > { %v1489_v19 = vsel %vm1406_vm11, %v1488_v11, %v1487_v8  ;;  %v1576_v28 = vclz %v3708_v0  ;;  %v1602_v30 = vand.u32 3, %v1601_v41 }
 0x12f   : > { %v1492_v26 = vsel %vm1405_vm13, %v5279_v7, %v1489_v19 }
 0x130   : > { %4219 = vcosq.f32 %v1492_v26  ;;  %v3709_v9 = vadd.s32 4294967294, %v1576_v28  ;;  %vm1607_vm3 = vcmp.eq.s32.totalorder %v1602_v30, 2  ;;  %vm1604_vm4 = vcmp.eq.s32.totalorder %v1602_v30, 0 }
 0x131   : > { %4221 = vsinq.f32 %v1492_v26  ;;  %vm1603_vm6 = vcmp.lt.s32.totalorder %v1602_v30, 2 }
 0x132   : > { %vm3710_vm9 = vcmp.lt.s32.totalorder %v3709_v9, 0 }
 0x133   : > { %v1579_v58 = vsel %vm3710_vm9, 0, %v3709_v9 }
 0x134   : > { %v1580_v62 = vsub.s32 32, %v1579_v58  ;;  %v1581_v4 = vshll.u32 %v1572_v35, %v1579_v58  ;;  %v1584_v24 = vsub.s32 4294967266, %v1579_v58 }
 0x136   : > { %v1582_v33 = vshrl.u32 %v1564_v2, %v1580_v62  ;;  %v1585_v45 = vadd.s32 127, %v1584_v24 }
 0x138   : > { %v1583_v63 = vor.u32 %v1582_v33, %v1581_v4  ;;  %v1586_v10 = vshll.u32 %v1585_v45, 23 }
 0x13a   : > { %v1587_v13 = vor.u32 4788187, %v1586_v10  ;;  %v1590_v48 = vcvt.s32.f32 %v1583_v63 }
 0x13c   : > { %v1588_v17 = vand.u32 2147483647, %v1587_v13 }
 0x13d   : > { %v4220_v61 = vpop.eup %4219 }
 0x13e   : > { %v4222_v56 = vpop.eup %4221  ;;  %v1504_v5 = vxor.u32 2147483648, %v4220_v61  ;;  %v1591_v60 = vmul.f32 %v1590_v48, %v1588_v17 }
 0x13f   : > { %v1501_v20 = vxor.u32 2147483648, %v4222_v56 }
 0x140   : > { %v1505_v31 = vsel %vm1503_vm14, %v1504_v5, %v4222_v56  ;;  %v1592_v14 = vxor.u32 2147483648, %v1591_v60 }
 0x141   : > { %v1502_v39 = vsel %vm1500_vm12, %v4220_v61, %v1501_v20 }
 0x142   : > { %v1506_v15 = vsel %vm1499_vm15, %v1502_v39, %v1505_v31  ;;  %v1593_v16 = vsel %vm1510_vm1, %v1592_v14, %v1591_v60 }
 0x143   : > { %v1507_v51 = vsel %vm1496_vm0, nan, %v1506_v15  ;;  %v1596_v27 = vsel %vm1509_vm2, %v5318_v50, %v1593_v16 }
 0x144   : > { %v1612_v49 = vmul.f32 %v1507_v51, %v1507_v51  ;;  %4223 = vcosq.f32 %v1596_v27 }
 0x145   : > { %4225 = vsinq.f32 %v1596_v27 }
 0x146   : > { %v1614_v29 = vmul.f32 %v1612_v49, %v4989_v57 }
 0x148   : > { %v1616_v7 = vadd.f32 %v1614_v29, %v5261_v21 }
 0x14a   : > { %1618 = vst.msk [vmem:[#allocation2 + $0x40] sm:$0xff] %vm1173_vm7, %v1616_v7 }
 0x151   : > { %v4224_v34 = vpop.eup %4223 }
 0x152   : > { %v4226_v55 = vpop.eup %4225  ;;  %v1608_v59 = vxor.u32 2147483648, %v4224_v34 }
 0x153   : > { %v1605_v37 = vxor.u32 2147483648, %v4226_v55 }
 0x154   : > { %v1609_v25 = vsel %vm1607_vm3, %v1608_v59, %v4226_v55 }
 0x155   : > { %v1606_v22 = vsel %vm1604_vm4, %v4224_v34, %v1605_v37 }
 0x156   : > { %v1610_v8 = vsel %vm1603_vm6, %v1606_v22, %v1609_v25 }
 0x157   : > { %v1611_v52 = vsel %vm1600_vm8, nan, %v1610_v8 }
 0x158   : > { %v1613_v21 = vmul.f32 %v1611_v52, %v1611_v52 }
 0x15a   : > { %v1615_v35 = vmul.f32 %v1613_v21, %v4989_v57  ;;  %1623 = sbr.rel (%p3711_p13) target bundleno = 353 (0x161), region = 56 }
 0x15c   : > { %v1617_v11 = vadd.f32 %v1615_v35, %v5299_v32 }
 0x15e   : > { %1619 = vst.msk [vmem:[#allocation2 + $0x48] sm:$0xff] %vm1173_vm7, %v1617_v11 }
 0x15f   : > { %v4404_v6 = vmov 0.0  }
 0x160   : > { %1624 = vst.msk [vmem:[#allocation2] sm:$0xff] %vm1173_vm7, %v4404_v6  ;;  %1625 = vst.msk [vmem:[#allocation2 + $0x8] sm:$0xff] %vm1173_vm7, %v4404_v6 }
 0x161 PF: > { %p3712_p0 = scmp.ne.s32.totalorder %s4347_s26, 3 }
 0x163   : > { %1629 = sbr.rel (%p3712_p0) target bundleno = 366 (0x16e), region = 60 }
 0x168   : > { %vm1637_vm5 = vcmask 123904   ;;  %v4405_v57 = vmov 0.0  }
 0x169   : > { %1630 = vst.msk [vmem:[#allocation2 + $0x40] sm:$0xff] %vm1173_vm7, %v4405_v57  ;;  %1631 = vst.msk [vmem:[#allocation2 + $0x48] sm:$0xff] %vm1173_vm7, %v4405_v57 }
 0x16a   : > { %1632 = vst.msk [vmem:[#allocation2 + $0x16] sm:$0xff] %vm1173_vm7, %v4405_v57  ;;  %1633 = vst.msk [vmem:[#allocation2 + $0x1e] sm:$0xff] %vm1173_vm7, %v4405_v57 }
 0x16b   : > { %1634 = vst.msk [vmem:[#allocation2 + $0x26] sm:$0xff] %vm1173_vm7, %v4405_v57  ;;  %1635 = vst.msk [vmem:[#allocation2 + $0x2e] sm:$0xff] %vm1173_vm7, %v4405_v57 }
 0x16c   : > { %1636 = vst.msk [vmem:[#allocation2 + $0x36] sm:$0xff] %vm1173_vm7, %v4405_v57 }
 0x16d   : > { %1638 = vst.msk [vmem:[#allocation2 + $0x3e] sm:$0x3] %vm1637_vm5, %v4405_v57 }
 0x16e PF: > { %p3713_p1 = scmp.ne.s32.totalorder %s4347_s26, 2 }
 0x170   : > { %1642 = sbr.rel (%p3713_p1) target bundleno = 375 (0x177), region = 64 }
 0x175   : > { %v4406_v32 = vmov 0.0  }
 0x176   : > { %1643 = vst.msk [vmem:[#allocation2 + $0x46] sm:$0xff] %vm1173_vm7, %v4406_v32 }
 0x177 PF: > { %v3715_v50 = vld [vmem:[%s6211_s4 + $0x18] sm:$0xff]  ;;  %v1653_v19 = vld [vmem:[%s6211_s4 + $0x8] sm:$0xff]  ;;  %v3714_v43 = vld [vmem:[%s6211_s4 + $0x10] sm:$0xff]  ;;  %s3314_s20 = sld [smem:[#allocation3]]  ;;  %s4045_s8 = smul.u32 (%p4494_p5), 19, %s4351_s27 }
 0x178   : > { %3875 = vmatprep.subr.mxu0 %v3715_v50  ;;  %3888 = vmatprep.subr.mxu1 %v1653_v19  ;;  %v1652_v26 = vld [vmem:[%s6211_s4] sm:$0xff]  ;;  %v1654_v0 = vld [vmem:[#allocation2 + $0xa] sm:$0xff]  ;;  %v1655_v47 = vld [vmem:[#allocation2 + $0x12] sm:$0xff]  ;;  %s3798_s11 = sld [smem:[#allocation3 + $0x1]] }
 0x179   : > { %3876 = vmatpush3.msra.mxu0 %v3715_v50  ;;  %3889 = vmatpush3.msra.mxu1 %v1653_v19  ;;  %v1646_v28 = vld [vmem:[#allocation2 + $0x7] sm:$0xff]  ;;  %v1647_v9 = vld [vmem:[#allocation2 + $0xf] sm:$0xff]  ;;  %v1656_v2 = vld [vmem:[#allocation2 + $0x1a] sm:$0xff]  ;;  %s3362_s14 = sadd.s32 (%p4494_p5), %s4045_s8, %s4532_s12 }
 0x17a   : > { %3877 = vmatprep.subr.mxu0 %v3714_v43  ;;  %3890 = vmatprep.subr.mxu1 %v1652_v26  ;;  %v3729_v12 = vld [vmem:[%s6211_s4 + $0x28] sm:$0xff]  ;;  %v1648_v58 = vld [vmem:[#allocation2 + $0x17] sm:$0xff]  ;;  %v3728_v62 = vld [vmem:[%s6211_s4 + $0x20] sm:$0xff]  ;;  %s3801_s16 = sshll.u32 (%p4494_p5), %s3362_s14, 3 }
 0x17b   : > { %3878 = vmatpush3.msra.mxu0 %v3714_v43  ;;  %3879 = vmatprep.mubr.msk.f32.mxu0 %vm1173_vm7, %v1654_v0  ;;  %v3737_v4 = vld [vmem:[%s6211_s4 + $0x38] sm:$0xff]  ;;  %v1657_v24 = vld [vmem:[#allocation2 + $0x22] sm:$0xff]  ;;  %v1658_v33 = vld [vmem:[#allocation2 + $0x2a] sm:$0xff]  ;;  %s6150_s15 = scalar_lea.vmem (%p4494_p5), %s6214_s7, %s3801_s16  }
 0x17c   : > { %3891 = vmatpush3.msra.mxu1 %v1652_v26  ;;  %3892 = vmatprep.mubr.msk.f32.mxu1 %vm1173_vm7, %v1646_v28  ;;  %v1649_v53 = vld [vmem:[#allocation2 + $0x1f] sm:$0xff]  ;;  %v1650_v45 = vld [vmem:[#allocation2 + $0x27] sm:$0xff]  ;;  %v3736_v63 = vld [vmem:[%s6211_s4 + $0x30] sm:$0xff] }
 0x17d   : > { %3880 = vmatmul.mubr.msk.f32.vlgmr.msra.gmra.mxu0 %vm1173_vm7, %v1655_v47  ;;  %3893 = vmatmul.mubr.msk.f32.vlgmr.msra.gmra.mxu1 %vm1173_vm7, %v1647_v9  ;;  %v3745_v10 = vld [vmem:[%s6211_s4 + $0x48] sm:$0xff]  ;;  %v1659_v61 = vld [vmem:[#allocation2 + $0x32] sm:$0xff]  ;;  %v1891_v31 = vld [vmem:[#allocation2 + $0x1d] sm:$0xff] }
 0x17e   : > { %3901 = vmatprep.subr.mxu0 %v3729_v12  ;;  %3882 = vmatprep.mubr.msk.f32.mxu0 %vm1173_vm7, %v1656_v2  ;;  %v1651_v13 = vld [vmem:[#allocation2 + $0x2f] sm:$0xff]  ;;  %v3753_v5 = vld [vmem:[%s6211_s4 + $0x58] sm:$0xff]  ;;  %v2019_v39 = vld [vmem:[#allocation2 + $0x20] sm:$0xff] }
 0x17f   : > { %3902 = vmatpush3.msra.mxu0 %v3729_v12  ;;  %3895 = vmatprep.mubr.msk.f32.mxu1 %vm1173_vm7, %v1648_v58  ;;  %v1889_v48 = vld [vmem:[#allocation2 + $0xd] sm:$0xff]  ;;  %v1890_v20 = vld [vmem:[#allocation2 + $0x15] sm:$0xff]  ;;  %v3744_v60 = vld [vmem:[%s6211_s4 + $0x40] sm:$0xff] }
 0x180   : > { %3903 = vmatprep.subr.mxu0 %v3728_v62  ;;  %3914 = vmatprep.subr.mxu1 %v3737_v4  ;;  %v2017_v56 = vld [vmem:[#allocation2 + $0x10] sm:$0xff]  ;;  %v2018_v17 = vld [vmem:[#allocation2 + $0x18] sm:$0xff]  ;;  %v1892_v15 = vld [vmem:[#allocation2 + $0x25] sm:$0xff] }
 0x181   : > { %3883 = vmatmul.mubr.msk.f32.gmra.mxu0 %vm1173_vm7, %v1657_v24  ;;  %3896 = vmatmul.mubr.msk.f32.gmra.mxu1 %vm1173_vm7, %v1649_v53  ;;  %v2020_v23 = vld [vmem:[#allocation2 + $0x28] sm:$0xff]  ;;  %v2021_v14 = vld [vmem:[#allocation2 + $0x30] sm:$0xff]  ;;  %v2022_v27 = vld [vmem:[#allocation2 + $0x38] sm:$0xff] }
 0x182   : > { %3885 = vmatprep.mubr.msk.f32.mxu0 %vm1173_vm7, %v1658_v33  ;;  %3898 = vmatprep.mubr.msk.f32.mxu1 %vm1173_vm7, %v1650_v45  ;;  %v1893_v51 = vld [vmem:[#allocation2 + $0x2d] sm:$0xff]  ;;  %v1894_v36 = vld [vmem:[#allocation2 + $0x35] sm:$0xff]  ;;  %v2274_v41 = vld [vmem:[#allocation2 + $0x1e] sm:$0xff] }
 0x183   : > { %3904 = vmatpush3.msra.mxu0 %v3728_v62  ;;  %3915 = vmatpush3.msra.mxu1 %v3737_v4  ;;  %v3752_v49 = vld [vmem:[%s6211_s4 + $0x50] sm:$0xff]  ;;  %v3761_v16 = vld [vmem:[%s6211_s4 + $0x68] sm:$0xff]  ;;  %v2146_v18 = vld [vmem:[#allocation2 + $0x1b] sm:$0xff] }
 0x184   : > { %3916 = vmatprep.subr.mxu1 %v3736_v63  ;;  %3927 = vmatprep.subr.mxu0 %v3745_v10  ;;  %v2145_v29 = vld [vmem:[#allocation2 + $0x13] sm:$0xff]  ;;  %v2147_v30 = vld [vmem:[#allocation2 + $0x23] sm:$0xff]  ;;  %v2148_v59 = vld [vmem:[#allocation2 + $0x2b] sm:$0xff] }
 0x185   : > { %3886 = vmatmul.mubr.msk.f32.gmra.mxu0 %vm1173_vm7, %v1659_v61  ;;  %3899 = vmatmul.mubr.msk.f32.gmra.mxu1 %vm1173_vm7, %v1651_v13  ;;  %v2273_v7 = vld [vmem:[#allocation2 + $0x16] sm:$0xff]  ;;  %v2275_v34 = vld [vmem:[#allocation2 + $0x26] sm:$0xff]  ;;  %v2276_v37 = vld [vmem:[#allocation2 + $0x2e] sm:$0xff] }
 0x186   : > { %3905 = vmatprep.mubr.msk.f32.mxu0 %vm1173_vm7, %v1889_v48  ;;  %3917 = vmatpush3.msra.mxu1 %v3736_v63  ;;  %v3760_v55 = vld [vmem:[%s6211_s4 + $0x60] sm:$0xff]  ;;  %v2149_v25 = vld [vmem:[#allocation2 + $0x33] sm:$0xff]  ;;  %v2403_v11 = vld [vmem:[#allocation2 + $0x29] sm:$0xff] }
 0x187   : > { %3918 = vmatprep.mubr.msk.f32.mxu1 %vm1173_vm7, %v2017_v56  ;;  %3940 = vmatprep.subr.mxu1 %v3753_v5  ;;  %v2277_v22 = vld [vmem:[#allocation2 + $0x36] sm:$0xff]  ;;  %v2278_v52 = vld [vmem:[#allocation2 + $0x3e] sm:$0xff] }
 0x188   : > { %v2150_v8 = vld [vmem:[#allocation2 + $0x3b] sm:$0xff]  ;;  %v2404_v6 = vld [vmem:[#allocation2 + $0x31] sm:$0xff] }
 0x189   : > { %3906 = vmatmul.mubr.msk.f32.vlgmr.msra.gmra.mxu0 %vm1173_vm7, %v1890_v20  ;;  %3919 = vmatmul.mubr.msk.f32.vlgmr.msra.gmra.mxu1 %vm1173_vm7, %v2018_v17  ;;  %v2401_v21 = vld [vmem:[#allocation2 + $0x19] sm:$0xff]  ;;  %v2402_v35 = vld [vmem:[#allocation2 + $0x21] sm:$0xff] }
 0x18a   : > { %3928 = vmatpush3.msra.mxu0 %v3745_v10  ;;  %3908 = vmatprep.mubr.msk.f32.mxu0 %vm1173_vm7, %v1891_v31  ;;  %v2405_v57 = vld [vmem:[#allocation2 + $0x39] sm:$0xff]  ;;  %v2406_v32 = vld [vmem:[#allocation2 + $0x41] sm:$0xff] }
 0x18b   : > { %3921 = vmatprep.mubr.msk.f32.mxu1 %vm1173_vm7, %v2019_v39  ;;  %3929 = vmatprep.subr.mxu0 %v3744_v60 }
 0x18c   : > { %3930 = vmatpush3.msra.mxu0 %v3744_v60  ;;  %3941 = vmatpush3.msra.mxu1 %v3753_v5 }
 0x18d   : > { %3909 = vmatmul.mubr.msk.f32.gmra.mxu0 %vm1173_vm7, %v1892_v15  ;;  %3922 = vmatmul.mubr.msk.f32.gmra.mxu1 %vm1173_vm7, %v2020_v23 }
 0x18e   : > { %3911 = vmatprep.mubr.msk.f32.mxu0 %vm1173_vm7, %v1893_v51  ;;  %3924 = vmatprep.mubr.msk.f32.mxu1 %vm1173_vm7, %v2021_v14 }
 0x18f   : > { %3942 = vmatprep.subr.mxu1 %v3752_v49  ;;  %3953 = vmatprep.subr.mxu0 %v3761_v16 }
 0x190   : > { %3943 = vmatpush3.msra.mxu1 %v3752_v49 }
 0x191   : > { %3912 = vmatmul.mubr.msk.f32.gmra.mxu0 %vm1173_vm7, %v1894_v36  ;;  %3925 = vmatmul.mubr.msk.f32.gmra.mxu1 %vm1173_vm7, %v2022_v27 }
 0x192   : > { %3931 = vmatprep.mubr.msk.f32.mxu0 %vm1173_vm7, %v2145_v29  ;;  %3944 = vmatprep.mubr.msk.f32.mxu1 %vm1173_vm7, %v2273_v7 }
 0x195   : > { %3932 = vmatmul.mubr.msk.f32.vlgmr.msra.gmra.mxu0 %vm1173_vm7, %v2146_v18  ;;  %3945 = vmatmul.mubr.msk.f32.vlgmr.msra.gmra.mxu1 %vm1173_vm7, %v2274_v41 }
 0x196   : > { %3954 = vmatpush3.msra.mxu0 %v3761_v16  ;;  %3934 = vmatprep.mubr.msk.f32.mxu0 %vm1173_vm7, %v2147_v30 }
 0x197   : > { %3947 = vmatprep.mubr.msk.f32.mxu1 %vm1173_vm7, %v2275_v34  ;;  %3955 = vmatprep.subr.mxu0 %v3760_v55 }
 0x198   : > { %3956 = vmatpush3.msra.mxu0 %v3760_v55 }
 0x199   : > { %3935 = vmatmul.mubr.msk.f32.gmra.mxu0 %vm1173_vm7, %v2148_v59  ;;  %3948 = vmatmul.mubr.msk.f32.gmra.mxu1 %vm1173_vm7, %v2276_v37  ;;  %v2531_v59 = vsub.s32 2, %v4534_v1 }
 0x19a   : > { %3937 = vmatprep.mubr.msk.f32.mxu0 %vm1173_vm7, %v2149_v25  ;;  %3950 = vmatprep.mubr.msk.f32.mxu1 %vm1173_vm7, %v2277_v22 }
 0x19d   : > { %3938 = vmatmul.mubr.msk.f32.gmra.mxu0 %vm1173_vm7, %v2150_v8  ;;  %3951 = vmatmul.mubr.msk.f32.gmra.mxu1 %vm1173_vm7, %v2278_v52 }
 0x19e   : > { %3957 = vmatprep.mubr.msk.f32.mxu0 %vm1173_vm7, %v2401_v21 }
 0x1a1   : > { %3958 = vmatmul.mubr.msk.f32.vlgmr.msra.gmra.mxu0 %vm1173_vm7, %v2402_v35  ;;  %v2541_v35 = vsub.s32 3, %v4534_v1 }
 0x1a2   : > { %3960 = vmatprep.mubr.msk.f32.mxu0 %vm1173_vm7, %v2403_v11 }
 0x1a5   : > { %3961 = vmatmul.mubr.msk.f32.gmra.mxu0 %vm1173_vm7, %v2404_v6 }
 0x1a6   : > { %3963 = vmatprep.mubr.msk.f32.mxu0 %vm1173_vm7, %v2405_v57 }
 0x1a9   : > { %3964 = vmatmul.mubr.msk.f32.gmra.mxu0 %vm1173_vm7, %v2406_v32 }
 0x23d   : > { %v3881_v50 = vpop.f32.mrf.mxu0  ;;  %v3894_v19 = vpop.f32.mrf.mxu1 }
 0x23e   : > { %v1866_v39 = vadd.f32 %v3894_v19, %v3881_v50  ;;  %v5600_v19 = vrot.slane %v4544_v3, %v2531_v59 }
 0x23f   : > { %v1747_v43 = vpop.f32.mrf.mxu0  ;;  %v1860_v26 = vpop.f32.mrf.mxu1 }
 0x240   : > { %v1861_v51 = vadd.f32 %v1860_v26, %v1747_v43 }
 0x241   : > { %v3884_v0 = vpop.f32.mrf.mxu0  ;;  %v3897_v28 = vpop.f32.mrf.mxu1 }
 0x242   : > { %v1876_v36 = vadd.f32 %v3897_v28, %v3884_v0 }
 0x243   : > { %v1757_v47 = vpop.f32.mrf.mxu0  ;;  %v1870_v9 = vpop.f32.mrf.mxu1 }
 0x244   : > { %v1871_v37 = vadd.f32 %v1870_v9, %v1757_v47  ;;  %v5603_v47 = vrot.slane %v4544_v3, %v2541_v35 }
 0x245   : > { %v3887_v12 = vpop.f32.mrf.mxu0  ;;  %v3900_v2 = vpop.f32.mrf.mxu1 }
 0x246   : > { %v1886_v58 = vadd.f32 %v3900_v2, %v3887_v12 }
 0x247   : > { %v1767_v62 = vpop.f32.mrf.mxu0  ;;  %v1880_v4 = vpop.f32.mrf.mxu1 }
 0x248   : > { %v1881_v24 = vadd.f32 %v1880_v4, %v1767_v62 }
 0x249   : > { %v3907_v53 = vpop.f32.mrf.mxu0  ;;  %v3920_v33 = vpop.f32.mrf.mxu1 }
 0x24a   : > { %v2012_v14 = vadd.f32 %v3907_v53, %v1866_v39 }
 0x24b   : > { %v1982_v45 = vpop.f32.mrf.mxu0  ;;  %v2110_v63 = vpop.f32.mrf.mxu1 }
 0x24c   : > { %v2011_v27 = vadd.f32 %v1982_v45, %v1861_v51  ;;  %v2140_v18 = vadd.f32 %v3920_v33, %v2012_v14  ;;  %v3181_v14 = vsub.s32 4, %v4534_v1 }
 0x24d   : > { %v3910_v10 = vpop.f32.mrf.mxu0  ;;  %v3923_v61 = vpop.f32.mrf.mxu1 }
 0x24e   : > { %v2014_v41 = vadd.f32 %v3910_v10, %v1876_v36  ;;  %v2139_v34 = vadd.f32 %v2110_v63, %v2011_v27 }
 0x24f   : > { %v1992_v13 = vpop.f32.mrf.mxu0  ;;  %v2120_v48 = vpop.f32.mrf.mxu1 }
 0x250   : > { %v2142_v8 = vadd.f32 %v3923_v61, %v2014_v41  ;;  %v2013_v11 = vadd.f32 %v1992_v13, %v1871_v37 }
 0x251   : > { %v3913_v56 = vpop.f32.mrf.mxu0  ;;  %v3926_v5 = vpop.f32.mrf.mxu1 }
 0x252   : > { %v2016_v20 = vadd.f32 %v3913_v56, %v1886_v58  ;;  %v2141_v9 = vadd.f32 %v2120_v48, %v2013_v11 }
 0x253   : > { %v2002_v17 = vpop.f32.mrf.mxu0  ;;  %v2130_v31 = vpop.f32.mrf.mxu1 }
 0x254   : > { %v2015_v60 = vadd.f32 %v2002_v17, %v1881_v24  ;;  %v2144_v15 = vadd.f32 %v3926_v5, %v2016_v20 }
 0x255   : > { %v3933_v23 = vpop.f32.mrf.mxu0  ;;  %v3946_v29 = vpop.f32.mrf.mxu1 }
 0x256   : > { %v2143_v49 = vadd.f32 %v2130_v31, %v2015_v60  ;;  %v2268_v55 = vadd.f32 %v3933_v23, %v2140_v18 }
 0x257   : > { %v2238_v16 = vpop.f32.mrf.mxu0  ;;  %v2366_v25 = vpop.f32.mrf.mxu1 }
 0x258   : > { %v2267_v52 = vadd.f32 %v2238_v16, %v2139_v34  ;;  %v2396_v57 = vadd.f32 %v3946_v29, %v2268_v55 }
 0x259   : > { %v3936_v7 = vpop.f32.mrf.mxu0  ;;  %v3949_v43 = vpop.f32.mrf.mxu1 }
 0x25a   : > { %v2270_v32 = vadd.f32 %v3936_v7, %v2142_v8  ;;  %v2395_v0 = vadd.f32 %v2366_v25, %v2267_v52  ;;  %v5643_v8 = vrot.slane %v4544_v3, %v3181_v14 }
 0x25b   : > { %v2248_v30 = vpop.f32.mrf.mxu0  ;;  %v2376_v53 = vpop.f32.mrf.mxu1 }
 0x25c   : > { %v2398_v2 = vadd.f32 %v3949_v43, %v2270_v32  ;;  %v2269_v4 = vadd.f32 %v2248_v30, %v2141_v9 }
 0x25d   : > { %v3939_v22 = vpop.f32.mrf.mxu0  ;;  %v3952_v20 = vpop.f32.mrf.mxu1 }
 0x25e   : > { %v2272_v21 = vadd.f32 %v3939_v22, %v2144_v15  ;;  %v2397_v48 = vadd.f32 %v2376_v53, %v2269_v4 }
 0x25f   : > { %v2258_v6 = vpop.f32.mrf.mxu0  ;;  %v2386_v36 = vpop.f32.mrf.mxu1 }
 0x260   : > { %v2271_v50 = vadd.f32 %v2258_v6, %v2143_v49  ;;  %v2400_v59 = vadd.f32 %v3952_v20, %v2272_v21 }
 0x261   : > { %v3959_v26 = vpop.f32.mrf.mxu0 }
 0x262   : > { %v2524_v28 = vadd.f32 %v3959_v26, %v2396_v57  ;;  %v5640_v25 = vadd.f32 %v2386_v36, %v2271_v50 }
 0x263   : > { %v2494_v12 = vpop.f32.mrf.mxu0 }
 0x264   : > { %v5606_v58 = vadd.f32 %v5600_v19, %v2524_v28  ;;  %v2523_v62 = vadd.f32 %v2494_v12, %v2395_v0 }
 0x265   : > { %v3962_v24 = vpop.f32.mrf.mxu0 }
 0x266   : > { %v5610_v33 = vmul.f32 %v5603_v47, %v5606_v58  ;;  %v5613_v45 = vadd.f32 %v5600_v19, %v2523_v62  ;;  %v2526_v63 = vadd.f32 %v3962_v24, %v2398_v2 }
 0x267   : > { %v2504_v13 = vpop.f32.mrf.mxu0 }
 0x268   : > { %v2653_v10 = vand.u32 2147483647, %v5610_v33  ;;  %v2656_v61 = vand.u32 2139095040, %v5610_v33  ;;  %v5619_v56 = vmul.f32 %v5603_v47, %v5613_v45  ;;  %v5622_v5 = vadd.f32 %v5600_v19, %v2526_v63 }
 0x269   : > { %v2525_v23 = vadd.f32 %v2504_v13, %v2397_v48  ;;  %v3965_v55 = vpop.f32.mrf.mxu0  ;;  %vm2655_vm2 = vcmp.lt.s32.totalorder %v5610_v33, 0 }
 0x26a   : > { %v2657_v17 = vshrl.u32 %v2656_v61, 23  ;;  %v2660_v31 = vand.u32 8388607, %v2653_v10  ;;  %v2549_v39 = vand.u32 2147483647, %v5619_v56  ;;  %v2552_v60 = vand.u32 2139095040, %v5619_v56 }
 0x26b   : > { %v5630_v15 = vmul.f32 %v5603_v47, %v5622_v5  ;;  %v5638_v34 = vadd.f32 %v5600_v19, %v2525_v23  ;;  %v5647_v57 = vadd.f32 %v3965_v55, %v2400_v59  ;;  %vm5728_vm8 = vcmp.le.f32.partialorder %v2653_v10, 0.7853982 }
 0x26c   : > { %v3772_v51 = vadd.s32 4294967169, %v2657_v17  ;;  %v2553_v49 = vshrl.u32 %v2552_v60, 23  ;;  %v2556_v16 = vand.u32 8388607, %v2549_v39  ;;  %v2661_v27 = vor.u32 8388608, %v2660_v31 }
 0x26d   : > { %v2864_v7 = vand.u32 2139095040, %v5630_v15  ;;  %v2861_v30 = vand.u32 2147483647, %v5630_v15  ;;  %v5659_v50 = vmul.f32 %v5603_v47, %v5638_v34 }
 0x26e   : > { %v2663_v29 = vadd.s32 1, %v3772_v51  ;;  %v3768_v18 = vadd.s32 4294967169, %v2553_v49  ;;  %v2557_v41 = vor.u32 8388608, %v2556_v16  ;;  %v5645_v6 = vshll.u32 %v2661_v27, 8 }
 0x26f   : > { %v2865_v37 = vshrl.u32 %v2864_v7, 23  ;;  %v5655_v21 = vand.u32 8388607, %v2861_v30  ;;  %v2760_v59 = vand.u32 2139095040, %v5659_v50 }
 0x270   : > { %vm2664_vm10 = vcmp.gt.s32.totalorder %v2663_v29, 0  ;;  %v2559_v52 = vadd.s32 1, %v3768_v18  ;;  %v5649_v32 = vshll.u32 %v2557_v41, 8 }
 0x271   : > { %v2665_v22 = vsel %vm2664_vm10, %v2663_v29, 0  ;;  %v5651_v43 = vadd.s32 4294967169, %v2865_v37 }
 0x272   : > { %v2666_v35 = vshrl.u32 %v2665_v22, 5  ;;  %v2667_v11 = vand.u32 31, %v2665_v22  ;;  %vm2560_vm11 = vcmp.gt.s32.totalorder %v2559_v52, 0 }
 0x273   : > { %v2561_v17 = vsel %vm2560_vm11, %v2559_v52, 0 }
 0x274   : > { %v2668_v26 = vsub.s32 32, %v2667_v11  ;;  %v2670_v0 = vshll.u32 %v4398_v38, %v2667_v11  ;;  %v2673_v28 = vshll.u32 %v4399_v40, %v2667_v11  ;;  %v2676_v9 = vshll.u32 %v4400_v42, %v2667_v11 }
 0x275   : > { %v2679_v12 = vshll.u32 %v4401_v44, %v2667_v11  ;;  %v2682_v2 = vshll.u32 %v4402_v46, %v2667_v11  ;;  %vm2685_vm13 = vcmp.lt.s32.totalorder %v2666_v35, 1  ;;  %vm2686_vm9 = vcmp.lt.s32.totalorder %v2666_v35, 2 }
 0x276   : > { %v2671_v62 = vshrl.u32 %v4399_v40, %v2668_v26  ;;  %v2674_v4 = vshrl.u32 %v4400_v42, %v2668_v26  ;;  %v2677_v24 = vshrl.u32 %v4401_v44, %v2668_v26  ;;  %v2669_v53 = vshrl.u32 %v4398_v38, %v2668_v26 }
 0x277   : > { %v2680_v63 = vshrl.u32 %v4402_v46, %v2668_v26  ;;  %v2683_v61 = vshrl.u32 %v4403_v54, %v2668_v26  ;;  %vm2687_vm14 = vcmp.lt.s32.totalorder %v2666_v35, 3  ;;  %vm2688_vm12 = vcmp.lt.s32.totalorder %v2666_v35, 4 }
 0x278   : > { %v2672_v13 = vor.u32 %v2671_v62, %v2670_v0  ;;  %v2675_v48 = vor.u32 %v2674_v4, %v2673_v28  ;;  %v2678_v20 = vor.u32 %v2677_v24, %v2676_v9  ;;  %v2563_v23 = vand.u32 31, %v2561_v17 }
 0x279   : > { %v2681_v31 = vor.u32 %v2680_v63, %v2679_v12  ;;  %v2684_v60 = vor.u32 %v2683_v61, %v2682_v2  ;;  %v2562_v52 = vshrl.u32 %v2561_v17, 5 }
 0x27a   : > { %v2689_v51 = vsel %vm2685_vm13, %v2669_v53, %v2672_v13  ;;  %v2690_v14 = vsel %vm2688_vm12, %v2678_v20, 2102212464  ;;  %v2693_v49 = vsel %vm2685_vm13, %v2672_v13, %v2675_v48  ;;  %v2697_v16 = vsel %vm2685_vm13, %v2675_v48, %v2678_v20 }
 0x27b   : > { %v2691_v36 = vsel %vm2687_vm14, %v2675_v48, %v2690_v14  ;;  %v2694_v27 = vsel %vm2688_vm12, %v2681_v31, 920167782  ;;  %v2698_v29 = vsel %vm2688_vm12, %v2684_v60, 1326507024  ;;  %v2564_v7 = vsub.s32 32, %v2563_v23 }
 0x27c   : > { %v2692_v18 = vsel %vm2686_vm9, %v2689_v51, %v2691_v36  ;;  %v2695_v41 = vsel %vm2687_vm14, %v2678_v20, %v2694_v27  ;;  %v2699_v55 = vsel %vm2687_vm14, %v2681_v31, %v2698_v29  ;;  %v2566_v11 = vshll.u32 %v4398_v38, %v2563_v23 }
 0x27d   : > { %v2696_v37 = vsel %vm2686_vm9, %v2693_v49, %v2695_v41  ;;  %v2700_v22 = vsel %vm2686_vm9, %v2697_v16, %v2699_v55  ;;  %v2708_v12 = vmul.u32 %v5645_v6, %v2692_v18  ;;  %v2567_v2 = vshrl.u32 %v4399_v40, %v2564_v7 }
 0x27e   : > { %v5685_v26 = vmul.u32.u64.low %v5645_v6, %v2700_v22  ;;  %v5686_v0 = vmul.u32.u64.high %v5645_v6, %v2700_v22, %v5685_v26  ;;  %v5689_v28 = vmul.u32.u64.low %v5645_v6, %v2696_v37  ;;  %v5690_v9 = vmul.u32.u64.high %v5645_v6, %v2696_v37, %v5689_v28 }
 0x27f   : > { %v2569_v62 = vshll.u32 %v4399_v40, %v2563_v23  ;;  %v2570_v35 = vshrl.u32 %v4400_v42, %v2564_v7  ;;  %v2572_v4 = vshll.u32 %v4400_v42, %v2563_v23  ;;  %v2573_v24 = vshrl.u32 %v4401_v44, %v2564_v7 }
 0x280   : > { %v2575_v53 = vshll.u32 %v4401_v44, %v2563_v23  ;;  %v2576_v63 = vshrl.u32 %v4402_v46, %v2564_v7  ;;  %v2568_v61 = vor.u32 %v2567_v2, %v2566_v11  ;;  %v2578_v48 = vshll.u32 %v4402_v46, %v2563_v23 }
 0x281   : > { %v2571_v13 = vor.u32 %v2570_v35, %v2569_v62  ;;  %v2579_v6 = vshrl.u32 %v4403_v54, %v2564_v7  ;;  %vm2710_vm15 = vc.u32 %v5686_v0, %v5689_v28  ;;  %v2711_v20 = vadd.s32 1, %v5690_v9 }
 0x282   : > { %v2565_v17 = vshrl.u32 %v4398_v38, %v2564_v7  ;;  %v2574_v31 = vor.u32 %v2573_v24, %v2572_v4  ;;  %v2577_v60 = vor.u32 %v2576_v63, %v2575_v53  ;;  %vm2581_vm0 = vcmp.lt.s32.totalorder %v2562_v52, 1 }
 0x283   : > { %v2580_v51 = vor.u32 %v2579_v6, %v2578_v48  ;;  %vm2582_vm1 = vcmp.lt.s32.totalorder %v2562_v52, 2  ;;  %v2712_v14 = vsel %vm2710_vm15, %v2711_v20, %v5690_v9  ;;  %vm2583_vm3 = vcmp.lt.s32.totalorder %v2562_v52, 3 }
 0x284   : > { %vm2584_vm4 = vcmp.lt.s32.totalorder %v2562_v52, 4  ;;  %v2589_v23 = vsel %vm2581_vm0, %v2568_v61, %v2571_v13  ;;  %v2713_v49 = vadd.s32 %v2712_v14, %v2708_v12  ;;  %v2593_v27 = vsel %vm2581_vm0, %v2571_v13, %v2574_v31 }
 0x285   : > { %v2586_v16 = vsel %vm2584_vm4, %v2574_v31, 2102212464  ;;  %v2590_v36 = vsel %vm2584_vm4, %v2577_v60, 920167782  ;;  %v2585_v29 = vsel %vm2581_vm0, %v2565_v17, %v2568_v61  ;;  %v2594_v41 = vsel %vm2584_vm4, %v2580_v51, 1326507024 }
 0x286   : > { %v2591_v18 = vsel %vm2583_vm3, %v2574_v31, %v2590_v36  ;;  %v2871_v7 = vadd.s32 1, %v5651_v43  ;;  %v2714_v55 = vadd.s32 536870912, %v2713_v49  ;;  %v2587_v37 = vsel %vm2583_vm3, %v2571_v13, %v2586_v16 }
 0x287   : > { %v2592_v22 = vsel %vm2582_vm1, %v2589_v23, %v2591_v18  ;;  %v2595_v11 = vsel %vm2583_vm3, %v2577_v60, %v2594_v41  ;;  %v5717_v12 = vadd.f32 %v5600_v19, %v5647_v57  ;;  %v2588_v4 = vsel %vm2582_vm1, %v2585_v29, %v2587_v37  ;;  %v3195_v37 = vld [vmem:[%s6212_s5] sm:$0xff] }
 0x288   : > { %v2596_v26 = vsel %vm2582_vm1, %v2593_v27, %v2595_v11  ;;  %v5711_v9 = vmul.u32.u64.low %v5649_v32, %v2592_v22  ;;  %v5712_v2 = vmul.u32.u64.high %v5649_v32, %v2592_v22, %v5711_v9  ;;  %v2715_v62 = vshrl.u32 %v2714_v55, 30  ;;  %v3196_v55 = vld [vmem:[%s6212_s5 + $0x8] sm:$0xff] }
 0x289   : > { %v5720_v35 = vmul.u32.u64.low %v5649_v32, %v2596_v26  ;;  %v5721_v43 = vmul.u32.u64.high %v5649_v32, %v2596_v26, %v5720_v35  ;;  %vm2872_vm6 = vcmp.gt.s32.totalorder %v2871_v7, 0  ;;  %v2869_v24 = vor.u32 8388608, %v5655_v21  ;;  %3966 = vmatprep.subr.mxu1 %v3196_v55 }
 0x28a   : > { %v2873_v53 = vsel %vm2872_vm6, %v2871_v7, 0  ;;  %v2757_v63 = vand.u32 2147483647, %v5659_v50  ;;  %v2716_v61 = vshll.u32 %v2715_v62, 30  ;;  %v2739_v13 = vsub.s32 4, %v2715_v62  ;;  %3967 = vmatpush3.msra.mxu1 %v3196_v55 }
 0x28b   : > { %v2875_v48 = vand.u32 31, %v2873_v53  ;;  %v2761_v6 = vshrl.u32 %v2760_v59, 23  ;;  %v5733_v20 = vadd.s32 %v5689_v28, %v5686_v0  ;;  %v2607_v52 = vadd.s32 1, %v5712_v2  ;;  %3968 = vmatprep.subr.mxu1 %v3195_v37 }
 0x28c   : > { %v5738_v21 = vmul.f32 %v5603_v47, %v5717_v12  ;;  %v5740_v17 = vsub.s32 %v2713_v49, %v2716_v61  ;;  %v2740_v59 = vsel %vm2655_vm2, %v2739_v13, %v2715_v62  ;;  %v2604_v31 = vmul.u32 %v5649_v32, %v2588_v4  ;;  %3969 = vmatpush3.msra.mxu1 %v3195_v37 }
 0x28d   : > { %vm2606_vm5 = vc.u32 %v5721_v43, %v5711_v9  ;;  %v2876_v0 = vsub.s32 32, %v2875_v48  ;;  %v5748_v28 = vshll.u32 %v2869_v24, 8  ;;  %v5752_v60 = vand.u32 8388607, %v2757_v63 }
 0x28e   : > { %v2608_v10 = vsel %vm2606_vm5, %v2607_v52, %v5712_v2  ;;  %v2719_v51 = vsub.s32 0, %v5740_v17  ;;  %v2874_v23 = vshrl.u32 %v2873_v53, 5  ;;  %v5755_v49 = vadd.s32 4294967169, %v2761_v6 }
 0x28f   : > { %v2609_v14 = vadd.s32 %v2608_v10, %v2604_v31  ;;  %v2742_v32 = vsel %vm5728_vm8, 0, %v2740_v59  ;;  %v2878_v16 = vshll.u32 %v4398_v38, %v2875_v48  ;;  %v2879_v36 = vshrl.u32 %v4399_v40, %v2876_v0 }
 0x290   : > { %v2882_v27 = vshrl.u32 %v4400_v42, %v2876_v0  ;;  %v3773_v29 = vmin.u32 %v2719_v51, %v5740_v17  ;;  %v2881_v41 = vshll.u32 %v4399_v40, %v2875_v48  ;;  %v2885_v7 = vshrl.u32 %v4401_v44, %v2876_v0 }
 0x291   : > { %v2610_v18 = vadd.s32 536870912, %v2609_v14  ;;  %v2880_v22 = vor.u32 %v2879_v36, %v2878_v16  ;;  %v2884_v11 = vshll.u32 %v4400_v42, %v2875_v48  ;;  %v2887_v26 = vshll.u32 %v4401_v44, %v2875_v48 }
 0x292   : > { %v2888_v2 = vshrl.u32 %v4402_v46, %v2876_v0  ;;  %v2721_v62 = vclz %v3773_v29  ;;  %v2746_v35 = vadd.s32 3, %v2742_v32  ;;  %v2877_v4 = vshrl.u32 %v4398_v38, %v2876_v0 }
 0x293   : > { %v2883_v24 = vor.u32 %v2882_v27, %v2881_v41  ;;  %v5775_v53 = vshrl.u32 %v2610_v18, 30  ;;  %v2886_v61 = vor.u32 %v2885_v7, %v2884_v11  ;;  %v2890_v6 = vshll.u32 %v4402_v46, %v2875_v48 }
 0x294   : > { %v2889_v13 = vor.u32 %v2888_v2, %v2887_v26  ;;  %v3774_v52 = vadd.s32 4294967294, %v2721_v62  ;;  %v2891_v59 = vshrl.u32 %v4403_v54, %v2876_v0  ;;  %vm2893_vm10 = vcmp.lt.s32.totalorder %v2874_v23, 1 }
 0x295   : > { %vm2894_vm11 = vcmp.lt.s32.totalorder %v2874_v23, 2  ;;  %v2612_v31 = vshll.u32 %v5775_v53, 30  ;;  %vm2895_vm13 = vcmp.lt.s32.totalorder %v2874_v23, 3  ;;  %vm2896_vm9 = vcmp.lt.s32.totalorder %v2874_v23, 4 }
 0x296   : > { %v2897_v10 = vsel %vm2893_vm10, %v2877_v4, %v2880_v22  ;;  %vm3775_vm14 = vcmp.lt.s32.totalorder %v3774_v52, 0  ;;  %v2892_v51 = vor.u32 %v2891_v59, %v2890_v6  ;;  %v2898_v32 = vsel %vm2896_vm9, %v2886_v61, 2102212464 }
 0x297   : > { %v2901_v16 = vsel %vm2893_vm10, %v2880_v22, %v2883_v24  ;;  %v2724_v48 = vsel %vm3775_vm14, 0, %v3774_v52  ;;  %v5783_v36 = vsub.s32 %v2609_v14, %v2612_v31  ;;  %v2899_v0 = vsel %vm2895_vm13, %v2883_v24, %v2898_v32 }
 0x298   : > { %v2902_v27 = vsel %vm2896_vm9, %v2889_v13, 920167782  ;;  %v2725_v29 = vsub.s32 32, %v2724_v48  ;;  %v2726_v18 = vshll.u32 %v5740_v17, %v2724_v48  ;;  %v2729_v41 = vsub.s32 4294967266, %v2724_v48 }
 0x299   : > { %v2900_v7 = vsel %vm2894_vm11, %v2897_v10, %v2899_v0  ;;  %v2615_v55 = vsub.s32 0, %v5783_v36  ;;  %v2903_v37 = vsel %vm2895_vm13, %v2886_v61, %v2902_v27  ;;  %v2905_v11 = vsel %vm2893_vm10, %v2883_v24, %v2886_v61 }
 0x29a   : > { %v2906_v22 = vsel %vm2896_vm9, %v2892_v51, 1326507024  ;;  %v2727_v14 = vshrl.u32 %v5733_v20, %v2725_v29  ;;  %v2730_v26 = vadd.s32 127, %v2729_v41  ;;  %v2904_v2 = vsel %vm2894_vm11, %v2901_v16, %v2903_v37 }
 0x29b   : > { %v2907_v62 = vsel %vm2895_vm13, %v2889_v13, %v2906_v22  ;;  %v3769_v17 = vmin.u32 %v2615_v55, %v5783_v36  ;;  %v5799_v6 = vmul.u32.u64.low %v5748_v28, %v2904_v2  ;;  %v5800_v52 = vmul.u32.u64.high %v5748_v28, %v2904_v2, %v5799_v6 }
 0x29c   : > { %v2908_v4 = vsel %vm2894_vm11, %v2905_v11, %v2907_v62  ;;  %v2728_v59 = vor.u32 %v2727_v14, %v2726_v18  ;;  %v2731_v24 = vshll.u32 %v2730_v26, 23  ;;  %v2765_v10 = vor.u32 8388608, %v5752_v60 }
 0x29d   : > { %v5804_v61 = vmul.u32.u64.low %v5748_v28, %v2908_v4  ;;  %v5805_v31 = vmul.u32.u64.high %v5748_v28, %v2908_v4, %v5804_v61  ;;  %v2617_v20 = vclz %v3769_v17  ;;  %v2767_v13 = vadd.s32 1, %v5755_v49 }
 0x29e   : > { %v3069_v51 = vand.u32 2147483647, %v5738_v21  ;;  %v2732_v23 = vor.u32 4788187, %v2731_v24  ;;  %v5810_v32 = vand.u32 3, %v2746_v35  ;;  %v2605_v16 = vadd.s32 %v5711_v9, %v5721_v43 }
 0x29f   : > { %v2916_v48 = vmul.u32 %v5748_v28, %v2900_v7  ;;  %v3770_v0 = vadd.s32 4294967294, %v2617_v20  ;;  %v2919_v27 = vadd.s32 1, %v5800_v52  ;;  %vm2768_vm12 = vcmp.gt.s32.totalorder %v2767_v13, 0 }
 0x2a0   : > { %v3072_v29 = vand.u32 2139095040, %v5738_v21  ;;  %v2733_v18 = vand.u32 2147483647, %v2732_v23  ;;  %v2735_v60 = vcvt.s32.f32 %v2728_v59  ;;  %vm2918_vm15 = vc.u32 %v5805_v31, %v5799_v6 }
 0x2a1   : > { %v2769_v49 = vsel %vm2768_vm12, %v2767_v13, 0  ;;  %vm3771_vm0 = vcmp.lt.s32.totalorder %v3770_v0, 0  ;;  %v2920_v35 = vsel %vm2918_vm15, %v2919_v27, %v5800_v52  ;;  %v5820_v55 = vshll.u32 %v2765_v10, 8 }
 0x2a2   : > { %v2771_v41 = vand.u32 31, %v2769_v49  ;;  %v2736_v9 = vmul.f32 %v2735_v60, %v2733_v18  ;;  %v2620_v43 = vsel %vm3771_vm0, 0, %v3770_v0  ;;  %v2921_v28 = vadd.s32 %v2920_v35, %v2916_v48 }
 0x2a3   : > { %v5822_v7 = vshrl.u32 %v2769_v49, 5  ;;  %v2621_v37 = vsub.s32 32, %v2620_v43  ;;  %v2625_v11 = vsub.s32 4294967266, %v2620_v43  ;;  %v3073_v14 = vshrl.u32 %v3072_v29, 23 }
 0x2a4   : > { %v2772_v22 = vsub.s32 32, %v2771_v41  ;;  %v2737_v26 = vxor.u32 2147483648, %v2736_v9  ;;  %v2622_v2 = vshll.u32 %v5783_v36, %v2620_v43  ;;  %v2922_v62 = vadd.s32 536870912, %v2921_v28 }
 0x2a5   : > { %v2774_v17 = vshll.u32 %v4398_v38, %v2771_v41  ;;  %v2623_v4 = vshrl.u32 %v2605_v16, %v2621_v37  ;;  %v2626_v52 = vadd.s32 127, %v2625_v11  ;;  %v2777_v24 = vshll.u32 %v4399_v40, %v2771_v41 }
 0x2a6   : > { %v2775_v59 = vshrl.u32 %v4399_v40, %v2772_v22  ;;  %v2738_v61 = vsel %vm2655_vm2, %v2737_v26, %v2736_v9  ;;  %v5830_v20 = vshrl.u32 %v2922_v62, 30  ;;  %v2773_v10 = vshrl.u32 %v4398_v38, %v2772_v22 }
 0x2a7   : > { %v2778_v13 = vshrl.u32 %v4400_v42, %v2772_v22  ;;  %v2741_v36 = vsel %vm5728_vm8, %v5610_v33, %v2738_v61  ;;  %v2624_v23 = vor.u32 %v2623_v4, %v2622_v2  ;;  %v2627_v16 = vshll.u32 %v2626_v52, 23 }
 0x2a8   : > { %v2780_v48 = vshll.u32 %v4400_v42, %v2771_v41  ;;  %4230 = vcosq.f32 %v2741_v36  ;;  %v2924_v0 = vshll.u32 %v5830_v20, 30  ;;  %v2776_v27 = vor.u32 %v2775_v59, %v2774_v17 }
 0x2a9   : > { %v2781_v29 = vshrl.u32 %v4401_v44, %v2772_v22  ;;  %4232 = vsinq.f32 %v2741_v36  ;;  %vm2551_vm1 = vcmp.lt.s32.totalorder %v5619_v56, 0  ;;  %v2628_v18 = vor.u32 4788187, %v2627_v16 }
 0x2aa   : > { %v2631_v60 = vcvt.s32.f32 %v2624_v23  ;;  %v2779_v49 = vor.u32 %v2778_v13, %v2777_v24  ;;  %v5841_v35 = vsub.s32 %v2921_v28, %v2924_v0  ;;  %v2783_v9 = vshll.u32 %v4401_v44, %v2771_v41 }
 0x2ab   : > { %v2782_v57 = vor.u32 %v2781_v29, %v2780_v48  ;;  %v2784_v43 = vshrl.u32 %v4402_v46, %v2772_v22  ;;  %v2629_v37 = vand.u32 2147483647, %v2628_v18  ;;  %v2786_v11 = vshll.u32 %v4402_v46, %v2771_v41 }
 0x2ac   : > { %v2787_v26 = vshrl.u32 %v4403_v54, %v2772_v22  ;;  %vm2789_vm2 = vcmp.lt.s32.totalorder %v5822_v7, 1  ;;  %v2927_v2 = vsub.s32 0, %v5841_v35  ;;  %vm2791_vm3 = vcmp.lt.s32.totalorder %v5822_v7, 3 }
 0x2ad   : > { %v2785_v62 = vor.u32 %v2784_v43, %v2783_v9  ;;  %vm2792_vm4 = vcmp.lt.s32.totalorder %v5822_v7, 4  ;;  %v2632_v28 = vmul.f32 %v2631_v60, %v2629_v37  ;;  %v2793_v4 = vsel %vm2789_vm2, %v2773_v10, %v2776_v27 }
 0x2ae   : > { %v2788_v17 = vor.u32 %v2787_v26, %v2786_v11  ;;  %v2794_v52 = vsel %vm2792_vm4, %v2782_v57, 2102212464  ;;  %v3781_v41 = vmin.u32 %v2927_v2, %v5841_v35  ;;  %v2797_v59 = vsel %vm2789_vm2, %v2776_v27, %v2779_v49 }
 0x2af   : > { %v2795_v22 = vsel %vm2791_vm3, %v2779_v49, %v2794_v52  ;;  %v2798_v24 = vsel %vm2792_vm4, %v2785_v62, 920167782  ;;  %v2633_v61 = vxor.u32 2147483648, %v2632_v28  ;;  %vm2790_vm6 = vcmp.lt.s32.totalorder %v5822_v7, 2 }
 0x2b0   : > { %v2799_v10 = vsel %vm2791_vm3, %v2782_v57, %v2798_v24  ;;  %v2801_v13 = vsel %vm2789_vm2, %v2779_v49, %v2782_v57  ;;  %vm5869_vm8 = vcmp.le.f32.partialorder %v2549_v39, 0.7853982  ;;  %v2929_v23 = vclz %v3781_v41 }
 0x2b1   : > { %v2800_v16 = vsel %vm2790_vm6, %v2797_v59, %v2799_v10  ;;  %v2802_v48 = vsel %vm2792_vm4, %v2788_v17, 1326507024  ;;  %v2796_v0 = vsel %vm2790_vm6, %v2793_v4, %v2795_v22  ;;  %v2634_v60 = vsel %vm2551_vm1, %v2633_v61, %v2632_v28  ;;  %v2514_v10 = vpop.f32.mrf.mxu0 }
 0x2b2   : > { %v2803_v27 = vsel %vm2791_vm3, %v2785_v62, %v2802_v48  ;;  %v5878_v29 = vmul.u32.u64.low %v5820_v55, %v2800_v16  ;;  %v5879_v18 = vmul.u32.u64.high %v5820_v55, %v2800_v16, %v5878_v29  ;;  %v3782_v39 = vadd.s32 4294967294, %v2929_v23 }
 0x2b3   : > { %v2804_v49 = vsel %vm2790_vm6, %v2801_v13, %v2803_v27  ;;  %v3788_v57 = vadd.s32 4294967169, %v3073_v14  ;;  %vm2749_vm5 = vcmp.eq.s32.totalorder %v5810_v32, 0  ;;  %v3076_v7 = vand.u32 8388607, %v3069_v51 }
 0x2b4   : > { %v5885_v9 = vmul.u32.u64.low %v5820_v55, %v2804_v49  ;;  %v5886_v43 = vmul.u32.u64.high %v5820_v55, %v2804_v49, %v5885_v9  ;;  %vm2745_vm10 = vweird.f32 %v5610_v33  ;;  %vm2752_vm11 = vcmp.eq.s32.totalorder %v5810_v32, 2 }
 0x2b5   : > { %v2917_v37 = vadd.s32 %v5799_v6, %v5805_v31  ;;  %vm3783_vm13 = vcmp.lt.s32.totalorder %v3782_v39, 0  ;;  %v3079_v11 = vadd.s32 1, %v3788_v57  ;;  %v4231_v26 = vpop.eup %4230  ;;  %v2637_v14 = vsel %vm5869_vm8, %v5619_v56, %v2634_v60 }
 0x2b6   : > { %v2932_v2 = vsel %vm3783_vm13, 0, %v3782_v39  ;;  %v2812_v62 = vmul.u32 %v5820_v55, %v2796_v0  ;;  %v2815_v28 = vadd.s32 1, %v5879_v18  ;;  %v4233_v17 = vpop.eup %4232  ;;  %v2753_v4 = vxor.u32 2147483648, %v4231_v26 }
 0x2b7   : > { %v2933_v52 = vsub.s32 32, %v2932_v2  ;;  %v2937_v41 = vsub.s32 4294967266, %v2932_v2  ;;  %v3077_v22 = vor.u32 8388608, %v3076_v7  ;;  %v2750_v59 = vxor.u32 2147483648, %v4233_v17 }
 0x2b8   : > { %v2934_v6 = vshll.u32 %v5841_v35, %v2932_v2  ;;  %vm2814_vm9 = vc.u32 %v5886_v43, %v5878_v29  ;;  %vm3080_vm14 = vcmp.gt.s32.totalorder %v3079_v11, 0  ;;  %v2754_v31 = vsel %vm2752_vm11, %v2753_v4, %v4233_v17 }
 0x2b9   : > { %v2935_v24 = vshrl.u32 %v2917_v37, %v2933_v52  ;;  %v2938_v61 = vadd.s32 127, %v2937_v41  ;;  %v2816_v55 = vsel %vm2814_vm9, %v2815_v28, %v5879_v18  ;;  %vm2748_vm12 = vcmp.lt.s32.totalorder %v5810_v32, 2 }
 0x2ba   : > { %v2751_v13 = vsel %vm2749_vm5, %v4231_v26, %v2750_v59  ;;  %v2817_v23 = vadd.s32 %v2816_v55, %v2812_v62  ;;  %v3081_v16 = vsel %vm3080_vm14, %v3079_v11, 0  ;;  %4234 = vcosq.f32 %v2637_v14 }
 0x2bb   : > { %v2755_v48 = vsel %vm2748_vm12, %v2751_v13, %v2754_v31  ;;  %v2936_v35 = vor.u32 %v2935_v24, %v2934_v6  ;;  %v2939_v0 = vshll.u32 %v2938_v61, 23  ;;  %4236 = vsinq.f32 %v2637_v14 }
 0x2bc   : > { %v2818_v27 = vadd.s32 536870912, %v2817_v23  ;;  %v3083_v60 = vand.u32 31, %v3081_v16  ;;  %v2527_v39 = vadd.f32 %v2514_v10, %v5640_v25  ;;  %vm2863_vm15 = vcmp.lt.s32.totalorder %v5630_v15, 0 }
 0x2bd   : > { %v2940_v18 = vor.u32 4788187, %v2939_v0  ;;  %v5910_v49 = vadd.s32 %v5878_v29, %v5886_v43  ;;  %v5912_v57 = vshll.u32 %v3077_v22, 8  ;;  %v2635_v32 = vsub.s32 4, %v5775_v53 }
 0x2be   : > { %v2756_v9 = vsel %vm2745_vm10, nan, %v2755_v48  ;;  %v5917_v7 = vshrl.u32 %v2818_v27, 30  ;;  %v3082_v37 = vshrl.u32 %v3081_v16, 5  ;;  %v3084_v11 = vsub.s32 32, %v3083_v60 }
 0x2bf   : > { %v2941_v26 = vand.u32 2147483647, %v2940_v18  ;;  %v2943_v14 = vcvt.s32.f32 %v2936_v35  ;;  %v3086_v25 = vshll.u32 %v4398_v38, %v3083_v60  ;;  %v3089_v2 = vshll.u32 %v4399_v40, %v3083_v60 }
 0x2c0   : > { %vm5923_vm0 = vcmp.le.f32.partialorder %v2861_v30, 0.7853982  ;;  %v2820_v43 = vshll.u32 %v5917_v7, 30  ;;  %v3087_v33 = vshrl.u32 %v4399_v40, %v3084_v11  ;;  %v3090_v62 = vshrl.u32 %v4400_v42, %v3084_v11 }
 0x2c1   : > { %v3092_v28 = vshll.u32 %v4400_v42, %v3083_v60  ;;  %v2944_v17 = vmul.f32 %v2943_v14, %v2941_v26  ;;  %v3093_v4 = vshrl.u32 %v4401_v44, %v3084_v11  ;;  %v3095_v52 = vshll.u32 %v4401_v44, %v3083_v60 }
 0x2c2   : > { %v3096_v41 = vshrl.u32 %v4402_v46, %v3084_v11  ;;  %v5934_v22 = vsub.s32 %v2817_v23, %v2820_v43  ;;  %v3088_v30 = vor.u32 %v3087_v33, %v3086_v25  ;;  %v3091_v59 = vor.u32 %v3090_v62, %v3089_v2 }
 0x2c3   : > { %v3098_v6 = vshll.u32 %v4402_v46, %v3083_v60  ;;  %v2945_v31 = vxor.u32 2147483648, %v2944_v17  ;;  %v3094_v24 = vor.u32 %v3093_v4, %v3092_v28  ;;  %v3099_v55 = vshrl.u32 %v4403_v54, %v3084_v11 }
 0x2c4   : > { %v3097_v61 = vor.u32 %v3096_v41, %v3095_v52  ;;  %v3174_v10 = vmul.f32 %v2756_v9, %v2756_v9  ;;  %v2823_v13 = vsub.s32 0, %v5934_v22  ;;  %vm3104_vm2 = vcmp.lt.s32.totalorder %v3082_v37, 4 }
 0x2c5   : > { %v5940_v16 = vadd.f32 %v5600_v19, %v2527_v39  ;;  %v3085_v48 = vshrl.u32 %v4398_v38, %v3084_v11  ;;  %v3100_v23 = vor.u32 %v3099_v55, %v3098_v6  ;;  %vm3101_vm3 = vcmp.lt.s32.totalorder %v3082_v37, 1 }
 0x2c6   : > { %v3106_v35 = vsel %vm3104_vm2, %v3094_v24, 2102212464  ;;  %v2946_v0 = vsel %vm2863_vm15, %v2945_v31, %v2944_v17  ;;  %v3777_v27 = vmin.u32 %v2823_v13, %v5934_v22  ;;  %vm3102_vm4 = vcmp.lt.s32.totalorder %v3082_v37, 2 }
 0x2c7   : > { %v3109_v60 = vsel %vm3101_vm3, %v3088_v30, %v3091_v59  ;;  %vm3103_vm6 = vcmp.lt.s32.totalorder %v3082_v37, 3  ;;  %v3105_v18 = vsel %vm3101_vm3, %v3085_v48, %v3088_v30  ;;  %v3110_v9 = vsel %vm3104_vm2, %v3097_v61, 920167782  ;;  %v5948_v19 = vpop.eup %4234 }
 0x2c8   : > { %v3113_v26 = vsel %vm3101_vm3, %v3091_v59, %v3094_v24  ;;  %v2825_v39 = vclz %v3777_v27  ;;  %v3107_v11 = vsel %vm3103_vm6, %v3091_v59, %v3106_v35  ;;  %v3111_v14 = vsel %vm3103_vm6, %v3094_v24, %v3110_v9  ;;  %v4237_v2 = vpop.eup %4236 }
 0x2c9   : > { %v3114_v25 = vsel %vm3104_vm2, %v3100_v23, 1326507024  ;;  %v2949_v43 = vsel %vm5923_vm0, %v5630_v15, %v2946_v0  ;;  %v3112_v33 = vsel %vm3102_vm4, %v3109_v60, %v3111_v14  ;;  %v5957_v28 = vmul.f32 %v5603_v47, %v5940_v16 }
 0x2ca   : > { %v3115_v62 = vsel %vm3103_vm6, %v3097_v61, %v3114_v25  ;;  %v3778_v17 = vadd.s32 4294967294, %v2825_v39  ;;  %v5961_v52 = vmul.u32.u64.low %v5912_v57, %v3112_v33  ;;  %v5962_v41 = vmul.u32.u64.high %v5912_v57, %v3112_v33, %v5961_v52 }
 0x2cb   : > { %v3116_v4 = vsel %vm3102_vm4, %v3113_v26, %v3115_v62  ;;  %v3108_v30 = vsel %vm3102_vm4, %v3105_v18, %v3107_v11  ;;  %v2965_v31 = vand.u32 2147483647, %v5957_v28  ;;  %4238 = vcosq.f32 %v2949_v43 }
 0x2cc   : > { %v5967_v59 = vmul.u32.u64.low %v5912_v57, %v3116_v4  ;;  %v5968_v6 = vmul.u32.u64.high %v5912_v57, %v3116_v4, %v5967_v59  ;;  %vm3779_vm5 = vcmp.lt.s32.totalorder %v3778_v17, 0  ;;  %v2968_v47 = vand.u32 2139095040, %v5957_v28 }
 0x2cd   : > { %v2636_v24 = vsel %vm2551_vm1, %v2635_v32, %v5775_v53  ;;  %v5978_v61 = vmul.f32 %v5643_v8, %v3174_v10  ;;  %4240 = vsinq.f32 %v2949_v43  ;;  %vm2759_vm10 = vcmp.lt.s32.totalorder %v5659_v50, 0 }
 0x2ce   : > { %v2828_v37 = vsel %vm3779_vm5, 0, %v3778_v17  ;;  %v2638_v55 = vsel %vm5869_vm8, 0, %v2636_v24  ;;  %v3124_v23 = vmul.u32 %v5912_v57, %v3108_v30  ;;  %v3127_v35 = vadd.s32 1, %v5962_v41 }
 0x2cf   : > { %v2829_v13 = vsub.s32 32, %v2828_v37  ;;  %v2833_v48 = vsub.s32 4294967266, %v2828_v37  ;;  %vm5987_vm11 = vcmp.le.f32.partialorder %v2757_v63, 0.7853982  ;;  %v2830_v32 = vshll.u32 %v5934_v22, %v2828_v37 }
 0x2d0   : > { %vm3126_vm1 = vc.u32 %v5968_v6, %v5961_v52  ;;  %v2969_v10 = vshrl.u32 %v2968_v47, 23  ;;  %v2972_v36 = vand.u32 8388607, %v2965_v31  ;;  %v2642_v60 = vadd.s32 3, %v2638_v55 }
 0x2d1   : > { %v2831_v0 = vshrl.u32 %v5910_v49, %v2829_v13  ;;  %v2834_v57 = vadd.s32 127, %v2833_v48  ;;  %v3128_v27 = vsel %vm3126_vm1, %v3127_v35, %v5962_v41  ;;  %vm2641_vm8 = vweird.f32 %v5619_v56 }
 0x2d2   : > { %v3129_v18 = vadd.s32 %v3128_v27, %v3124_v23  ;;  %v3784_v63 = vadd.s32 4294967169, %v2969_v10  ;;  %v2646_v9 = vxor.u32 2147483648, %v4237_v2  ;;  %v2643_v39 = vand.u32 3, %v2642_v60 }
 0x2d3   : > { %v2832_v26 = vor.u32 %v2831_v0, %v2830_v32  ;;  %v2835_v22 = vshll.u32 %v2834_v57, 23  ;;  %v2649_v11 = vxor.u32 2147483648, %v5948_v19  ;;  %v2973_v25 = vor.u32 8388608, %v2972_v36 }
 0x2d4   : > { %v3130_v14 = vadd.s32 536870912, %v3129_v18  ;;  %v2975_v43 = vadd.s32 1, %v3784_v63  ;;  %v2843_v33 = vsub.s32 4, %v5917_v7  ;;  %vm2644_vm13 = vcmp.lt.s32.totalorder %v2643_v39, 2 }
 0x2d5   : > { %v2836_v49 = vor.u32 4788187, %v2835_v22  ;;  %v2839_v62 = vcvt.s32.f32 %v2832_v26  ;;  %vm2645_vm9 = vcmp.eq.s32.totalorder %v2643_v39, 0  ;;  %vm2648_vm12 = vcmp.eq.s32.totalorder %v2643_v39, 2 }
 0x2d6   : > { %v6001_v17 = vshrl.u32 %v3130_v14, 30  ;;  %vm2976_vm14 = vcmp.gt.s32.totalorder %v2975_v43, 0  ;;  %v2647_v4 = vsel %vm2645_vm9, %v5948_v19, %v2646_v9  ;;  %v2650_v59 = vsel %vm2648_vm12, %v2649_v11, %v4237_v2 }
 0x2d7   : > { %v2837_v41 = vand.u32 2147483647, %v2836_v49  ;;  %v2977_v30 = vsel %vm2976_vm14, %v2975_v43, 0  ;;  %v6007_v47 = vsel %vm2759_vm10, %v2843_v33, %v5917_v7  ;;  %v6010_v55 = vshll.u32 %v2973_v25, 8 }
 0x2d8   : > { %v3132_v24 = vshll.u32 %v6001_v17, 30  ;;  %v2979_v37 = vand.u32 31, %v2977_v30  ;;  %v2651_v13 = vsel %vm2644_vm13, %v2647_v4, %v2650_v59  ;;  %v2978_v23 = vshrl.u32 %v2977_v30, 5  ;;  %v6017_v35 = vpop.eup %4238 }
 0x2d9   : > { %v2840_v48 = vmul.f32 %v2839_v62, %v2837_v41  ;;  %v2652_v19 = vsel %vm2641_vm8, nan, %v2651_v13  ;;  %v2846_v2 = vsel %vm5987_vm11, 0, %v6007_v47  ;;  %v2947_v36 = vsub.s32 4, %v5830_v20 }
 0x2da   : > { %v6019_v32 = vsub.s32 %v3129_v18, %v3132_v24  ;;  %v2980_v7 = vsub.s32 32, %v2979_v37  ;;  %v2982_v10 = vshll.u32 %v4398_v38, %v2979_v37  ;;  %v6023_v0 = vpop.eup %4240  ;;  %v2985_v27 = vshll.u32 %v4399_v40, %v2979_v37 }
 0x2db   : > { %v2841_v57 = vxor.u32 2147483648, %v2840_v48  ;;  %v2988_v56 = vshll.u32 %v4400_v42, %v2979_v37  ;;  %v2991_v60 = vshll.u32 %v4401_v44, %v2979_v37  ;;  %v2994_v26 = vshll.u32 %v4402_v46, %v2979_v37 }
 0x2dc   : > { %v3135_v63 = vsub.s32 0, %v6019_v32  ;;  %v2983_v9 = vshrl.u32 %v4399_v40, %v2980_v7  ;;  %v2986_v18 = vshrl.u32 %v4400_v42, %v2980_v7  ;;  %v2989_v39 = vshrl.u32 %v4401_v44, %v2980_v7 }
 0x2dd   : > { %v2842_v22 = vsel %vm2759_vm10, %v2841_v57, %v2840_v48  ;;  %v2992_v11 = vshrl.u32 %v4402_v46, %v2980_v7  ;;  %v2995_v14 = vshrl.u32 %v4403_v54, %v2980_v7  ;;  %v2981_v44 = vshrl.u32 %v4398_v38, %v2980_v7 }
 0x2de   : > { %v2845_v25 = vsel %vm5987_vm11, %v5659_v50, %v2842_v22  ;;  %v3789_v43 = vmin.u32 %v3135_v63, %v6019_v32  ;;  %v2984_v40 = vor.u32 %v2983_v9, %v2982_v10  ;;  %v2987_v33 = vor.u32 %v2986_v18, %v2985_v27 }
 0x2df   : > { %4242 = vcosq.f32 %v2845_v25  ;;  %v2990_v42 = vor.u32 %v2989_v39, %v2988_v56  ;;  %v2993_v49 = vor.u32 %v2992_v11, %v2991_v60  ;;  %v2996_v62 = vor.u32 %v2995_v14, %v2994_v26 }
 0x2e0   : > { %4244 = vsinq.f32 %v2845_v25  ;;  %v3137_v4 = vclz %v3789_v43  ;;  %vm2997_vm2 = vcmp.lt.s32.totalorder %v2978_v23, 1  ;;  %vm2998_vm3 = vcmp.lt.s32.totalorder %v2978_v23, 2 }
 0x2e1   : > { %vm2999_vm4 = vcmp.lt.s32.totalorder %v2978_v23, 3  ;;  %vm3000_vm6 = vcmp.lt.s32.totalorder %v2978_v23, 4  ;;  %v3005_v46 = vsel %vm2997_vm2, %v2984_v40, %v2987_v33  ;;  %v3009_v30 = vsel %vm2997_vm2, %v2987_v33, %v2990_v42 }
 0x2e2   : > { %v3790_v54 = vadd.s32 4294967294, %v3137_v4  ;;  %v3002_v53 = vsel %vm3000_vm6, %v2990_v42, 2102212464  ;;  %v3006_v41 = vsel %vm3000_vm6, %v2993_v49, 920167782  ;;  %v3001_v59 = vsel %vm2997_vm2, %v2981_v44, %v2984_v40 }
 0x2e3   : > { %v3007_v47 = vsel %vm2999_vm4, %v2990_v42, %v3006_v41  ;;  %v3010_v24 = vsel %vm3000_vm6, %v2996_v62, 1326507024  ;;  %v3173_v37 = vmul.f32 %v2652_v19, %v2652_v19  ;;  %v3003_v13 = vsel %vm2999_vm4, %v2987_v33, %v3002_v53 }
 0x2e4   : > { %vm3791_vm5 = vcmp.lt.s32.totalorder %v3790_v54, 0  ;;  %v3008_v48 = vsel %vm2998_vm3, %v3005_v46, %v3007_v47  ;;  %v3011_v10 = vsel %vm2999_vm4, %v2993_v49, %v3010_v24  ;;  %v2850_v18 = vadd.s32 3, %v2846_v2 }
 0x2e5   : > { %v3140_v57 = vsel %vm3791_vm5, 0, %v3790_v54  ;;  %v3012_v38 = vsel %vm2998_vm3, %v3009_v30, %v3011_v10  ;;  %v6045_v7 = vmul.u32.u64.low %v6010_v55, %v3008_v48  ;;  %v6046_v27 = vmul.u32.u64.high %v6010_v55, %v3008_v48, %v6045_v7 }
 0x2e6   : > { %v3141_v56 = vsub.s32 32, %v3140_v57  ;;  %v3145_v60 = vsub.s32 4294967266, %v3140_v57  ;;  %v6050_v63 = vmul.u32.u64.low %v6010_v55, %v3012_v38  ;;  %v6051_v9 = vmul.u32.u64.high %v6010_v55, %v3012_v38, %v6050_v63 }
 0x2e7   : > { %v3183_v19 = vmul.f32 %v5643_v8, %v3173_v37  ;;  %v3125_v26 = vadd.s32 %v5961_v52, %v5968_v6  ;;  %v3004_v39 = vsel %vm2998_vm3, %v3001_v59, %v3003_v13  ;;  %v2948_v11 = vsel %vm2863_vm15, %v2947_v36, %v5830_v20 }
 0x2e8   : > { %v3146_v22 = vadd.s32 127, %v3145_v60  ;;  %v3190_v14 = vadd.f32 %v5978_v61, %v5606_v58  ;;  %v3023_v25 = vadd.s32 1, %v6046_v27  ;;  %v2950_v2 = vsel %vm5923_vm0, 0, %v2948_v11 }
 0x2e9   : > { %v3189_v43 = vadd.f32 %v3183_v19, %v5613_v45  ;;  %v3143_v40 = vshrl.u32 %v3125_v26, %v3141_v56  ;;  %v2851_v52 = vand.u32 3, %v2850_v18  ;;  %v2954_v6 = vadd.s32 3, %v2950_v2 }
 0x2ea   : > { %v3147_v33 = vshll.u32 %v3146_v22, 23  ;;  %v3020_v23 = vmul.u32 %v6010_v55, %v3004_v39  ;;  %vm3022_vm10 = vc.u32 %v6051_v9, %v6045_v7  ;;  %v3142_v58 = vshll.u32 %v6019_v32, %v3140_v57 }
 0x2eb   : > { %3970 = vmatprep.mubr.msk.f32.mxu1 %vm1173_vm7, %v3189_v43  ;;  %v3024_v61 = vsel %vm3022_vm10, %v3023_v25, %v6046_v27  ;;  %vm2849_vm15 = vweird.f32 %v5659_v50  ;;  %v2958_v45 = vxor.u32 2147483648, %v6023_v0  ;;  %v2955_v55 = vand.u32 3, %v2954_v6 }
 0x2ec   : > { %v4243_v20 = vpop.eup %4242  ;;  %3971 = vmatmul.mubr.msk.f32.vlgmr.msra.gmra.mxu1 %vm1173_vm7, %v3190_v14  ;;  %v3025_v36 = vadd.s32 %v3024_v61, %v3020_v23  ;;  %v2961_v49 = vxor.u32 2147483648, %v6017_v35  ;;  %v3144_v62 = vor.u32 %v3143_v40, %v3142_v58  ;;  %v3148_v4 = vor.u32 4788187, %v3147_v33 }
 0x2ed   : > { %v4245_v29 = vpop.eup %4244  ;;  %v2857_v42 = vxor.u32 2147483648, %v4243_v20  ;;  %vm2856_vm0 = vcmp.eq.s32.totalorder %v2851_v52, 2  ;;  %vm2853_vm11 = vcmp.eq.s32.totalorder %v2851_v52, 0  ;;  %vm2957_vm1 = vcmp.eq.s32.totalorder %v2955_v55, 0 }
 0x2ee   : > { %v2854_v44 = vxor.u32 2147483648, %v4245_v29  ;;  %v3026_v46 = vadd.s32 536870912, %v3025_v36  ;;  %vm2852_vm8 = vcmp.lt.s32.totalorder %v2851_v52, 2  ;;  %v2959_v53 = vsel %vm2957_vm1, %v6017_v35, %v2958_v45 }
 0x2ef   : > { %v2858_v32 = vsel %vm2856_vm0, %v2857_v42, %v4245_v29  ;;  %vm2960_vm13 = vcmp.eq.s32.totalorder %v2955_v55, 2  ;;  %vm2956_vm9 = vcmp.lt.s32.totalorder %v2955_v55, 2  ;;  %v3149_v47 = vand.u32 2147483647, %v3148_v4 }
 0x2f0   : > { %v2855_v54 = vsel %vm2853_vm11, %v4243_v20, %v2854_v44  ;;  %v3027_v41 = vshrl.u32 %v3026_v46, 30  ;;  %v2962_v59 = vsel %vm2960_vm13, %v2961_v49, %v6023_v0  ;;  %vm2953_vm14 = vweird.f32 %v5630_v15 }
 0x2f1   : > { %v2859_v30 = vsel %vm2852_vm8, %v2855_v54, %v2858_v32  ;;  %v2963_v37 = vsel %vm2956_vm9, %v2959_v53, %v2962_v59  ;;  %v3151_v57 = vcvt.s32.f32 %v3144_v62  ;;  %vm3071_vm12 = vcmp.lt.s32.totalorder %v5738_v21, 0 }
 0x2f2   : > { %v2860_v24 = vsel %vm2849_vm15, nan, %v2859_v30  ;;  %v3028_v13 = vshll.u32 %v3027_v41, 30  ;;  %v2964_v10 = vsel %vm2953_vm14, nan, %v2963_v37  ;;  %vm6092_vm3 = vcmp.le.f32.partialorder %v3069_v51, 0.7853982 }
 0x2f3   : > { %v3175_v48 = vmul.f32 %v2860_v24, %v2860_v24  ;;  %v3176_v38 = vmul.f32 %v2964_v10, %v2964_v10  ;;  %v3152_v56 = vmul.f32 %v3151_v57, %v3149_v47  ;;  %v3021_v11 = vadd.s32 %v6045_v7, %v6051_v9 }
 0x2f4   : > { %v3029_v27 = vsub.s32 %v3025_v36, %v3028_v13  ;;  %v3155_v52 = vsub.s32 4, %v6001_v17  ;;  %vm2967_vm4 = vcmp.lt.s32.totalorder %v5957_v28, 0  ;;  %v3051_v45 = vsub.s32 4, %v3027_v41 }
 0x2f5   : > { %v3185_v35 = vmul.f32 %v5643_v8, %v3175_v48  ;;  %v3186_v60 = vmul.f32 %v5643_v8, %v3176_v38  ;;  %v3153_v15 = vxor.u32 2147483648, %v3152_v56  ;;  %vm2966_vm6 = vcmp.le.f32.partialorder %v2965_v31, 0.7853982 }
 0x2f6   : > { %v3031_v63 = vsub.s32 0, %v3029_v27  ;;  %v3156_v58 = vsel %vm3071_vm12, %v3155_v52, %v6001_v17  ;;  %v3052_v17 = vsel %vm2967_vm4, %v3051_v45, %v3027_v41  ;;  %vm3161_vm0 = vweird.f32 %v5738_v21 }
 0x2f7   : > { %v3191_v0 = vadd.f32 %v3185_v35, %v5638_v34  ;;  %v3192_v50 = vadd.f32 %v3186_v60, %v5622_v5  ;;  %v3154_v22 = vsel %vm3071_vm12, %v3153_v15, %v3152_v56  ;;  %v3158_v9 = vsel %vm6092_vm3, 0, %v3156_v58 }
 0x2f8   : > { %v3785_v19 = vmin.u32 %v3031_v63, %v3029_v27  ;;  %v3157_v39 = vsel %vm6092_vm3, %v5738_v21, %v3154_v22  ;;  %v3162_v42 = vadd.s32 3, %v3158_v9  ;;  %v3054_v4 = vsel %vm2966_vm6, 0, %v3052_v17 }
 0x2f9   : > { %3973 = vmatprep.mubr.msk.f32.mxu1 %vm1173_vm7, %v3191_v0  ;;  %4246 = vcosq.f32 %v3157_v39  ;;  %v3058_v32 = vadd.s32 3, %v3054_v4  ;;  %vm3057_vm13 = vweird.f32 %v5957_v28  ;;  %v3317_v0 = vld [vmem:[%s4554_s23 + $0x8] sm:$0xff] }
 0x2fa   : > { %3974 = vmatmul.mubr.msk.f32.gmra.mxu1 %vm1173_vm7, %v3192_v50  ;;  %v3033_v18 = vclz %v3785_v19  ;;  %4248 = vsinq.f32 %v3157_v39  ;;  %v3163_v62 = vand.u32 3, %v3162_v42  ;;  %v3322_v50 = vstv %s3314_s20  ;;  %v3316_v19 = vld [vmem:[%s4554_s23] sm:$0xff] }
 0x2fb   : > { %v3059_v31 = vand.u32 3, %v3058_v32  ;;  %v3324_v15 = vmul.f32 %v3322_v50, %v3317_v0  ;;  %v3323_v34 = vmul.f32 %v3322_v50, %v3316_v19 }
 0x2fc   : > { %v3786_v26 = vadd.s32 4294967294, %v3033_v18  ;;  %vm3165_vm5 = vcmp.eq.s32.totalorder %v3163_v62, 0  ;;  %vm3168_vm10 = vcmp.eq.s32.totalorder %v3163_v62, 2  ;;  %vm3164_vm15 = vcmp.lt.s32.totalorder %v3163_v62, 2 }
 0x2fd   : > { %vm3064_vm11 = vcmp.eq.s32.totalorder %v3059_v31, 2  ;;  %vm3061_vm1 = vcmp.eq.s32.totalorder %v3059_v31, 0  ;;  %vm3060_vm8 = vcmp.lt.s32.totalorder %v3059_v31, 2 }
 0x2fe   : > { %vm3787_vm2 = vcmp.lt.s32.totalorder %v3786_v26, 0 }
 0x2ff   : > { %v3036_v5 = vsel %vm3787_vm2, 0, %v3786_v26 }
 0x300   : > { %v3037_v14 = vsub.s32 32, %v3036_v5  ;;  %v3041_v25 = vsub.s32 4294967266, %v3036_v5  ;;  %v3038_v43 = vshll.u32 %v3029_v27, %v3036_v5 }
 0x302   : > { %v3039_v2 = vshrl.u32 %v3021_v11, %v3037_v14  ;;  %v3042_v40 = vadd.s32 127, %v3041_v25  ;;  %v3318_v14 = vld [vmem:[%s4554_s23 + $0x10] sm:$0xff] }
 0x304   : > { %v3040_v33 = vor.u32 %v3039_v2, %v3038_v43  ;;  %v3043_v51 = vshll.u32 %v3042_v40, 23 }
 0x306   : > { %v3044_v6 = vor.u32 4788187, %v3043_v51  ;;  %v3047_v20 = vcvt.s32.f32 %v3040_v33  ;;  %v4247_v55 = vpop.eup %4246  ;;  %v3325_v51 = vmul.f32 %v3322_v50, %v3318_v14 }
 0x307   : > { %v4249_v49 = vpop.eup %4248  ;;  %v3169_v46 = vxor.u32 2147483648, %v4247_v55 }
 0x308   : > { %v3045_v23 = vand.u32 2147483647, %v3044_v6  ;;  %v3166_v44 = vxor.u32 2147483648, %v4249_v49 }
 0x309   : > { %v3170_v53 = vsel %vm3168_vm10, %v3169_v46, %v4249_v49 }
 0x30a   : > { %v3048_v61 = vmul.f32 %v3047_v20, %v3045_v23  ;;  %v3167_v54 = vsel %vm3165_vm5, %v4247_v55, %v3166_v44  ;;  %v3321_v20 = vld [vmem:[%s4554_s23 + $0x28] sm:$0xff] }
 0x30b   : > { %v3171_v30 = vsel %vm3164_vm15, %v3167_v54, %v3170_v53  ;;  %v3328_v9 = vmul.f32 %v3322_v50, %v3321_v20 }
 0x30c   : > { %v3049_v7 = vxor.u32 2147483648, %v3048_v61  ;;  %v3172_v37 = vsel %vm3161_vm0, nan, %v3171_v30 }
 0x30d   : > { %v3178_v10 = vmul.f32 %v3172_v37, %v3172_v37 }
 0x30e   : > { %v3050_v29 = vsel %vm2967_vm4, %v3049_v7, %v3048_v61  ;;  %v3320_v61 = vld [vmem:[%s4554_s23 + $0x20] sm:$0xff] }
 0x30f   : > { %v3053_v36 = vsel %vm2966_vm6, %v5957_v28, %v3050_v29  ;;  %v3188_v35 = vmul.f32 %v5643_v8, %v3178_v10  ;;  %v3199_v28 = vsub.s32 5, %v4534_v1  ;;  %v3327_v42 = vmul.f32 %v3322_v50, %v3320_v61 }
 0x310   : > { %4250 = vcosq.f32 %v3053_v36 }
 0x311   : > { %4252 = vsinq.f32 %v3053_v36  ;;  %v3194_v60 = vadd.f32 %v3188_v35, %v5717_v12  ;;  %v3200_v63 = vrot.slane %v4544_v3, %v3199_v28  ;;  %v3319_v3 = vld [vmem:[%s4554_s23 + $0x18] sm:$0xff]  ;;  %s3356_s23 = ssub.s32 (%p4494_p5), 19, %s4532_s12 }
 0x312   : > { %v3326_v43 = vmul.f32 %v3322_v50, %v3319_v3  ;;  %p3357_p2 = scmp.lt.s32.totalorder (%p4494_p5), %s3356_s23, 6 }
 0x31d   : > { %v4251_v59 = vpop.eup %4250 }
 0x31e   : > { %v4253_v47 = vpop.eup %4252  ;;  %v3065_v24 = vxor.u32 2147483648, %v4251_v59 }
 0x31f   : > { %v3062_v13 = vxor.u32 2147483648, %v4253_v47 }
 0x320   : > { %v3066_v41 = vsel %vm3064_vm11, %v3065_v24, %v4253_v47 }
 0x321   : > { %v3063_v48 = vsel %vm3061_vm1, %v4251_v59, %v3062_v13 }
 0x322   : > { %v3067_v57 = vsel %vm3060_vm8, %v3063_v48, %v3066_v41 }
 0x323   : > { %v3068_v38 = vsel %vm3057_vm13, nan, %v3067_v57 }
 0x324   : > { %v3177_v27 = vmul.f32 %v3068_v38, %v3068_v38 }
 0x326   : > { %v3187_v21 = vmul.f32 %v5643_v8, %v3177_v27 }
 0x328   : > { %v3193_v56 = vadd.f32 %v3187_v21, %v5940_v16  ;;  %v3329_v16 = vstv %s3798_s11 }
 0x32a   : > { %3976 = vmatprep.mubr.msk.f32.mxu1 %vm1173_vm7, %v3193_v56 }
 0x32b   : > { %3977 = vmatmul.mubr.msk.f32.gmra.mxu1 %vm1173_vm7, %v3194_v60 }
 0x3ac   : > { %v3972_v8 = vpop.f32.mrf.mxu1 }
 0x3ad   : > { %v3291_v12 = vadd.f32 %v3972_v8, %v3200_v63 }
 0x3ae   : > { %v3285_v18 = vpop.f32.mrf.mxu1 }
 0x3af   : > { %v3331_v26 = vmul.f32 %v3329_v16, %v3291_v12  ;;  %v3286_v22 = vadd.f32 %v3285_v18, %v3200_v63 }
 0x3b1   : > { %v3337_v5 = vadd.f32 %v3331_v26, %v3324_v15  ;;  %v3330_v39 = vmul.f32 %v3329_v16, %v3286_v22 }
 0x3b3   : > { %3343 = vst.msk [vmem:[%s5498_s22 + $0x8] sm:$0xff] %vm1173_vm7, %v3337_v5  ;;  %v3336_v1 = vadd.f32 %v3330_v39, %v3323_v34 }
 0x3b5   : > { %3342 = vst.msk [vmem:[%s5498_s22] sm:$0xff] %vm1173_vm7, %v3336_v1 }
 0x3ba   : > { %v3975_v11 = vpop.f32.mrf.mxu1 }
 0x3bb   : > { %v3301_v25 = vadd.f32 %v3975_v11, %v3200_v63 }
 0x3bc   : > { %v3295_v2 = vpop.f32.mrf.mxu1 }
 0x3bd   : > { %v3333_v40 = vmul.f32 %v3329_v16, %v3301_v25  ;;  %v3296_v33 = vadd.f32 %v3295_v2, %v3200_v63 }
 0x3bf   : > { %v3339_v52 = vadd.f32 %v3333_v40, %v3326_v43  ;;  %v3332_v6 = vmul.f32 %v3329_v16, %v3296_v33 }
 0x3c1   : > { %3345 = vst.msk [vmem:[%s5498_s22 + $0x18] sm:$0xff] %vm1173_vm7, %v3339_v52  ;;  %v3338_v23 = vadd.f32 %v3332_v6, %v3325_v51 }
 0x3c3   : > { %3344 = vst.msk [vmem:[%s5498_s22 + $0x10] sm:$0xff] %vm1173_vm7, %v3338_v23 }
 0x3eb   : > { %v3978_v58 = vpop.f32.mrf.mxu1 }
 0x3ec   : > { %v3311_v7 = vadd.f32 %v3978_v58, %v3200_v63 }
 0x3ed   : > { %v3305_v45 = vpop.f32.mrf.mxu1 }
 0x3ee   : > { %v3335_v29 = vmul.f32 %v3329_v16, %v3311_v7  ;;  %v3306_v36 = vadd.f32 %v3305_v45, %v3200_v63 }
 0x3f0   : > { %v3341_v55 = vadd.f32 %v3335_v29, %v3328_v9  ;;  %v3334_v49 = vmul.f32 %v3329_v16, %v3306_v36  ;;  %3354 = sbr.rel (!%p4494_p5) target bundleno = 1066 (0x42a), region = 68 }
 0x3f2   : > { %3347 = vst.msk [vmem:[%s5498_s22 + $0x28] sm:$0xff] %vm1173_vm7, %v3341_v55  ;;  %v3340_v17 = vadd.f32 %v3334_v49, %v3327_v42 }
 0x3f4   : > { %3346 = vst.msk [vmem:[%s5498_s22 + $0x20] sm:$0xff] %vm1173_vm7, %v3340_v17 }
 0x3f5   : > { %s6272_s23 = smov (!%p3357_p2, %s3356_s23), 6 }
 0x3f6   : > { %s3799_s17 = sshll.u32 %s6272_s23, 7 }
 0x3f7   : > { %p3802_p3 = scmp.eq.s32.totalorder %s3799_s17, 0 }
 0x3f8   : > { %4254 = sdivrem.u32 (!%p3802_p3), %s6272_s23, 6 }
 0x3f9   : > { %3367 = sbr.rel (%p3802_p3) target bundleno = 1066 (0x42a), region = 72 }
 0x401   : > { %s6153_s13 = spop.drf %4254 }
 0x402   : > { %p3803_p5 = scmp.le.s32.totalorder %s6153_s13, 0 }
 0x403   : > { %s6248_s27 = smov (!%p3803_p5), %s6150_s15  ;;  %s6249_s12 = smov (!%p3803_p5), %s5498_s22 }
 0x404   : > { %3580 = sbr.rel (%p3803_p5) target bundleno = 1041 (0x411), region = 161  ;;  %s6162_s18 = smov (!%p3803_p5), 0  }
 0x405   : > { %s6164_s19 = smov (!%p3803_p5), 0  }
 0x409 LB: >> { %v3442_v62 = vld [vmem:[%s4371_s12] sm:$0xff]  ;;  %v3444_v4 = vld [vmem:[%s4371_s12 + $0x8] sm:$0xff]  ;;  %v3446_v44 = vld [vmem:[%s4371_s12 + $0x10] sm:$0xff]  ;;  %s3454_s20 = sadd.s32 1, %s4375_s18  ;;  %s3436_s19 = sadd.s32 1, %s4379_s19   ;;  %s4379_s19 = sphi %s6164_s19, %s3436_s19   ;;  %s4375_s18 = sphi %s6162_s18, %s6250_s18   ;;  %s4371_s12 = sphi %s6249_s12, %s3459_s12   ;;  %s4367_s27 = sphi %s6248_s27, %s3460_s27  }
 0x40a   : >> { %3443 = vst [vmem:[%s4367_s27] sm:$0xff] %v3442_v62  ;;  %3445 = vst [vmem:[%s4367_s27 + $0x8] sm:$0xff] %v3444_v4  ;;  %v3448_v46 = vld [vmem:[%s4371_s12 + $0x18] sm:$0xff]  ;;  %v3450_v32 = vld [vmem:[%s4371_s12 + $0x20] sm:$0xff]  ;;  %p3455_p4 = scmp.ge.s32.totalorder %s3454_s20, %s6153_s13  ;;  %p3435_p6 = scmp.ge.s32.totalorder %s3436_s19, %s6153_s13 }
 0x40b   : >> { %3447 = vst [vmem:[%s4367_s27 + $0x10] sm:$0xff] %v3446_v44  ;;  %v3452_v54 = vld [vmem:[%s4371_s12 + $0x28] sm:$0xff]  ;;  %3449 = vst [vmem:[%s4367_s27 + $0x18] sm:$0xff] %v3448_v46 }
 0x40c   : >> { %3451 = vst [vmem:[%s4367_s27 + $0x20] sm:$0xff] %v3450_v32  ;;  %3453 = vst [vmem:[%s4367_s27 + $0x28] sm:$0xff] %v3452_v54  ;;  %s6274_s20 = smov (%p3455_p4, %s3454_s20), 0  ;;  %3438 = sbr.rel (!%p3435_p6) target bundleno = 1033 (0x409), region = 167 }
 0x40d   : >> { %s3457_s11 = smul.u32 48, %s6274_s20  ;;  %s6250_s18 = smov %s6274_s20 }
 0x40f   : >> { %s3459_s12 = scalar_lea.vmem %s5498_s22, %s3457_s11 [#allocation5]   ;;  %s3460_s27 = scalar_lea.vmem %s6150_s15, %s3457_s11  }
 0x411 PF: > { %4256 = sdivrem.u32 %s6272_s23, 6 }
 0x412   : > { %s3804_s8 = smul.u32 48, %s6153_s13 }
 0x414   : > { %s3465_s14 = scalar_lea.vmem %s5498_s22, %s3804_s8 [#allocation5]   ;;  %s3467_s16 = scalar_lea.vmem %s6150_s15, %s3804_s8  }
 0x41a   : > { %s4257_s17 = spop.drf %4256 }
 0x41b   : > { %p3806_p9 = scmp.le.s32.totalorder %s4257_s17, 0 }
 0x41c   : > { %s4381_s24 = smov (!%p3806_p9), %s3467_s16   ;;  %s4385_s26 = smov (!%p3806_p9), %s3465_s14  }
 0x41d   : > { %3594 = sbr.rel (%p3806_p9) target bundleno = 1066 (0x42a), region = 172  ;;  %s4389_s11 = smov (!%p3806_p9), 0  }
 0x41e   : > { %s4393_s0 = smov (!%p3806_p9), 0  }
 0x422 LB: >> { %v3477_v53 = vld [vmem:[%s4387_s26] sm:$0xff]  ;;  %s3479_s27 = sadd.s32 1, %s4391_s11  ;;  %s3471_s0 = sadd.s32 1, %s4395_s0   ;;  %s4395_s0 = sphi %s4393_s0, %s3471_s0   ;;  %s4391_s11 = sphi %s4389_s11, %s4390_s11   ;;  %s4387_s26 = sphi %s4385_s26, %s3484_s26   ;;  %s4383_s24 = sphi %s4381_s24, %s3485_s24  }
 0x423   : >> { %3478 = vst [vmem:[%s4383_s24] sm:$0xff] %v3477_v53  ;;  %p3480_p7 = scmp.ge.s32.totalorder %s3479_s27, %s4257_s17  ;;  %p3470_p8 = scmp.ge.s32.totalorder %s3471_s0, %s4257_s17 }
 0x425   : >> { %s6276_s27 = smov (%p3480_p7, %s3479_s27), 0  ;;  %3473 = sbr.rel (!%p3470_p8) target bundleno = 1058 (0x422), region = 178 }
 0x426   : >> { %s3807_s22 = sshll.u32 %s6276_s27, 3  ;;  %s4390_s11 = smov %s6276_s27  }
 0x427   : >> { %s3484_s26 = scalar_lea.vmem %s3465_s14, %s3807_s22 [#allocation5]   ;;  %s3485_s24 = scalar_lea.vmem %s3467_s16, %s3807_s22  }
 0x42a PF: > { %s18_s30 = sadd.s32 1, %s4363_s30   ;;  %s6251_s24 = smov %s4343_s25 }
 0x42b   : > { %p15_p10 = scmp.ge.s32.totalorder %s18_s30, 10   ;;  %s6252_s25 = smov %s4519_s21 }
 0x42c   : > { %s6253_s26 = smov %s4355_s28  ;;  %s6254_s27 = smov %s4359_s29 }
 0x42d   : > { %s6255_s28 = smov %s6258_s9  ;;  %s6256_s29 = smov %s6262_s10 }
 0x42e   :  { %17 = sbr.rel (!%p15_p10) target bundleno = 6 (0x6), region = 189 }
 0x433   :  { %3501 = vsyncpa [#allocation4], 1 }
 0x434   :  { %3503 = vsyncpa [#allocation4 + $0x1], 1 }

</bundles_post_ra>
